<compile_context>
chip_gen: v7x
topology: tpu7x:2x2x1
jax: 0.10.0
libtpu: 0.0.40
codegen_flags: <defaults>
</compile_context>

<pallas_src>
import jax
import jax.numpy as jnp
from jax.experimental import pallas as pl
from jax.experimental.pallas import tpu as pltpu

C = 512            # backbone channels
KS = 2             # crop_size <= 64  ->  conv kernel (1, 2, 2)
KIN = C * KS * KS  # 2048 = Cin*kD*kH*kW (im2col width) = 4*512 concat width
N_CLIPS = 4
PAD_N = 128        # lane-dense padded width for the class-score outputs
N_S = 4            # spatial-order classes
N_T = 2            # temporal-order classes


# ---------------------------------------------------------------------------
# Fused kernel (one grid step == one branch: 0 = spatial, 1 = temporal)
# ---------------------------------------------------------------------------
def _make_fused_kernel(batch, n_clips):
    def kernel(x_ref, wconv_ref, bconv_ref, w1_ref, b1_ref, w2_ref, b2_ref,
               out_ref):
        # --- Conv3d(512,512,(1,2,2)) + ReLU as an im2col matmul -------------
        # x: (n_clips*batch, KIN), clip-major rows; bf16 weights, f32 accum.
        xb = x_ref[...].astype(jnp.bfloat16)
        conv = jnp.dot(xb, wconv_ref[...], preferred_element_type=jnp.float32)
        conv = jnp.maximum(conv + bconv_ref[...], 0.0)        # (n_clips*B, C)

        # --- Linear(4*512, 512) decomposed over clips ------------------------
        # cat_k(sfeat_k) @ W1 == sum_k sfeat_k @ W1[k*C:(k+1)*C, :]
        acc = jnp.zeros((batch, C), jnp.float32)
        for k in range(n_clips):
            ck = conv[k * batch:(k + 1) * batch, :].astype(jnp.bfloat16)
            wk = w1_ref[k * C:(k + 1) * C, :]
            acc = acc + jnp.dot(ck, wk, preferred_element_type=jnp.float32)
        h = jnp.maximum(acc + b1_ref[...], 0.0).astype(jnp.bfloat16)  # (B, C)

        # --- Linear(512, n_cls) into a lane-dense, 128-wide padded block ----
        score = jnp.dot(h, w2_ref[...], preferred_element_type=jnp.float32)
        out_ref[...] = (score + b2_ref[...]).astype(out_ref.dtype)

    return kernel


def fused_forward_call(x_flat, p, batch, n_clips):
    m = n_clips * batch
    kernel = _make_fused_kernel(batch, n_clips)
    return pl.pallas_call(
        kernel,
        grid=(2,),  # branch axis: 0 = s-branch, 1 = t-branch
        in_specs=[
            pl.BlockSpec((m, KIN), lambda b: (0, 0)),                   # x (shared)
            pl.BlockSpec((None, KIN, C), lambda b: (b, 0, 0)),          # conv W
            pl.BlockSpec((None, 1, C), lambda b: (b, 0, 0)),            # conv bias
            pl.BlockSpec((None, n_clips * C, C), lambda b: (b, 0, 0)),  # head W1
            pl.BlockSpec((None, 1, C), lambda b: (b, 0, 0)),            # head b1
            pl.BlockSpec((None, C, PAD_N), lambda b: (b, 0, 0)),        # head W2 (padded)
            pl.BlockSpec((None, 1, PAD_N), lambda b: (b, 0, 0)),        # head b2 (padded)
        ],
        out_specs=pl.BlockSpec((None, batch, PAD_N), lambda b: (b, 0, 0)),
        out_shape=jax.ShapeDtypeStruct((2, batch, PAD_N), jnp.float32),
        compiler_params=pltpu.CompilerParams(
            dimension_semantics=("parallel",),      # v7x: one branch per core
            vmem_limit_bytes=32 * 1024 * 1024,      # headroom for bf16 weights
        ),
    )(x_flat, p["wconv"], p["bconv"], p["w1"], p["b1"], p["w2"], p["b2"])


# ---------------------------------------------------------------------------
# Wrapper
# ---------------------------------------------------------------------------
def prepare_params(params):
    """Stack s/t branch weights along a leading branch axis, cast the big
    matrices to bf16, pad the tiny class heads to 128 lanes. Done once."""
    def pad_cols(a, n):
        return jnp.pad(a, ((0, 0), (0, n - a.shape[1])))

    return {
        "wconv": jnp.stack([params["ws_conv"], params["wt_conv"]]).astype(jnp.bfloat16),
        "bconv": jnp.stack([params["bs_conv"], params["bt_conv"]]).astype(jnp.float32),
        "w1": jnp.stack([params["ws1"], params["wt1"]]).astype(jnp.bfloat16),
        "b1": jnp.stack([params["bs1"], params["bt1"]]).astype(jnp.float32),
        "w2": jnp.stack([pad_cols(params["ws2"], PAD_N),
                         pad_cols(params["wt2"], PAD_N)]).astype(jnp.bfloat16),
        "b2": jnp.stack([pad_cols(params["bs2"], PAD_N),
                         pad_cols(params["bt2"], PAD_N)]).astype(jnp.float32),
    }


def aost_long_net_forward(feats, prepped):
    """feats: list of 4 backbone features, each (B, 512, 1, 2, 2) NCDHW."""
    batch = feats[0].shape[0]
    n_clips = len(feats)
    # im2col flatten (Cin, kD, kH, kW) -> 2048, stack clips along rows (clip-major).
    # NOTE: for real PyTorch weights, the conv weight (Cout,Cin,kD,kH,kW) must be
    # flattened to (Cin*kD*kH*kW, Cout) in the same channel-major order.
    x_flat = jnp.concatenate([f.reshape(batch, KIN) for f in feats], axis=0)
    out = fused_forward_call(x_flat, prepped, batch, n_clips)   # (2, B, 128)
    sscore = out[0, :, :N_S]
    tscore = out[1, :, :N_T]
    return sscore, tscore


# ---------------------------------------------------------------------------
# Pure-JAX reference (f32, original module semantics)
# ---------------------------------------------------------------------------
def reference_forward(feats, params):
    batch = feats[0].shape[0]
    sfeats, tfeats = [], []
    for f in feats:
        xf = f.reshape(batch, KIN)
        sfeats.append(jnp.maximum(xf @ params["ws_conv"] + params["bs_conv"], 0.0))
        tfeats.append(jnp.maximum(xf @ params["wt_conv"] + params["bt_conv"], 0.0))
    sfeats = jnp.concatenate(sfeats, axis=1)
    tfeats = jnp.concatenate(tfeats, axis=1)
    s = jnp.maximum(sfeats @ params["ws1"] + params["bs1"], 0.0) @ params["ws2"] + params["bs2"]
    t = jnp.maximum(tfeats @ params["wt1"] + params["bt1"], 0.0) @ params["wt2"] + params["bt2"]
    return s, t


# ---------------------------------------------------------------------------
# Main
# ---------------------------------------------------------------------------
if __name__ == "__main__":
    key = jax.random.PRNGKey(0)
    keys = jax.random.split(key, 16)

    B = 2
    # backbone output features for the 4 video clips (NCDHW, D=1, H=W=ks=2)
    feats = [jax.random.normal(keys[i], (B, C, 1, KS, KS), dtype=jnp.float32)
             for i in range(4)]

    def init(k, shape, scale=0.02):
        return scale * jax.random.normal(k, shape, dtype=jnp.float32)

    params = {
        # Conv3d(512,512,(1,2,2)) weights flattened to (Cin*kH*kW, Cout) = (2048, 512)
        "ws_conv": init(keys[4], (KIN, C)),
        "bs_conv": init(keys[5], (1, C)),
        "wt_conv": init(keys[6], (KIN, C)),
        "bt_conv": init(keys[7], (1, C)),
        # sfc_cls: Linear(2048,512) -> ReLU -> Linear(512,4)
        "ws1": init(keys[8], (N_CLIPS * C, C)),
        "bs1": init(keys[9], (1, C)),
        "ws2": init(keys[10], (C, N_S)),
        "bs2": init(keys[11], (1, N_S)),
        # tfc_cls: Linear(2048,512) -> ReLU -> Linear(512,2)
        "wt1": init(keys[12], (N_CLIPS * C, C)),
        "bt1": init(keys[13], (1, C)),
        "wt2": init(keys[14], (C, N_T)),
        "bt2": init(keys[15], (1, N_T)),
    }

    prepped = jax.tree_util.tree_map(jax.block_until_ready, prepare_params(params))

    sscore, tscore = jax.block_until_ready(aost_long_net_forward(feats, prepped))
    sref, tref = reference_forward(feats, params)

    assert sscore.shape == (B, N_S) and tscore.shape == (B, N_T)
    # bf16 weights in the Pallas path vs f32 reference -> loosened tolerance
    assert jnp.allclose(sscore, sref, atol=3e-2, rtol=3e-2)
    assert jnp.allclose(tscore, tref, atol=3e-2, rtol=3e-2)
    print("KERNEL_OK")
</pallas_src>

<mosaic_0001>
module attributes {stable_mosaic.version = 11 : i64} {
  func.func @kernel(%arg0: i32, %arg1: memref<8x2048xf32, #tpu.memory_space<vmem>>, %arg2: memref<1x2048x512xbf16, #tpu.memory_space<vmem>>, %arg3: memref<1x1x512xf32, #tpu.memory_space<vmem>>, %arg4: memref<1x2048x512xbf16, #tpu.memory_space<vmem>>, %arg5: memref<1x1x512xf32, #tpu.memory_space<vmem>>, %arg6: memref<1x512x128xbf16, #tpu.memory_space<vmem>>, %arg7: memref<1x1x128xf32, #tpu.memory_space<vmem>>, %arg8: memref<1x2x128xf32, #tpu.memory_space<vmem>>) attributes {dimension_semantics = [#tpu.dimension_semantics<parallel>], iteration_bounds = array<i64: 2>, scalar_prefetch = 0 : i64, scratch_operands = 0 : i64, tpu.core_type = #tpu.core_type<tc>, window_params = [{pipeline_mode = #tpu.pipeline_mode<synchronous>, transform_indices = @transform_0, window_bounds = array<i64: 8, 2048>}, {transform_indices = @transform_1, window_bounds = array<i64: 1, 2048, 512>}, {transform_indices = @transform_2, window_bounds = array<i64: 1, 1, 512>}, {transform_indices = @transform_3, window_bounds = array<i64: 1, 2048, 512>}, {transform_indices = @transform_4, window_bounds = array<i64: 1, 1, 512>}, {transform_indices = @transform_5, window_bounds = array<i64: 1, 512, 128>}, {transform_indices = @transform_6, window_bounds = array<i64: 1, 1, 128>}, {transform_indices = @transform_7, window_bounds = array<i64: 1, 2, 128>}]} {
    %c0 = arith.constant 0 : index
    %c0_0 = arith.constant 0 : index
    %0 = vector.load %arg1[%c0, %c0_0] : memref<8x2048xf32, #tpu.memory_space<vmem>>, vector<8x2048xf32>
    %1 = arith.truncf %0 : vector<8x2048xf32> to vector<8x2048xbf16>
    %c0_1 = arith.constant 0 : index
    %c0_2 = arith.constant 0 : index
    %c0_3 = arith.constant 0 : index
    %2 = vector.load %arg2[%c0_1, %c0_2, %c0_3] : memref<1x2048x512xbf16, #tpu.memory_space<vmem>>, vector<1x2048x512xbf16>
    %3 = vector.shape_cast %2 : vector<1x2048x512xbf16> to vector<2048x512xbf16>
    %cst = arith.constant dense<0.000000e+00> : vector<8x512xf32>
    %4 = tpu.matmul %1, %3, %cst {dimension_numbers = #tpu.dot_dimension_numbers<[1], [0], [0], [1], [0, 0, 1, 1], [], []>} : vector<8x2048xbf16>, vector<2048x512xbf16>, vector<8x512xf32> -> vector<8x512xf32>
    %c0_4 = arith.constant 0 : index
    %c0_5 = arith.constant 0 : index
    %c0_6 = arith.constant 0 : index
    %5 = vector.load %arg3[%c0_4, %c0_5, %c0_6] : memref<1x1x512xf32, #tpu.memory_space<vmem>>, vector<1x1x512xf32>
    %6 = vector.shape_cast %5 : vector<1x1x512xf32> to vector<1x512xf32>
    %7 = vector.broadcast %6 : vector<1x512xf32> to vector<8x512xf32>
    %8 = arith.addf %4, %7 : vector<8x512xf32>
    %cst_7 = arith.constant 0.000000e+00 : f32
    %9 = vector.broadcast %cst_7 : f32 to vector<8x512xf32>
    %10 = arith.maximumf %8, %9 : vector<8x512xf32>
    %cst_8 = arith.constant 0.000000e+00 : f32
    %11 = vector.broadcast %cst_8 : f32 to vector<2x512xf32>
    %12 = vector.extract_strided_slice %10 {offsets = [0, 0], sizes = [2, 512], strides = [1, 1]} : vector<8x512xf32> to vector<2x512xf32>
    %13 = arith.truncf %12 : vector<2x512xf32> to vector<2x512xbf16>
    %c0_9 = arith.constant 0 : index
    %c0_10 = arith.constant 0 : index
    %c0_11 = arith.constant 0 : index
    %14 = vector.load %arg4[%c0_9, %c0_10, %c0_11] : memref<1x2048x512xbf16, #tpu.memory_space<vmem>>, vector<1x512x512xbf16>
    %15 = vector.shape_cast %14 : vector<1x512x512xbf16> to vector<512x512xbf16>
    %cst_12 = arith.constant dense<0.000000e+00> : vector<2x512xf32>
    %16 = tpu.matmul %13, %15, %cst_12 {dimension_numbers = #tpu.dot_dimension_numbers<[1], [0], [0], [1], [0, 0, 1, 1], [], []>} : vector<2x512xbf16>, vector<512x512xbf16>, vector<2x512xf32> -> vector<2x512xf32>
    %17 = arith.addf %11, %16 : vector<2x512xf32>
    %18 = vector.extract_strided_slice %10 {offsets = [2, 0], sizes = [2, 512], strides = [1, 1]} : vector<8x512xf32> to vector<2x512xf32>
    %19 = arith.truncf %18 : vector<2x512xf32> to vector<2x512xbf16>
    %c0_13 = arith.constant 0 : index
    %c512 = arith.constant 512 : index
    %c0_14 = arith.constant 0 : index
    %20 = vector.load %arg4[%c0_13, %c512, %c0_14] : memref<1x2048x512xbf16, #tpu.memory_space<vmem>>, vector<1x512x512xbf16>
    %21 = vector.shape_cast %20 : vector<1x512x512xbf16> to vector<512x512xbf16>
    %cst_15 = arith.constant dense<0.000000e+00> : vector<2x512xf32>
    %22 = tpu.matmul %19, %21, %cst_15 {dimension_numbers = #tpu.dot_dimension_numbers<[1], [0], [0], [1], [0, 0, 1, 1], [], []>} : vector<2x512xbf16>, vector<512x512xbf16>, vector<2x512xf32> -> vector<2x512xf32>
    %23 = arith.addf %17, %22 : vector<2x512xf32>
    %24 = vector.extract_strided_slice %10 {offsets = [4, 0], sizes = [2, 512], strides = [1, 1]} : vector<8x512xf32> to vector<2x512xf32>
    %25 = arith.truncf %24 : vector<2x512xf32> to vector<2x512xbf16>
    %c0_16 = arith.constant 0 : index
    %c1024 = arith.constant 1024 : index
    %c0_17 = arith.constant 0 : index
    %26 = vector.load %arg4[%c0_16, %c1024, %c0_17] : memref<1x2048x512xbf16, #tpu.memory_space<vmem>>, vector<1x512x512xbf16>
    %27 = vector.shape_cast %26 : vector<1x512x512xbf16> to vector<512x512xbf16>
    %cst_18 = arith.constant dense<0.000000e+00> : vector<2x512xf32>
    %28 = tpu.matmul %25, %27, %cst_18 {dimension_numbers = #tpu.dot_dimension_numbers<[1], [0], [0], [1], [0, 0, 1, 1], [], []>} : vector<2x512xbf16>, vector<512x512xbf16>, vector<2x512xf32> -> vector<2x512xf32>
    %29 = arith.addf %23, %28 : vector<2x512xf32>
    %30 = vector.extract_strided_slice %10 {offsets = [6, 0], sizes = [2, 512], strides = [1, 1]} : vector<8x512xf32> to vector<2x512xf32>
    %31 = arith.truncf %30 : vector<2x512xf32> to vector<2x512xbf16>
    %c0_19 = arith.constant 0 : index
    %c1536 = arith.constant 1536 : index
    %c0_20 = arith.constant 0 : index
    %32 = vector.load %arg4[%c0_19, %c1536, %c0_20] : memref<1x2048x512xbf16, #tpu.memory_space<vmem>>, vector<1x512x512xbf16>
    %33 = vector.shape_cast %32 : vector<1x512x512xbf16> to vector<512x512xbf16>
    %cst_21 = arith.constant dense<0.000000e+00> : vector<2x512xf32>
    %34 = tpu.matmul %31, %33, %cst_21 {dimension_numbers = #tpu.dot_dimension_numbers<[1], [0], [0], [1], [0, 0, 1, 1], [], []>} : vector<2x512xbf16>, vector<512x512xbf16>, vector<2x512xf32> -> vector<2x512xf32>
    %35 = arith.addf %29, %34 : vector<2x512xf32>
    %c0_22 = arith.constant 0 : index
    %c0_23 = arith.constant 0 : index
    %c0_24 = arith.constant 0 : index
    %36 = vector.load %arg5[%c0_22, %c0_23, %c0_24] : memref<1x1x512xf32, #tpu.memory_space<vmem>>, vector<1x1x512xf32>
    %37 = vector.shape_cast %36 : vector<1x1x512xf32> to vector<1x512xf32>
    %38 = vector.broadcast %37 : vector<1x512xf32> to vector<2x512xf32>
    %39 = arith.addf %35, %38 : vector<2x512xf32>
    %cst_25 = arith.constant 0.000000e+00 : f32
    %40 = vector.broadcast %cst_25 : f32 to vector<2x512xf32>
    %41 = arith.maximumf %39, %40 : vector<2x512xf32>
    %42 = arith.truncf %41 : vector<2x512xf32> to vector<2x512xbf16>
    %c0_26 = arith.constant 0 : index
    %c0_27 = arith.constant 0 : index
    %c0_28 = arith.constant 0 : index
    %43 = vector.load %arg6[%c0_26, %c0_27, %c0_28] : memref<1x512x128xbf16, #tpu.memory_space<vmem>>, vector<1x512x128xbf16>
    %44 = vector.shape_cast %43 : vector<1x512x128xbf16> to vector<512x128xbf16>
    %cst_29 = arith.constant dense<0.000000e+00> : vector<2x128xf32>
    %45 = tpu.matmul %42, %44, %cst_29 {dimension_numbers = #tpu.dot_dimension_numbers<[1], [0], [0], [1], [0, 0, 1, 1], [], []>} : vector<2x512xbf16>, vector<512x128xbf16>, vector<2x128xf32> -> vector<2x128xf32>
    %c0_30 = arith.constant 0 : index
    %c0_31 = arith.constant 0 : index
    %c0_32 = arith.constant 0 : index
    %46 = vector.load %arg7[%c0_30, %c0_31, %c0_32] : memref<1x1x128xf32, #tpu.memory_space<vmem>>, vector<1x1x128xf32>
    %47 = vector.shape_cast %46 : vector<1x1x128xf32> to vector<1x128xf32>
    %48 = vector.broadcast %47 : vector<1x128xf32> to vector<2x128xf32>
    %49 = arith.addf %45, %48 : vector<2x128xf32>
    %c0_33 = arith.constant 0 : index
    %c0_34 = arith.constant 0 : index
    %c0_35 = arith.constant 0 : index
    %50 = vector.load %arg8[%c0_33, %c0_34, %c0_35] : memref<1x2x128xf32, #tpu.memory_space<vmem>>, vector<1x2x128xf32>
    %51 = vector.shape_cast %50 : vector<1x2x128xf32> to vector<2x128xf32>
    %52 = vector.shape_cast %49 : vector<2x128xf32> to vector<1x2x128xf32>
    tpu.vector_store %arg8[%c0_33, %c0_34, %c0_35], %52 {strides = array<i32>} : memref<1x2x128xf32, #tpu.memory_space<vmem>>, vector<1x2x128xf32>,
    return
  }
  func.func @transform_0(%arg0: i32) -> (i32, i32) {
    %c0_i32 = arith.constant 0 : i32
    %c0_i32_0 = arith.constant 0 : i32
    %c0_i32_1 = arith.constant 0 : i32
    return %c0_i32, %c0_i32_0 : i32, i32
  }
  func.func @transform_1(%arg0: i32) -> (i32, i32, i32) {
    %c0_i32 = arith.constant 0 : i32
    %c0_i32_0 = arith.constant 0 : i32
    %c0_i32_1 = arith.constant 0 : i32
    return %arg0, %c0_i32, %c0_i32_0 : i32, i32, i32
  }
  func.func @transform_2(%arg0: i32) -> (i32, i32, i32) {
    %c0_i32 = arith.constant 0 : i32
    %c0_i32_0 = arith.constant 0 : i32
    %c0_i32_1 = arith.constant 0 : i32
    return %arg0, %c0_i32, %c0_i32_0 : i32, i32, i32
  }
  func.func @transform_3(%arg0: i32) -> (i32, i32, i32) {
    %c0_i32 = arith.constant 0 : i32
    %c0_i32_0 = arith.constant 0 : i32
    %c0_i32_1 = arith.constant 0 : i32
    return %arg0, %c0_i32, %c0_i32_0 : i32, i32, i32
  }
  func.func @transform_4(%arg0: i32) -> (i32, i32, i32) {
    %c0_i32 = arith.constant 0 : i32
    %c0_i32_0 = arith.constant 0 : i32
    %c0_i32_1 = arith.constant 0 : i32
    return %arg0, %c0_i32, %c0_i32_0 : i32, i32, i32
  }
  func.func @transform_5(%arg0: i32) -> (i32, i32, i32) {
    %c0_i32 = arith.constant 0 : i32
    %c0_i32_0 = arith.constant 0 : i32
    %c0_i32_1 = arith.constant 0 : i32
    return %arg0, %c0_i32, %c0_i32_0 : i32, i32, i32
  }
  func.func @transform_6(%arg0: i32) -> (i32, i32, i32) {
    %c0_i32 = arith.constant 0 : i32
    %c0_i32_0 = arith.constant 0 : i32
    %c0_i32_1 = arith.constant 0 : i32
    return %arg0, %c0_i32, %c0_i32_0 : i32, i32, i32
  }
  func.func @transform_7(%arg0: i32) -> (i32, i32, i32) {
    %c0_i32 = arith.constant 0 : i32
    %c0_i32_0 = arith.constant 0 : i32
    %c0_i32_1 = arith.constant 0 : i32
    return %arg0, %c0_i32, %c0_i32_0 : i32, i32, i32
  }
}

</mosaic_0001>

<bundles_post_ra>
// kernel: tpu_custom_call.1
= control target key start
LH: loop header
LB: loop body
LE: loop exit
PB: predicated region body
PF: predicated region fallthrough
CT: control target
= control target key end

     0   :  { %s13381_s0 = inlined_call_operand.hbm [shape: f32[8,2048], index: 0, kind: input, shape index: {}]   ;;  %s13382_s1 = inlined_call_operand.hbm [shape: bf16[2,2048,512], index: 1, kind: input, shape index: {}]   ;;  %s13383_s2 = inlined_call_operand.hbm [shape: f32[2,1,512], index: 2, kind: input, shape index: {}]   ;;  %s13384_s3 = inlined_call_operand.hbm [shape: bf16[2,2048,512], index: 3, kind: input, shape index: {}]   ;;  %s13385_s4 = inlined_call_operand.hbm [shape: f32[2,1,512], index: 4, kind: input, shape index: {}]   ;;  %s13386_s5 = inlined_call_operand.hbm [shape: bf16[2,512,128], index: 5, kind: input, shape index: {}]   ;;  %s13387_s6 = inlined_call_operand.hbm [shape: f32[2,1,128], index: 6, kind: input, shape index: {}]   ;;  %s13388_s7 = inlined_call_operand.hbm [shape: f32[2,2,128], index: 7, kind: output, shape index: {}]  }
   0x1   :  { %13405 = sst [smem:[#allocation22_spill]] %s13381_s0 }
   0x2   :  { %13406 = sst [smem:[#allocation23_spill]] %s13382_s1 }
   0x3   :  { %13407 = sst [smem:[#allocation24_spill]] %s13383_s2 }
   0x4   :  { %13408 = sst [smem:[#allocation25_spill]] %s13384_s3 }
   0x5   :  { %13409 = sst [smem:[#allocation26_spill]] %s13386_s5 }
   0x6   :  { %12 = vsyncpa [#allocation3], 0 }
   0x7   :  { %13 = vsyncpa [#allocation6], 0 }
   0x8   :  { %15 = vsyncpa [#allocation6 + $0x1], 0 }
   0x9   :  { %16 = vsyncpa [#allocation9], 0 }
   0xa   :  { %18 = vsyncpa [#allocation9 + $0x1], 0 }
   0xb   :  { %19 = vsyncpa [#allocation12], 0 }
   0xc   :  { %21 = vsyncpa [#allocation12 + $0x1], 0 }
   0xd   :  { %22 = vsyncpa [#allocation4], 0 }
   0xe   :  { %24 = vsyncpa [#allocation4 + $0x1], 0  ;;  %s11815_s24 = smov 0   ;;  %s11817_s25 = smov 0  }
   0xf   :  { %s11819_s26 = smov 0   ;;  %s11821_s27 = smov 0  }
  0x10 LB: > { %13410 = sst [smem:[#allocation20_spill]] %s11757_s26  ;;  %s11836_s28 = sadd.s32 1, %s11761_s27   ;;  %s11761_s27 = sphi %s11821_s27, %s13446_s27   ;;  %s11757_s26 = sphi %s11819_s26, %s13443_s26   ;;  %s11753_s25 = sphi %s11817_s25, %s13445_s25   ;;  %s11749_s24 = sphi %s11815_s24, %s13444_s24  }
  0x11   : > { %s58_s29 = sadd.s32 1, %s11757_s26  ;;  %s55_s30 = ssub.s32 %s11761_s27, %s11836_s28 }
  0x12   : > { %p13389_p0 = scmp.ne.s32.totalorder %s11757_s26, %s11753_s25  ;;  %p56_p1 = scmp.eq.s32.totalorder %s55_s30, 0 }
  0x13   : > { %p66_p2 = scmp.eq.s32.totalorder %s11761_s27, 0  ;;  %p9867_p4 = scmp.lt.s32.totalorder %s11761_s27, 2 }
  0x14   : > { %s11847_s8 = scalar_select %p56_p1, %s11757_s26, %s58_s29  }
  0x15   : > { %p67_p5 = por %p66_p2, %p13389_p0  ;;  %s11853_s9 = sand.u32 1, %s11761_s27  }
  0x16   : > { %13411 = sst [smem:[#allocation21_spill]] %s11847_s8  ;;  %s11856_s10 = sand.u32 1, %s11757_s26  }
  0x17   : > { %s8627_s11 = sshll.u32 %s11856_s10, 12  ;;  %s9712_s12 = sshll.u32 %s11761_s27, 16 }
  0x18   : > { %s13412_s1 = sld [smem:[#allocation23_spill]]  ;;  %s266_s16 = scalar_lea.vmem [#allocation5], %s8627_s11 }
  0x19   : > { %s273_s17 = sshll.u32 %s266_s16, 4  ;;  %p11869_p6 = pnand %p9867_p4, %p67_p5  ;;  %s11873_s17 = int_to_ptr.vmem [resolvable:$true] %s273_s17 }
  0x1a   : > { %s13390_s19 = scalar_lea.sflag [#allocation6], %s11853_s9 }
  0x1b   : > { %s13413_s18 = scalar_select %p11869_p6, 1, 0 }
  0x1c   : > { %p11880_p8 = pneg %p11869_p6 }
  0x1e   : > { %s11865_s15 = scalar_lea.hbm %s13412_s1, %s9712_s12  ;;  %s11480_s29 = scalar_lea.hbm %s13412_s1, 131072 }
  0x1f   : > { %s11475_s20 = scalar_lea.hbm %s11865_s15, 65536  ;;  %p11481_p11 = scmp.lt.u32.totalorder %s11865_s15, %s13412_s1 }
  0x20   : > { %p11476_p7 = scmp.ne.s32.totalorder %s11865_s15, %s11475_s20  ;;  %p11482_p12 = scmp.lt.u32.totalorder %s11480_s29, %s11475_s20 }
  0x21   : > { %s13414_s21 = scalar_select %p11880_p8, 1, 0 }
  0x22   : > { %p11478_p9 = pnand %p11880_p8, %p11476_p7  ;;  %p11483_p13 = por %p11482_p12, %p11481_p11 }
  0x23   : > { %p11484_p1 = scmp.lt.u32.totalorder %s11475_s20, %s11865_s15 }
  0x24   : > { %p11479_p10 = pneg %p11478_p9 }
  0x25   : > { %p11485_p2 = por %p11484_p1, %p11483_p13 }
  0x27   : > { %p11486_p4 = pnand %p11485_p2, %p11479_p10 }
  0x29   : > { %11489 = shalt.err (!%p11486_p4)
}
  0x2a   : > { %s11490_s14 = scalar_lea.vmem %s11873_s17, 65536  ;;  %s11763_s16 = smov [#allocation5]  }
  0x2b   : > { %p11491_p5 = scmp.ne.s32.totalorder %s11873_s17, %s11490_s14  ;;  %s11495_s22 = sshll.u32 %s11763_s16, 4  ;;  %s11496_s22 = int_to_ptr.vmem [resolvable:$false] %s11495_s22 }
  0x2c   : > { %s11497_s23 = scalar_lea.vmem %s11496_s22, 131072  ;;  %p11498_p3 = scmp.lt.s32.totalorder %s11873_s17, %s11496_s22 }
  0x2d   : > { %p11493_p7 = pnand %p11491_p5, %p11880_p8  ;;  %p11499_p0 = scmp.lt.s32.totalorder %s11497_s23, %s11490_s14 }
  0x2f   : > { %p11494_p9 = pneg %p11493_p7  ;;  %p11500_p11 = por %p11499_p0, %p11498_p3 }
  0x31   : > { %p11501_p12 = pnand %p11500_p11, %p11494_p9 }
  0x33   : > { %11504 = shalt.err (!%p11501_p12)
}
  0x34   : > { %s11764_s20 = smov 256   ;;  %s11765_s29 = smov 16  }
  0x35   : > { %9846 = dma.hbm_to_vmem [thread:$0]  (!%p11869_p6), %s11865_s15, 65536, %s11873_s17, %s13390_s19, %s11764_s20, %s11764_s20, %s11765_s29  }
  0x36   : > { %s13415_s3 = sld [smem:[#allocation25_spill]]  ;;  %s306_s16 = scalar_lea.vmem [#allocation8], %s8627_s11 }
  0x37   : > { %s313_s22 = sshll.u32 %s306_s16, 4  ;;  %s13392_s23 = scalar_lea.sflag [#allocation9], %s11853_s9  ;;  %s11917_s22 = int_to_ptr.vmem [resolvable:$true] %s313_s22 }
  0x3c   : > { %s11913_s14 = scalar_lea.hbm %s13415_s3, %s9712_s12  ;;  %s11510_s12 = scalar_lea.hbm %s13415_s3, 131072 }
  0x3d   : > { %s11505_s1 = scalar_lea.hbm %s11913_s14, 65536  ;;  %p11511_p13 = scmp.lt.u32.totalorder %s11913_s14, %s13415_s3 }
  0x3e   : > { %p11506_p0 = scmp.ne.s32.totalorder %s11913_s14, %s11505_s1  ;;  %p11512_p1 = scmp.lt.u32.totalorder %s11510_s12, %s11505_s1 }
  0x3f   : > { %p11514_p4 = scmp.lt.u32.totalorder %s11505_s1, %s11913_s14 }
  0x40   : > { %p11508_p3 = pnand %p11506_p0, %p11880_p8  ;;  %p11513_p2 = por %p11512_p1, %p11511_p13 }
  0x42   : > { %p11509_p10 = pneg %p11508_p3  ;;  %p11515_p5 = por %p11514_p4, %p11513_p2 }
  0x44   : > { %p11516_p7 = pnand %p11515_p5, %p11509_p10 }
  0x46   : > { %11519 = shalt.err (!%p11516_p7)
}
  0x47   : > { %s11520_s11 = scalar_lea.vmem %s11917_s22, 65536  ;;  %s11766_s16 = smov [#allocation8]  }
  0x48   : > { %p11521_p9 = scmp.ne.s32.totalorder %s11917_s22, %s11520_s11  ;;  %s11525_s15 = sshll.u32 %s11766_s16, 4  ;;  %s11526_s15 = int_to_ptr.vmem [resolvable:$false] %s11525_s15 }
  0x49   : > { %s11527_s17 = scalar_lea.vmem %s11526_s15, 131072  ;;  %p11528_p0 = scmp.lt.s32.totalorder %s11917_s22, %s11526_s15 }
  0x4a   : > { %p11523_p11 = pnand %p11521_p9, %p11880_p8  ;;  %p11529_p3 = scmp.lt.s32.totalorder %s11527_s17, %s11520_s11 }
  0x4c   : > { %p11524_p12 = pneg %p11523_p11  ;;  %p11530_p13 = por %p11529_p3, %p11528_p0 }
  0x4e   : > { %p11531_p1 = pnand %p11530_p13, %p11524_p12 }
  0x50   : > { %11534 = shalt.err (!%p11531_p1)
}
  0x51   : > { %9852 = dma.hbm_to_vmem [thread:$0]  (!%p11869_p6), %s11913_s14, 65536, %s11917_s22, %s13392_s23, %s11764_s20, %s11764_s20, %s11765_s29  }
  0x52   : > { %s8639_s1 = sshll.u32 %s11856_s10, 8  ;;  %s9716_s12 = sshll.u32 %s11761_s27, 12 }
  0x53   : > { %s13416_s5 = sld [smem:[#allocation26_spill]]  ;;  %s346_s16 = scalar_lea.vmem [#allocation11], %s8639_s1 }
  0x54   : > { %s353_s15 = sshll.u32 %s346_s16, 4  ;;  %s13391_s17 = scalar_lea.sflag [#allocation12], %s11853_s9  ;;  %s11953_s15 = int_to_ptr.vmem [resolvable:$true] %s353_s15 }
  0x59   : > { %s11951_s11 = scalar_lea.hbm %s13416_s5, %s9716_s12  ;;  %s11540_s14 = scalar_lea.hbm %s13416_s5, 8192 }
  0x5a   : > { %s11535_s19 = scalar_lea.hbm %s11951_s11, 4096  ;;  %p11541_p5 = scmp.lt.u32.totalorder %s11951_s11, %s13416_s5 }
  0x5b   : > { %p11536_p10 = scmp.ne.s32.totalorder %s11951_s11, %s11535_s19  ;;  %p11542_p7 = scmp.lt.u32.totalorder %s11540_s14, %s11535_s19 }
  0x5c   : > { %p11544_p11 = scmp.lt.u32.totalorder %s11535_s19, %s11951_s11 }
  0x5d   : > { %p11538_p2 = pnand %p11536_p10, %p11880_p8  ;;  %p11543_p9 = por %p11542_p7, %p11541_p5 }
  0x5f   : > { %p11539_p4 = pneg %p11538_p2  ;;  %p11545_p12 = por %p11544_p11, %p11543_p9 }
  0x61   : > { %p11546_p0 = pnand %p11545_p12, %p11539_p4 }
  0x63   : > { %11549 = shalt.err (!%p11546_p0)
}
  0x64   : > { %s11550_s1 = scalar_lea.vmem %s11953_s15, 4096  ;;  %s11767_s30 = smov [#allocation11]  }
  0x65   : > { %p11551_p3 = scmp.ne.s32.totalorder %s11953_s15, %s11550_s1  ;;  %s11555_s13 = sshll.u32 %s11767_s30, 4  ;;  %s11556_s13 = int_to_ptr.vmem [resolvable:$false] %s11555_s13 }
  0x66   : > { %s11557_s16 = scalar_lea.vmem %s11556_s13, 8192  ;;  %p11558_p10 = scmp.lt.s32.totalorder %s11953_s15, %s11556_s13 }
  0x67   : > { %p11553_p13 = pnand %p11551_p3, %p11880_p8  ;;  %p11559_p2 = scmp.lt.s32.totalorder %s11557_s16, %s11550_s1 }
  0x69   : > { %p11554_p1 = pneg %p11553_p13  ;;  %p11560_p5 = por %p11559_p2, %p11558_p10 }
  0x6b   : > { %p11561_p7 = pnand %p11560_p5, %p11554_p1 }
  0x6d   : > { %11564 = shalt.err (!%p11561_p7)
}
  0x6e   : > { %s11768_s19 = smov 64   ;;  %s11769_s20 = smov 4  }
  0x6f   : > { %9858 = dma.hbm_to_vmem [thread:$0]  (!%p11869_p6), %s11951_s11, 4096, %s11953_s15, %s13391_s17, %s11768_s19, %s11768_s19, %s11769_s20  }
  0x70   : > { %s11980_s29 = sadd.s32 4294967295, %s11761_s27   ;;  %s8623_s14 = sadd.s32 4294967294, %s11761_s27  }
  0x71   : > { %p71_p4 = scmp.ne.s32.totalorder %s11753_s25, %s11749_s24  ;;  %p13394_p9 = scmp.eq.s32.totalorder %s11980_s29, 0 }
  0x72   : > { %p225_p11 = scmp.eq.s32.totalorder %s11980_s29, 1  ;;  %p231_p12 = scmp.eq.s32.totalorder %s8623_s14, 1 }
  0x73   : > { %p11989_p0 = por %p13394_p9, %p71_p4  ;;  %p8624_p3 = scmp.ge.s32.totalorder %s11761_s27, 1 }
  0x74   : > { %p13418_p13 = scmp.ne.s32.totalorder %s11757_s26, %s11753_s25  ;;  %p12001_p10 = por %p231_p12, %p71_p4 }
  0x75   : > { %s13417_s22 = scalar_select %p11989_p0, 1, 0 }
  0x76   : > { %p11997_p1 = por %p225_p11, %p13418_p13  ;;  %p238_p2 = scmp.lt.s32.totalorder %s11761_s27, 3 }
  0x77   : > { %s13420_s15 = scalar_select %p12001_p10, 1, 0 }
  0x78   : > { %s13419_s11 = scalar_select %p11997_p1, 1, 0 }
  0x79   : > { %s13397_s12 = sshll.u32 %s11856_s10, 2  ;;  %p12007_p5 = pnand %p8624_p3, %p238_p2 }
  0x7a   : > { %s11770_s30 = smov [#allocation2]   ;;  %s13393_s16 = sshll.u32 %s11761_s27, 6 }
  0x7b   : > { %s13421_s1 = scalar_select %p12007_p5, 1, 0 }
  0x7c   : > { %s251_s13 = sshll.u32 %s11770_s30, 4  ;;  %p9839_p7 = pneg %p12007_p5  ;;  %s12011_s13 = int_to_ptr.vmem [resolvable:$true] %s251_s13 }
  0x7d   : > { %s13422_s2 = sld [smem:[#allocation24_spill]]  ;;  %s287_s17 = scalar_lea.vmem [#allocation7], %s13397_s12 }
  0x7e   : > { %s295_s23 = sshll.u32 %s287_s17, 4  ;;  %p12027_p4 = pnand %p9839_p7, %p13394_p9  ;;  %s296_s23 = int_to_ptr.vmem [resolvable:$true] %s295_s23 }
  0x80   : > { %s13423_s30 = scalar_select %p12027_p4, 1, 0 }
  0x83   : > { %s12021_s14 = scalar_lea.hbm %s13422_s2, %s13393_s16  ;;  %s11570_s16 = scalar_lea.hbm %s13422_s2, 128 }
  0x84   : > { %s11565_s3 = scalar_lea.hbm %s12021_s14, 64  ;;  %p11571_p13 = scmp.lt.u32.totalorder %s12021_s14, %s13422_s2 }
  0x85   : > { %p11566_p11 = scmp.ne.s32.totalorder %s12021_s14, %s11565_s3  ;;  %p11572_p2 = scmp.lt.u32.totalorder %s11570_s16, %s11565_s3 }
  0x86   : > { %p11574_p7 = scmp.lt.u32.totalorder %s11565_s3, %s12021_s14 }
  0x87   : > { %p11568_p12 = pnand %p11566_p11, %p11880_p8  ;;  %p11573_p10 = por %p11572_p2, %p11571_p13 }
  0x89   : > { %p11569_p3 = pneg %p11568_p12  ;;  %p11575_p9 = por %p11574_p7, %p11573_p10 }
  0x8b   : > { %p11576_p1 = pnand %p11575_p9, %p11569_p3 }
  0x8d   : > { %11579 = shalt.err (!%p11576_p1)
}
  0x8e   : > { %s11580_s17 = scalar_lea.vmem %s296_s23, 64  ;;  %s11771_s12 = smov [#allocation7]  }
  0x8f   : > { %p11581_p0 = scmp.ne.s32.totalorder %s296_s23, %s11580_s17  ;;  %s11585_s26 = sshll.u32 %s11771_s12, 4  ;;  %s11586_s26 = int_to_ptr.vmem [resolvable:$false] %s11585_s26 }
  0x90   : > { %s11587_s19 = scalar_lea.vmem %s11586_s26, 128  ;;  %p11588_p5 = scmp.lt.s32.totalorder %s296_s23, %s11586_s26 }
  0x91   : > { %p11583_p11 = pnand %p11581_p0, %p11880_p8  ;;  %p11589_p4 = scmp.lt.s32.totalorder %s11587_s19, %s11580_s17 }
  0x93   : > { %p11584_p12 = pneg %p11583_p11  ;;  %p11590_p6 = por %p11589_p4, %p11588_p5 }
  0x95   : > { %p11591_p2 = pnand %p11590_p6, %p11584_p12 }
  0x97   : > { %11594 = shalt.err (!%p11591_p2)
}
  0x98   : > { %p13424_p13 = scmp.ne.s32.totalorder %s13413_s18, 0  ;;  %s13425_s3 = scalar_lea.sflag [#allocation6], %s11853_s9 }
  0x99   : > { %s13426_s0 = sld [smem:[#allocation22_spill]]  ;;  %p13427_p0 = scmp.ne.s32.totalorder %s13423_s30, 0 }
  0x9a   : > { %9849 = dma.hbm_to_vmem [thread:$0]  (!%p13424_p13), %s12021_s14, 64, %s296_s23, %s13425_s3  }
  0x9b   : > { %p11597_p1 = pneg %p13427_p0 }
  0x9f   : > { %s11595_s16 = scalar_lea.hbm %s13426_s0, 2048 }
  0xa0   : > { %p11596_p9 = scmp.ne.s32.totalorder %s13426_s0, %s11595_s16  ;;  %p11602_p5 = scmp.lt.u32.totalorder %s11595_s16, %s13426_s0 }
  0xa2   : > { %p11598_p10 = pnand %p11597_p1, %p11596_p9 }
  0xa4   : > { %p11599_p6 = pneg %p11598_p10 }
  0xa6   : > { %p11604_p4 = pnand %p11602_p5, %p11599_p6 }
  0xa8   : > { %11607 = shalt.err (!%p11604_p4)
}
  0xa9   : > { %s11608_s23 = scalar_lea.vmem %s12011_s13, 2048  ;;  %p11616_p12 = scmp.lt.s32.totalorder %s12011_s13, %s12011_s13 }
  0xaa   : > { %p11609_p3 = scmp.ne.s32.totalorder %s12011_s13, %s11608_s23  ;;  %p11617_p2 = scmp.lt.s32.totalorder %s11608_s23, %s11608_s23 }
  0xac   : > { %p11611_p7 = pnand %p11609_p3, %p11597_p1  ;;  %p11618_p13 = por %p11617_p2, %p11616_p12 }
  0xae   : > { %p11612_p11 = pneg %p11611_p7 }
  0xb0   : > { %p11619_p8 = pnand %p11618_p13, %p11612_p11 }
  0xb2   : > { %11622 = shalt.err (!%p11619_p8)
}
  0xb3   : > { %9842 = dma.hbm_to_vmem [thread:$0]  (!%p13427_p0), %s13426_s0, 2048, %s12011_s13, [#allocation3]  }
  0xb4   : > { %s13428_s3 = sshll.u32 %s11761_s27, 6  ;;  %s13429_s20 = sshll.u32 %s11856_s10, 2 }
  0xb5   : > { %s12076_s16 = scalar_lea.hbm %s13385_s4, %s13428_s3  ;;  %s327_s30 = scalar_lea.vmem [#allocation10], %s13429_s20 }
  0xb6   : > { %s335_s12 = sshll.u32 %s327_s30, 4  ;;  %s11623_s26 = scalar_lea.hbm %s12076_s16, 64  ;;  %s336_s12 = int_to_ptr.vmem [resolvable:$true] %s335_s12 }
  0xb7   : > { %p11624_p8 = scmp.ne.s32.totalorder %s12076_s16, %s11623_s26  ;;  %p13430_p13 = scmp.ne.s32.totalorder %s13414_s21, 0 }
  0xb8   : > { %s11628_s23 = scalar_lea.hbm %s13385_s4, 128  ;;  %p11629_p0 = scmp.lt.u32.totalorder %s12076_s16, %s13385_s4 }
  0xb9   : > { %p11626_p9 = pnand %p11624_p8, %p13430_p13  ;;  %p11630_p10 = scmp.lt.u32.totalorder %s11628_s23, %s11623_s26 }
  0xba   : > { %p11632_p5 = scmp.lt.u32.totalorder %s11623_s26, %s12076_s16 }
  0xbb   : > { %p11627_p1 = pneg %p11626_p9  ;;  %p11631_p6 = por %p11630_p10, %p11629_p0 }
  0xbd   : > { %p11633_p4 = por %p11632_p5, %p11631_p6 }
  0xbf   : > { %p11634_p3 = pnand %p11633_p4, %p11627_p1 }
  0xc1   : > { %11637 = shalt.err (!%p11634_p3)
}
  0xc2   : > { %s11638_s3 = scalar_lea.vmem %s336_s12, 64  ;;  %s11772_s5 = smov [#allocation10]  }
  0xc3   : > { %p11639_p7 = scmp.ne.s32.totalorder %s336_s12, %s11638_s3  ;;  %s11643_s8 = sshll.u32 %s11772_s5, 4  ;;  %s11644_s8 = int_to_ptr.vmem [resolvable:$false] %s11643_s8 }
  0xc4   : > { %s11645_s20 = scalar_lea.vmem %s11644_s8, 128  ;;  %p11646_p2 = scmp.lt.s32.totalorder %s336_s12, %s11644_s8 }
  0xc5   : > { %p11641_p11 = pnand %p11639_p7, %p13430_p13  ;;  %p11647_p8 = scmp.lt.s32.totalorder %s11645_s20, %s11638_s3 }
  0xc7   : > { %p11642_p12 = pneg %p11641_p11  ;;  %p11648_p9 = por %p11647_p8, %p11646_p2 }
  0xc9   : > { %p11649_p0 = pnand %p11648_p9, %p11642_p12 }
  0xcb   : > { %11652 = shalt.err (!%p11649_p0)
}
  0xcc   : > { %p13431_p10 = scmp.ne.s32.totalorder %s13413_s18, 0  ;;  %s13432_s30 = scalar_lea.sflag [#allocation9], %s11853_s9 }
  0xcd   : > { %s8642_s26 = sshll.u32 %s11761_s27, 4  ;;  %s366_s13 = scalar_lea.vmem [#allocation13], %s11856_s10 }
  0xce   : > { %9855 = dma.hbm_to_vmem [thread:$0]  (!%p13431_p10), %s12076_s16, 64, %s336_s12, %s13432_s30  }
  0xcf   : > { %s373_s17 = sshll.u32 %s366_s13, 4  ;;  %s371_s19 = scalar_lea.hbm %s13387_s6, %s8642_s26  ;;  %s374_s17 = int_to_ptr.vmem [resolvable:$true] %s373_s17 }
  0xd0   : > { %s11653_s3 = scalar_lea.hbm %s371_s19, 16  ;;  %s11658_s20 = scalar_lea.hbm %s13387_s6, 32 }
  0xd1   : > { %p11654_p1 = scmp.ne.s32.totalorder %s371_s19, %s11653_s3  ;;  %p11659_p4 = scmp.lt.u32.totalorder %s371_s19, %s13387_s6 }
  0xd2   : > { %p11660_p3 = scmp.lt.u32.totalorder %s11658_s20, %s11653_s3  ;;  %p11662_p11 = scmp.lt.u32.totalorder %s11653_s3, %s371_s19 }
  0xd3   : > { %p11656_p6 = pnand %p11654_p1, %p13430_p13 }
  0xd4   : > { %p11661_p7 = por %p11660_p3, %p11659_p4 }
  0xd5   : > { %p11657_p5 = pneg %p11656_p6 }
  0xd6   : > { %p11663_p12 = por %p11662_p11, %p11661_p7 }
  0xd8   : > { %p11664_p2 = pnand %p11663_p12, %p11657_p5 }
  0xda   : > { %11667 = shalt.err (!%p11664_p2)
}
  0xdb   : > { %s11668_s10 = scalar_lea.vmem %s374_s17, 16  ;;  %s11773_s16 = smov [#allocation13]  }
  0xdc   : > { %p11669_p8 = scmp.ne.s32.totalorder %s374_s17, %s11668_s10  ;;  %s11673_s12 = sshll.u32 %s11773_s16, 4  ;;  %s11674_s12 = int_to_ptr.vmem [resolvable:$false] %s11673_s12 }
  0xdd   : > { %s11675_s30 = scalar_lea.vmem %s11674_s12, 32  ;;  %p11676_p1 = scmp.lt.s32.totalorder %s374_s17, %s11674_s12 }
  0xde   : > { %p11671_p9 = pnand %p11669_p8, %p13430_p13  ;;  %p11677_p6 = scmp.lt.s32.totalorder %s11675_s30, %s11668_s10 }
  0xe0   : > { %p11672_p0 = pneg %p11671_p9  ;;  %p11678_p10 = por %p11677_p6, %p11676_p1 }
  0xe2   : > { %p11679_p3 = pnand %p11678_p10, %p11672_p0 }
  0xe4   : > { %11682 = shalt.err (!%p11679_p3)
}
  0xe5   : > { %p13433_p4 = scmp.ne.s32.totalorder %s13413_s18, 0  ;;  %s13434_s0 = scalar_lea.sflag [#allocation12], %s11853_s9 }
  0xe6   : > { %p13435_p5 = scmp.ne.s32.totalorder %s13421_s1, 0 }
  0xe7   : > { %9861 = dma.hbm_to_vmem [thread:$0]  (!%p13433_p4), %s371_s19, 16, %s374_s17, %s13434_s0  }
  0xe8   : > { %382 = sbr.rel (%p13435_p5) target bundleno = 1890 (0x762), region = 48  ;;  %p13436_p13 = scmp.eq.s32.totalorder (!%p13435_p5), %s11980_s29, 0 }
  0xef   : > { %11728 = dma.done.wait (%p13436_p13), [#allocation3], 2048   ;;  %p13437_p7 = pmov %p13436_p13 }
  0xf0   : > { %s388_s2 = sand.u32 1, %s11980_s29   ;;  %s12126_s21 = sand.u32 1, %s11753_s25  }
  0xf1   : > { %11730 = vsyncadd (%p13437_p7), [#allocation3], 4294965248  ;;  %s8645_s18 = sshll.u32 %s12126_s21, 12  ;;  %s389_s26 = scalar_lea.sflag [#allocation6], %s388_s2 }
  0xf2   : > { %s12129_s9 = scalar_lea.vmem [#allocation5], %s8645_s18  ;;  %p13438_p10 = scmp.ne.s32.totalorder %s13417_s22, 0 }
  0xf4   : > { %11732 = dma.done.wait (%p13438_p10), %s389_s26, 65600  }
  0xf5   : > { %11734 = vsyncadd (%p13438_p10), %s389_s26, 4294901696  ;;  %s8646_s1 = sshll.u32 %s12126_s21, 2  ;;  %s407_s17 = scalar_lea.sflag [#allocation9], %s388_s2 }
  0xf6   : > { %s12136_s13 = scalar_lea.vmem [#allocation7], %s8646_s1  ;;  %s12138_s23 = scalar_lea.vmem [#allocation8], %s8645_s18 }
  0xf7   : > { %11736 = dma.done.wait (%p13438_p10), %s407_s17, 65600  }
  0xf8   : > { %11738 = vsyncadd (%p13438_p10), %s407_s17, 4294901696  ;;  %s8649_s14 = sshll.u32 %s12126_s21, 8  ;;  %s12145_s19 = scalar_lea.vmem [#allocation10], %s8646_s1 }
  0xf9   : > { %s425_s3 = scalar_lea.sflag [#allocation12], %s388_s2  ;;  %s12147_s5 = scalar_lea.vmem [#allocation11], %s8649_s14 }
  0xfa   : > { %11740 = dma.done.wait (%p13438_p10), %s425_s3, 4112  }
  0xfb   : > { %11742 = vsyncadd (%p13438_p10), %s425_s3, 4294963184  ;;  %v9907_v0 = vld [vmem:[%s12129_s9 + $0x4] ss:$16 sps:$4 sm:$0xff]   ;;  %v9909_v1 = vld [vmem:[%s12129_s9 + $0xc] ss:$16 sps:$4 sm:$0xff]   ;;  %s8650_s22 = sshll.u32 %s12126_s21, 1 }
  0xfc   : > { %3618 = vmatprep.subr.bf16.mxu0 %v9907_v0  ;;  %v9911_v2 = vld [vmem:[%s12129_s9] ss:$16 sps:$4 sm:$0xff]   ;;  %v9912_v3 = vld [vmem:[%s12129_s9 + $0x8] ss:$16 sps:$4 sm:$0xff]   ;;  %3946 = vmatprep.subr.bf16.mxu1 %v9909_v1  ;;  %v9913_v4 = vld [vmem:[%s12129_s9 + $0x24] ss:$16 sps:$4 sm:$0xff]  }
  0xfd   : > { %3619 = vmatpush1.bf16.msra.mxu0 %v9911_v2  ;;  %3947 = vmatpush1.bf16.msra.mxu1 %v9912_v3  ;;  %v9915_v5 = vld [vmem:[%s12129_s9 + $0x2c] ss:$16 sps:$4 sm:$0xff]   ;;  %v9917_v6 = vld [vmem:[%s12129_s9 + $0x20] ss:$16 sps:$4 sm:$0xff]   ;;  %v9918_v7 = vld [vmem:[%s12129_s9 + $0x28] ss:$16 sps:$4 sm:$0xff]  }
  0xfe   : > { %3620 = vmatprep.subr.bf16.mxu0 %v9913_v4  ;;  %3948 = vmatprep.subr.bf16.mxu1 %v9915_v5  ;;  %v9919_v8 = vld [vmem:[%s12129_s9 + $0x44] ss:$16 sps:$4 sm:$0xff]   ;;  %v9921_v9 = vld [vmem:[%s12129_s9 + $0x4c] ss:$16 sps:$4 sm:$0xff]   ;;  %v9923_v10 = vld [vmem:[%s12129_s9 + $0x40] ss:$16 sps:$4 sm:$0xff]  }
  0xff   : > { %v9924_v11 = vld [vmem:[%s12129_s9 + $0x48] ss:$16 sps:$4 sm:$0xff]   ;;  %v9925_v12 = vld [vmem:[%s12129_s9 + $0x64] ss:$16 sps:$4 sm:$0xff]   ;;  %v9927_v13 = vld [vmem:[%s12129_s9 + $0x6c] ss:$16 sps:$4 sm:$0xff]  }
 0x100   : > { %v9929_v14 = vld [vmem:[%s12129_s9 + $0x60] ss:$16 sps:$4 sm:$0xff]   ;;  %v9930_v15 = vld [vmem:[%s12129_s9 + $0x68] ss:$16 sps:$4 sm:$0xff]   ;;  %v9931_v16 = vld [vmem:[%s12129_s9 + $0x84] ss:$16 sps:$4 sm:$0xff]  }
 0x101   : > { %3621 = vmatpush1.bf16.msra.mxu0 %v9917_v6  ;;  %3949 = vmatpush1.bf16.msra.mxu1 %v9918_v7  ;;  %v9933_v17 = vld [vmem:[%s12129_s9 + $0x8c] ss:$16 sps:$4 sm:$0xff]   ;;  %v9935_v18 = vld [vmem:[%s12129_s9 + $0x80] ss:$16 sps:$4 sm:$0xff]   ;;  %v9936_v19 = vld [vmem:[%s12129_s9 + $0x88] ss:$16 sps:$4 sm:$0xff]  }
 0x102   : > { %3622 = vmatprep.subr.bf16.mxu0 %v9919_v8  ;;  %3950 = vmatprep.subr.bf16.mxu1 %v9921_v9  ;;  %v9937_v20 = vld [vmem:[%s12129_s9 + $0xa4] ss:$16 sps:$4 sm:$0xff]   ;;  %v9939_v21 = vld [vmem:[%s12129_s9 + $0xac] ss:$16 sps:$4 sm:$0xff]   ;;  %v9941_v22 = vld [vmem:[%s12129_s9 + $0xa0] ss:$16 sps:$4 sm:$0xff]  }
 0x103   : > { %v9942_v23 = vld [vmem:[%s12129_s9 + $0xa8] ss:$16 sps:$4 sm:$0xff]   ;;  %v9943_v24 = vld [vmem:[%s12129_s9 + $0xc4] ss:$16 sps:$4 sm:$0xff]   ;;  %v9945_v25 = vld [vmem:[%s12129_s9 + $0xcc] ss:$16 sps:$4 sm:$0xff]  }
 0x104   : > { %v9947_v26 = vld [vmem:[%s12129_s9 + $0xc0] ss:$16 sps:$4 sm:$0xff]   ;;  %v9948_v27 = vld [vmem:[%s12129_s9 + $0xc8] ss:$16 sps:$4 sm:$0xff]   ;;  %v9949_v28 = vld [vmem:[%s12129_s9 + $0xe4] ss:$16 sps:$4 sm:$0xff]  }
 0x105   : > { %3623 = vmatpush1.bf16.msra.mxu0 %v9923_v10  ;;  %3951 = vmatpush1.bf16.msra.mxu1 %v9924_v11  ;;  %v9951_v29 = vld [vmem:[%s12129_s9 + $0xec] ss:$16 sps:$4 sm:$0xff]   ;;  %v9953_v30 = vld [vmem:[%s12129_s9 + $0xe0] ss:$16 sps:$4 sm:$0xff]   ;;  %v9954_v31 = vld [vmem:[%s12129_s9 + $0xe8] ss:$16 sps:$4 sm:$0xff]  }
 0x106   : > { %3624 = vmatprep.subr.bf16.mxu0 %v9925_v12  ;;  %3952 = vmatprep.subr.bf16.mxu1 %v9927_v13  ;;  %v9955_v32 = vld [vmem:[%s12129_s9 + $0x104] ss:$16 sps:$4 sm:$0xff]   ;;  %v9957_v33 = vld [vmem:[%s12129_s9 + $0x10c] ss:$16 sps:$4 sm:$0xff]   ;;  %v9959_v34 = vld [vmem:[%s12129_s9 + $0x100] ss:$16 sps:$4 sm:$0xff]  }
 0x107   : > { %v9960_v35 = vld [vmem:[%s12129_s9 + $0x108] ss:$16 sps:$4 sm:$0xff]   ;;  %v9961_v36 = vld [vmem:[%s12129_s9 + $0x124] ss:$16 sps:$4 sm:$0xff]   ;;  %v9963_v37 = vld [vmem:[%s12129_s9 + $0x12c] ss:$16 sps:$4 sm:$0xff]  }
 0x108   : > { %v9965_v38 = vld [vmem:[%s12129_s9 + $0x120] ss:$16 sps:$4 sm:$0xff]   ;;  %v9966_v39 = vld [vmem:[%s12129_s9 + $0x128] ss:$16 sps:$4 sm:$0xff]   ;;  %v9967_v40 = vld [vmem:[%s12129_s9 + $0x144] ss:$16 sps:$4 sm:$0xff]  }
 0x109   : > { %3625 = vmatpush1.bf16.msra.mxu0 %v9929_v14  ;;  %3953 = vmatpush1.bf16.msra.mxu1 %v9930_v15  ;;  %v9969_v41 = vld [vmem:[%s12129_s9 + $0x14c] ss:$16 sps:$4 sm:$0xff]   ;;  %v9971_v42 = vld [vmem:[%s12129_s9 + $0x140] ss:$16 sps:$4 sm:$0xff]   ;;  %v9972_v43 = vld [vmem:[%s12129_s9 + $0x148] ss:$16 sps:$4 sm:$0xff]  }
 0x10a   : > { %3626 = vmatprep.subr.bf16.mxu0 %v9931_v16  ;;  %3954 = vmatprep.subr.bf16.mxu1 %v9933_v17  ;;  %v9973_v44 = vld [vmem:[%s12129_s9 + $0x164] ss:$16 sps:$4 sm:$0xff]   ;;  %v9975_v45 = vld [vmem:[%s12129_s9 + $0x16c] ss:$16 sps:$4 sm:$0xff]   ;;  %v9977_v47 = vld [vmem:[%s12129_s9 + $0x160] ss:$16 sps:$4 sm:$0xff]  }
 0x10b   : > { %v493_v46 = vld [vmem:[#allocation2 + $0x8] sm:$0xff]  ;;  %v9979_v50 = vld [vmem:[%s12129_s9 + $0x184] ss:$16 sps:$4 sm:$0xff]   ;;  %v9983_v52 = vld [vmem:[%s12129_s9 + $0x180] ss:$16 sps:$4 sm:$0xff]   ;;  %s436_s8 = scalar_lea.vmem [#allocation13], %s12126_s21 }
 0x10c   : > { %v509_v48 = vpack.c.bf16 %v493_v46, %v493_v46  ;;  %v9978_v49 = vld [vmem:[%s12129_s9 + $0x168] ss:$16 sps:$4 sm:$0xff]   ;;  %v9981_v51 = vld [vmem:[%s12129_s9 + $0x18c] ss:$16 sps:$4 sm:$0xff]   ;;  %v9985_v54 = vld [vmem:[%s12129_s9 + $0x1a4] ss:$16 sps:$4 sm:$0xff]  }
 0x10d   : > { %3627 = vmatpush1.bf16.msra.mxu0 %v9935_v18  ;;  %3955 = vmatpush1.bf16.msra.mxu1 %v9936_v19  ;;  %v9984_v53 = vld [vmem:[%s12129_s9 + $0x188] ss:$16 sps:$4 sm:$0xff]   ;;  %v9987_v55 = vld [vmem:[%s12129_s9 + $0x1ac] ss:$16 sps:$4 sm:$0xff]   ;;  %v9989_v56 = vld [vmem:[%s12129_s9 + $0x1a0] ss:$16 sps:$4 sm:$0xff]  }
 0x10e   : > { %3628 = vmatprep.subr.bf16.mxu0 %v9937_v20  ;;  %3956 = vmatprep.subr.bf16.mxu1 %v9939_v21  ;;  %v9990_v57 = vld [vmem:[%s12129_s9 + $0x1a8] ss:$16 sps:$4 sm:$0xff]   ;;  %v9991_v58 = vld [vmem:[%s12129_s9 + $0x1c4] ss:$16 sps:$4 sm:$0xff]   ;;  %v9993_v59 = vld [vmem:[%s12129_s9 + $0x1cc] ss:$16 sps:$4 sm:$0xff]  }
 0x10f   : > { %3650 = vmatprep.mubr.bf16.mxu0 %v509_v48  ;;  %3978 = vmatprep.mubr.bf16.mxu1 %v509_v48  ;;  %v9995_v60 = vld [vmem:[%s12129_s9 + $0x1c0] ss:$16 sps:$4 sm:$0xff]   ;;  %v9996_v61 = vld [vmem:[%s12129_s9 + $0x1c8] ss:$16 sps:$4 sm:$0xff]   ;;  %v9997_v62 = vld [vmem:[%s12129_s9 + $0x1e4] ss:$16 sps:$4 sm:$0xff]  }
 0x110   : > { %v9999_v63 = vld [vmem:[%s12129_s9 + $0x1ec] ss:$16 sps:$4 sm:$0xff]   ;;  %v10001_v0 = vld [vmem:[%s12129_s9 + $0x1e0] ss:$16 sps:$4 sm:$0xff]   ;;  %v10002_v1 = vld [vmem:[%s12129_s9 + $0x1e8] ss:$16 sps:$4 sm:$0xff]  }
 0x111   : > { %3629 = vmatpush1.bf16.msra.mxu0 %v9941_v22  ;;  %3957 = vmatpush1.bf16.msra.mxu1 %v9942_v23  ;;  %v492_v2 = vld [vmem:[#allocation2] sm:$0xff]  ;;  %v10008_v4 = vld [vmem:[%s12129_s9 + $0x20c] ss:$16 sps:$4 sm:$0xff]   ;;  %v10006_v7 = vld [vmem:[%s12129_s9 + $0x208] ss:$16 sps:$4 sm:$0xff]   ;;  %s9709_s20 = sshll.u32 %s11980_s29, 5 }
 0x112   : > { %3630 = vmatprep.subr.bf16.mxu0 %v9943_v24  ;;  %3958 = vmatprep.subr.bf16.mxu1 %v9945_v25  ;;  %v10005_v3 = vld [vmem:[%s12129_s9 + $0x204] ss:$16 sps:$4 sm:$0xff]   ;;  %v508_v5 = vpack.c.bf16 %v492_v2, %v492_v2  ;;  %v10003_v6 = vld [vmem:[%s12129_s9 + $0x200] ss:$16 sps:$4 sm:$0xff]   ;;  %v10014_v9 = vld [vmem:[%s12129_s9 + $0x22c] ss:$16 sps:$4 sm:$0xff]   ;;  %s13337_s0 = scalar_lea.hbm %s13388_s7, %s9709_s20 }
 0x113   : > { %v10011_v8 = vld [vmem:[%s12129_s9 + $0x224] ss:$16 sps:$4 sm:$0xff]   ;;  %v10009_v10 = vld [vmem:[%s12129_s9 + $0x220] ss:$16 sps:$4 sm:$0xff]   ;;  %v10012_v11 = vld [vmem:[%s12129_s9 + $0x228] ss:$16 sps:$4 sm:$0xff]  }
 0x114   : > { %v10017_v12 = vld [vmem:[%s12129_s9 + $0x244] ss:$16 sps:$4 sm:$0xff]   ;;  %v10020_v13 = vld [vmem:[%s12129_s9 + $0x24c] ss:$16 sps:$4 sm:$0xff]   ;;  %v10015_v14 = vld [vmem:[%s12129_s9 + $0x240] ss:$16 sps:$4 sm:$0xff]  }
 0x115   : > { %3631 = vmatpush1.bf16.msra.mxu0 %v9947_v26  ;;  %3959 = vmatpush1.bf16.msra.mxu1 %v9948_v27  ;;  %v10018_v15 = vld [vmem:[%s12129_s9 + $0x248] ss:$16 sps:$4 sm:$0xff]   ;;  %v10023_v16 = vld [vmem:[%s12129_s9 + $0x264] ss:$16 sps:$4 sm:$0xff]   ;;  %v10026_v17 = vld [vmem:[%s12129_s9 + $0x26c] ss:$16 sps:$4 sm:$0xff]  }
 0x116   : > { %3632 = vmatprep.subr.bf16.mxu0 %v9949_v28  ;;  %3960 = vmatprep.subr.bf16.mxu1 %v9951_v29  ;;  %v10021_v18 = vld [vmem:[%s12129_s9 + $0x260] ss:$16 sps:$4 sm:$0xff]   ;;  %v10024_v19 = vld [vmem:[%s12129_s9 + $0x268] ss:$16 sps:$4 sm:$0xff]   ;;  %v10029_v20 = vld [vmem:[%s12129_s9 + $0x284] ss:$16 sps:$4 sm:$0xff]  }
 0x117   : > { %v10032_v21 = vld [vmem:[%s12129_s9 + $0x28c] ss:$16 sps:$4 sm:$0xff]   ;;  %v10027_v22 = vld [vmem:[%s12129_s9 + $0x280] ss:$16 sps:$4 sm:$0xff]   ;;  %v10030_v23 = vld [vmem:[%s12129_s9 + $0x288] ss:$16 sps:$4 sm:$0xff]  }
 0x118   : > { %v10035_v24 = vld [vmem:[%s12129_s9 + $0x2a4] ss:$16 sps:$4 sm:$0xff]   ;;  %v10038_v25 = vld [vmem:[%s12129_s9 + $0x2ac] ss:$16 sps:$4 sm:$0xff]   ;;  %v10033_v26 = vld [vmem:[%s12129_s9 + $0x2a0] ss:$16 sps:$4 sm:$0xff]  }
 0x119   : > { %3633 = vmatpush1.bf16.msra.mxu0 %v9953_v30  ;;  %3961 = vmatpush1.bf16.msra.mxu1 %v9954_v31  ;;  %v10036_v27 = vld [vmem:[%s12129_s9 + $0x2a8] ss:$16 sps:$4 sm:$0xff]   ;;  %v10041_v28 = vld [vmem:[%s12129_s9 + $0x2c4] ss:$16 sps:$4 sm:$0xff]   ;;  %v10044_v29 = vld [vmem:[%s12129_s9 + $0x2cc] ss:$16 sps:$4 sm:$0xff]  }
 0x11a   : > { %3634 = vmatprep.subr.bf16.mxu0 %v9955_v32  ;;  %3962 = vmatprep.subr.bf16.mxu1 %v9957_v33  ;;  %v495_v30 = vld [vmem:[#allocation2 + $0x18] sm:$0xff]  ;;  %v10039_v31 = vld [vmem:[%s12129_s9 + $0x2c0] ss:$16 sps:$4 sm:$0xff]   ;;  %v10065_v46 = vld [vmem:[%s12129_s9 + $0x344] ss:$16 sps:$4 sm:$0xff]   ;;  %s490_s10 = scalar_lea.vmem [#allocation14], %s8650_s22 }
 0x11b   : > { %v511_v32 = vpack.c.bf16 %v495_v30, %v495_v30  ;;  %v10042_v33 = vld [vmem:[%s12129_s9 + $0x2c8] ss:$16 sps:$4 sm:$0xff]   ;;  %v10063_v48 = vld [vmem:[%s12129_s9 + $0x340] ss:$16 sps:$4 sm:$0xff]   ;;  %v10095_v2 = vld [vmem:[%s12129_s9 + $0x3e4] ss:$16 sps:$4 sm:$0xff]  }
 0x11c   : > { %v10131_v30 = vld [vmem:[%s12129_s9 + $0x4a4] ss:$16 sps:$4 sm:$0xff]   ;;  %s8438_s16 = sshll.u32 %s490_s10, 4  ;;  %s8425_s2 = scalar_lea.sflag [#allocation4], %s12126_s21  ;;  %s13339_s16 = int_to_ptr.vmem [resolvable:$true] %s8438_s16 }
 0x11d   : > { %3635 = vmatpush1.bf16.msra.mxu0 %v9959_v34  ;;  %3963 = vmatpush1.bf16.msra.mxu1 %v9960_v35  ;;  %v10047_v34 = vld [vmem:[%s12129_s9 + $0x2e4] ss:$16 sps:$4 sm:$0xff]   ;;  %v10050_v35 = vld [vmem:[%s12129_s9 + $0x2ec] ss:$16 sps:$4 sm:$0xff]   ;;  %s11683_s29 = scalar_lea.vmem %s13339_s16, 32  ;;  %p13439_p12 = scmp.ne.s32.totalorder %s13419_s11, 0 }
 0x11e   : > { %3636 = vmatprep.subr.bf16.mxu0 %v9961_v36  ;;  %3964 = vmatprep.subr.bf16.mxu1 %v9963_v37  ;;  %v10045_v36 = vld [vmem:[%s12129_s9 + $0x2e0] ss:$16 sps:$4 sm:$0xff]   ;;  %v10048_v37 = vld [vmem:[%s12129_s9 + $0x2e8] ss:$16 sps:$4 sm:$0xff]   ;;  %p11684_p11 = scmp.ne.s32.totalorder %s13339_s16, %s11683_s29  ;;  %s11774_s18 = smov [#allocation14]  }
 0x11f   : > { %s11687_s26 = sshll.u32 %s11774_s18, 4  ;;  %s11688_s26 = int_to_ptr.vmem [resolvable:$false] %s11687_s26 }
 0x120   : > { %p11685_p2 = pnand %p11684_p11, %p13439_p12  ;;  %p11690_p9 = scmp.lt.s32.totalorder %s13339_s16, %s11688_s26 }
 0x121   : > { %3637 = vmatpush1.bf16.msra.mxu0 %v9965_v38  ;;  %3965 = vmatpush1.bf16.msra.mxu1 %v9966_v39  ;;  %v10053_v38 = vld [vmem:[%s12129_s9 + $0x304] ss:$16 sps:$4 sm:$0xff]   ;;  %v10056_v39 = vld [vmem:[%s12129_s9 + $0x30c] ss:$16 sps:$4 sm:$0xff]  }
 0x122   : > { %3638 = vmatprep.subr.bf16.mxu0 %v9967_v40  ;;  %3966 = vmatprep.subr.bf16.mxu1 %v9969_v41  ;;  %v10051_v40 = vld [vmem:[%s12129_s9 + $0x300] ss:$16 sps:$4 sm:$0xff]   ;;  %v10054_v41 = vld [vmem:[%s12129_s9 + $0x308] ss:$16 sps:$4 sm:$0xff]   ;;  %p11686_p8 = pneg %p11685_p2 }
 0x125   : > { %3639 = vmatpush1.bf16.msra.mxu0 %v9971_v42  ;;  %3967 = vmatpush1.bf16.msra.mxu1 %v9972_v43  ;;  %v10059_v42 = vld [vmem:[%s12129_s9 + $0x324] ss:$16 sps:$4 sm:$0xff]   ;;  %v10062_v43 = vld [vmem:[%s12129_s9 + $0x32c] ss:$16 sps:$4 sm:$0xff]  }
 0x126   : > { %3640 = vmatprep.subr.bf16.mxu0 %v9973_v44  ;;  %3968 = vmatprep.subr.bf16.mxu1 %v9975_v45  ;;  %v10057_v44 = vld [vmem:[%s12129_s9 + $0x320] ss:$16 sps:$4 sm:$0xff]   ;;  %v10060_v45 = vld [vmem:[%s12129_s9 + $0x328] ss:$16 sps:$4 sm:$0xff]  }
 0x129   : > { %3641 = vmatpush1.bf16.msra.mxu0 %v9977_v47  ;;  %3969 = vmatpush1.bf16.msra.mxu1 %v9978_v49  ;;  %v10068_v47 = vld [vmem:[%s12129_s9 + $0x34c] ss:$16 sps:$4 sm:$0xff]   ;;  %v10066_v49 = vld [vmem:[%s12129_s9 + $0x348] ss:$16 sps:$4 sm:$0xff]  }
 0x12a   : > { %3642 = vmatprep.subr.bf16.mxu0 %v9979_v50  ;;  %3970 = vmatprep.subr.bf16.mxu1 %v9981_v51  ;;  %v10071_v50 = vld [vmem:[%s12129_s9 + $0x364] ss:$16 sps:$4 sm:$0xff]   ;;  %v10074_v51 = vld [vmem:[%s12129_s9 + $0x36c] ss:$16 sps:$4 sm:$0xff]  }
 0x12d   : > { %3643 = vmatpush1.bf16.msra.mxu0 %v9983_v52  ;;  %3971 = vmatpush1.bf16.msra.mxu1 %v9984_v53  ;;  %v10069_v52 = vld [vmem:[%s12129_s9 + $0x360] ss:$16 sps:$4 sm:$0xff]   ;;  %v10072_v53 = vld [vmem:[%s12129_s9 + $0x368] ss:$16 sps:$4 sm:$0xff]  }
 0x12e   : > { %3644 = vmatprep.subr.bf16.mxu0 %v9985_v54  ;;  %3972 = vmatprep.subr.bf16.mxu1 %v9987_v55  ;;  %v10077_v54 = vld [vmem:[%s12129_s9 + $0x384] ss:$16 sps:$4 sm:$0xff]   ;;  %v10080_v55 = vld [vmem:[%s12129_s9 + $0x38c] ss:$16 sps:$4 sm:$0xff]  }
 0x131   : > { %3645 = vmatpush1.bf16.msra.mxu0 %v9989_v56  ;;  %3973 = vmatpush1.bf16.msra.mxu1 %v9990_v57  ;;  %v10075_v56 = vld [vmem:[%s12129_s9 + $0x380] ss:$16 sps:$4 sm:$0xff]   ;;  %v10078_v57 = vld [vmem:[%s12129_s9 + $0x388] ss:$16 sps:$4 sm:$0xff]  }
 0x132   : > { %3646 = vmatprep.subr.bf16.mxu0 %v9991_v58  ;;  %3974 = vmatprep.subr.bf16.mxu1 %v9993_v59  ;;  %v10083_v58 = vld [vmem:[%s12129_s9 + $0x3a4] ss:$16 sps:$4 sm:$0xff]   ;;  %v10086_v59 = vld [vmem:[%s12129_s9 + $0x3ac] ss:$16 sps:$4 sm:$0xff]  }
 0x135   : > { %3647 = vmatpush1.bf16.msra.mxu0 %v9995_v60  ;;  %3975 = vmatpush1.bf16.msra.mxu1 %v9996_v61  ;;  %v10081_v60 = vld [vmem:[%s12129_s9 + $0x3a0] ss:$16 sps:$4 sm:$0xff]   ;;  %v10084_v61 = vld [vmem:[%s12129_s9 + $0x3a8] ss:$16 sps:$4 sm:$0xff]  }
 0x136   : > { %3648 = vmatprep.subr.bf16.mxu0 %v9997_v62  ;;  %3976 = vmatprep.subr.bf16.mxu1 %v9999_v63  ;;  %v10089_v62 = vld [vmem:[%s12129_s9 + $0x3c4] ss:$16 sps:$4 sm:$0xff]   ;;  %v10092_v63 = vld [vmem:[%s12129_s9 + $0x3cc] ss:$16 sps:$4 sm:$0xff]  }
 0x139   : > { %3649 = vmatpush1.bf16.msra.mxu0 %v10001_v0  ;;  %3977 = vmatpush1.bf16.msra.mxu1 %v10002_v1  ;;  %v10087_v0 = vld [vmem:[%s12129_s9 + $0x3c0] ss:$16 sps:$4 sm:$0xff]   ;;  %v10090_v1 = vld [vmem:[%s12129_s9 + $0x3c8] ss:$16 sps:$4 sm:$0xff]  }
 0x13a   : > { %3659 = vmatprep.subr.bf16.mxu0 %v10005_v3  ;;  %3987 = vmatprep.subr.bf16.mxu1 %v10008_v4  ;;  %v10098_v3 = vld [vmem:[%s12129_s9 + $0x3ec] ss:$16 sps:$4 sm:$0xff]   ;;  %v10093_v4 = vld [vmem:[%s12129_s9 + $0x3e0] ss:$16 sps:$4 sm:$0xff]  }
 0x13c   : > { %3651 = vmatmul.mubr.bf16.vlgmr.msra.gmra.mrb[0].mxu0 %v508_v5  ;;  %3979 = vmatmul.mubr.bf16.vlgmr.msra.gmra.mrb[0].mxu1 %v508_v5  ;;  %v10096_v5 = vld [vmem:[%s12129_s9 + $0x3e8] ss:$16 sps:$4 sm:$0xff]  }
 0x13d   : > { %3660 = vmatpush1.bf16.msra.mxu0 %v10003_v6  ;;  %3988 = vmatpush1.bf16.msra.mxu1 %v10006_v7  ;;  %v10101_v6 = vld [vmem:[%s12129_s9 + $0x404] ss:$16 sps:$4 sm:$0xff]  }
 0x13e   : > { %3661 = vmatprep.subr.bf16.mxu0 %v10011_v8  ;;  %3989 = vmatprep.subr.bf16.mxu1 %v10014_v9  ;;  %v494_v7 = vld [vmem:[#allocation2 + $0x10] sm:$0xff]  ;;  %v10104_v8 = vld [vmem:[%s12129_s9 + $0x40c] ss:$16 sps:$4 sm:$0xff]  }
 0x13f   : > { %3691 = vmatprep.mubr.bf16.mxu0 %v511_v32  ;;  %4019 = vmatprep.mubr.bf16.mxu1 %v511_v32  ;;  %v10099_v9 = vld [vmem:[%s12129_s9 + $0x400] ss:$16 sps:$4 sm:$0xff]  }
 0x140   : > { %v10129_v32 = vld [vmem:[%s12129_s9 + $0x4a0] ss:$16 sps:$4 sm:$0xff]  }
 0x141   : > { %3662 = vmatpush1.bf16.msra.mxu0 %v10009_v10  ;;  %3990 = vmatpush1.bf16.msra.mxu1 %v10012_v11  ;;  %v10102_v10 = vld [vmem:[%s12129_s9 + $0x408] ss:$16 sps:$4 sm:$0xff]   ;;  %v510_v11 = vpack.c.bf16 %v494_v7, %v494_v7  ;;  %v10194_v7 = vld [vmem:[%s12129_s9 + $0x5ec] ss:$16 sps:$4 sm:$0xff]  }
 0x142   : > { %3663 = vmatprep.subr.bf16.mxu0 %v10017_v12  ;;  %3991 = vmatprep.subr.bf16.mxu1 %v10020_v13  ;;  %v10107_v12 = vld [vmem:[%s12129_s9 + $0x424] ss:$16 sps:$4 sm:$0xff]   ;;  %v10110_v13 = vld [vmem:[%s12129_s9 + $0x42c] ss:$16 sps:$4 sm:$0xff]  }
 0x145   : > { %3664 = vmatpush1.bf16.msra.mxu0 %v10015_v14  ;;  %3992 = vmatpush1.bf16.msra.mxu1 %v10018_v15  ;;  %v497_v14 = vld [vmem:[#allocation2 + $0x28] sm:$0xff] }
 0x146   : > { %3665 = vmatprep.subr.bf16.mxu0 %v10023_v16  ;;  %3993 = vmatprep.subr.bf16.mxu1 %v10026_v17  ;;  %v513_v15 = vpack.c.bf16 %v497_v14, %v497_v14  ;;  %v10105_v16 = vld [vmem:[%s12129_s9 + $0x420] ss:$16 sps:$4 sm:$0xff]   ;;  %v10108_v17 = vld [vmem:[%s12129_s9 + $0x428] ss:$16 sps:$4 sm:$0xff]  }
 0x147   : > { %v10198_v14 = vld [vmem:[%s12129_s9 + $0x608] ss:$16 sps:$4 sm:$0xff]  }
 0x149   : > { %3666 = vmatpush1.bf16.msra.mxu0 %v10021_v18  ;;  %3994 = vmatpush1.bf16.msra.mxu1 %v10024_v19  ;;  %v10113_v18 = vld [vmem:[%s12129_s9 + $0x444] ss:$16 sps:$4 sm:$0xff]   ;;  %v10116_v19 = vld [vmem:[%s12129_s9 + $0x44c] ss:$16 sps:$4 sm:$0xff]  }
 0x14a   : > { %3667 = vmatprep.subr.bf16.mxu0 %v10029_v20  ;;  %3995 = vmatprep.subr.bf16.mxu1 %v10032_v21  ;;  %v10111_v20 = vld [vmem:[%s12129_s9 + $0x440] ss:$16 sps:$4 sm:$0xff]   ;;  %v10114_v21 = vld [vmem:[%s12129_s9 + $0x448] ss:$16 sps:$4 sm:$0xff]  }
 0x14d   : > { %3668 = vmatpush1.bf16.msra.mxu0 %v10027_v22  ;;  %3996 = vmatpush1.bf16.msra.mxu1 %v10030_v23  ;;  %v10119_v22 = vld [vmem:[%s12129_s9 + $0x464] ss:$16 sps:$4 sm:$0xff]   ;;  %v10122_v23 = vld [vmem:[%s12129_s9 + $0x46c] ss:$16 sps:$4 sm:$0xff]  }
 0x14e   : > { %3669 = vmatprep.subr.bf16.mxu0 %v10035_v24  ;;  %3997 = vmatprep.subr.bf16.mxu1 %v10038_v25  ;;  %v10117_v24 = vld [vmem:[%s12129_s9 + $0x460] ss:$16 sps:$4 sm:$0xff]   ;;  %v10120_v25 = vld [vmem:[%s12129_s9 + $0x468] ss:$16 sps:$4 sm:$0xff]  }
 0x151   : > { %3670 = vmatpush1.bf16.msra.mxu0 %v10033_v26  ;;  %3998 = vmatpush1.bf16.msra.mxu1 %v10036_v27  ;;  %v10125_v26 = vld [vmem:[%s12129_s9 + $0x484] ss:$16 sps:$4 sm:$0xff]   ;;  %v10128_v27 = vld [vmem:[%s12129_s9 + $0x48c] ss:$16 sps:$4 sm:$0xff]  }
 0x152   : > { %3671 = vmatprep.subr.bf16.mxu0 %v10041_v28  ;;  %3999 = vmatprep.subr.bf16.mxu1 %v10044_v29  ;;  %v10123_v28 = vld [vmem:[%s12129_s9 + $0x480] ss:$16 sps:$4 sm:$0xff]   ;;  %v10126_v29 = vld [vmem:[%s12129_s9 + $0x488] ss:$16 sps:$4 sm:$0xff]  }
 0x155   : > { %3672 = vmatpush1.bf16.msra.mxu0 %v10039_v31  ;;  %4000 = vmatpush1.bf16.msra.mxu1 %v10042_v33  ;;  %v10134_v31 = vld [vmem:[%s12129_s9 + $0x4ac] ss:$16 sps:$4 sm:$0xff]   ;;  %v10132_v33 = vld [vmem:[%s12129_s9 + $0x4a8] ss:$16 sps:$4 sm:$0xff]  }
 0x156   : > { %3673 = vmatprep.subr.bf16.mxu0 %v10047_v34  ;;  %4001 = vmatprep.subr.bf16.mxu1 %v10050_v35  ;;  %v10137_v34 = vld [vmem:[%s12129_s9 + $0x4c4] ss:$16 sps:$4 sm:$0xff]   ;;  %v10140_v35 = vld [vmem:[%s12129_s9 + $0x4cc] ss:$16 sps:$4 sm:$0xff]  }
 0x159   : > { %3674 = vmatpush1.bf16.msra.mxu0 %v10045_v36  ;;  %4002 = vmatpush1.bf16.msra.mxu1 %v10048_v37  ;;  %v10135_v36 = vld [vmem:[%s12129_s9 + $0x4c0] ss:$16 sps:$4 sm:$0xff]   ;;  %v10138_v37 = vld [vmem:[%s12129_s9 + $0x4c8] ss:$16 sps:$4 sm:$0xff]  }
 0x15a   : > { %3675 = vmatprep.subr.bf16.mxu0 %v10053_v38  ;;  %4003 = vmatprep.subr.bf16.mxu1 %v10056_v39  ;;  %v10143_v38 = vld [vmem:[%s12129_s9 + $0x4e4] ss:$16 sps:$4 sm:$0xff]   ;;  %v10146_v39 = vld [vmem:[%s12129_s9 + $0x4ec] ss:$16 sps:$4 sm:$0xff]  }
 0x15d   : > { %3676 = vmatpush1.bf16.msra.mxu0 %v10051_v40  ;;  %4004 = vmatpush1.bf16.msra.mxu1 %v10054_v41  ;;  %v10141_v40 = vld [vmem:[%s12129_s9 + $0x4e0] ss:$16 sps:$4 sm:$0xff]   ;;  %v10144_v41 = vld [vmem:[%s12129_s9 + $0x4e8] ss:$16 sps:$4 sm:$0xff]  }
 0x15e   : > { %3677 = vmatprep.subr.bf16.mxu0 %v10059_v42  ;;  %4005 = vmatprep.subr.bf16.mxu1 %v10062_v43  ;;  %v10149_v42 = vld [vmem:[%s12129_s9 + $0x504] ss:$16 sps:$4 sm:$0xff]   ;;  %v10152_v43 = vld [vmem:[%s12129_s9 + $0x50c] ss:$16 sps:$4 sm:$0xff]  }
 0x161   : > { %3678 = vmatpush1.bf16.msra.mxu0 %v10057_v44  ;;  %4006 = vmatpush1.bf16.msra.mxu1 %v10060_v45  ;;  %v10147_v44 = vld [vmem:[%s12129_s9 + $0x500] ss:$16 sps:$4 sm:$0xff]   ;;  %v10150_v45 = vld [vmem:[%s12129_s9 + $0x508] ss:$16 sps:$4 sm:$0xff]  }
 0x162   : > { %3679 = vmatprep.subr.bf16.mxu0 %v10065_v46  ;;  %4007 = vmatprep.subr.bf16.mxu1 %v10068_v47  ;;  %v10155_v46 = vld [vmem:[%s12129_s9 + $0x524] ss:$16 sps:$4 sm:$0xff]   ;;  %v10158_v47 = vld [vmem:[%s12129_s9 + $0x52c] ss:$16 sps:$4 sm:$0xff]  }
 0x165   : > { %3680 = vmatpush1.bf16.msra.mxu0 %v10063_v48  ;;  %4008 = vmatpush1.bf16.msra.mxu1 %v10066_v49  ;;  %v10153_v48 = vld [vmem:[%s12129_s9 + $0x520] ss:$16 sps:$4 sm:$0xff]   ;;  %v10156_v49 = vld [vmem:[%s12129_s9 + $0x528] ss:$16 sps:$4 sm:$0xff]  }
 0x166   : > { %3681 = vmatprep.subr.bf16.mxu0 %v10071_v50  ;;  %4009 = vmatprep.subr.bf16.mxu1 %v10074_v51  ;;  %v10161_v50 = vld [vmem:[%s12129_s9 + $0x544] ss:$16 sps:$4 sm:$0xff]   ;;  %v10164_v51 = vld [vmem:[%s12129_s9 + $0x54c] ss:$16 sps:$4 sm:$0xff]  }
 0x169   : > { %3682 = vmatpush1.bf16.msra.mxu0 %v10069_v52  ;;  %4010 = vmatpush1.bf16.msra.mxu1 %v10072_v53  ;;  %v10159_v52 = vld [vmem:[%s12129_s9 + $0x540] ss:$16 sps:$4 sm:$0xff]   ;;  %v10162_v53 = vld [vmem:[%s12129_s9 + $0x548] ss:$16 sps:$4 sm:$0xff]  }
 0x16a   : > { %3683 = vmatprep.subr.bf16.mxu0 %v10077_v54  ;;  %4011 = vmatprep.subr.bf16.mxu1 %v10080_v55  ;;  %v10167_v54 = vld [vmem:[%s12129_s9 + $0x564] ss:$16 sps:$4 sm:$0xff]   ;;  %v10170_v55 = vld [vmem:[%s12129_s9 + $0x56c] ss:$16 sps:$4 sm:$0xff]  }
 0x16d   : > { %3684 = vmatpush1.bf16.msra.mxu0 %v10075_v56  ;;  %4012 = vmatpush1.bf16.msra.mxu1 %v10078_v57  ;;  %v10165_v56 = vld [vmem:[%s12129_s9 + $0x560] ss:$16 sps:$4 sm:$0xff]   ;;  %v10168_v57 = vld [vmem:[%s12129_s9 + $0x568] ss:$16 sps:$4 sm:$0xff]  }
 0x16e   : > { %3685 = vmatprep.subr.bf16.mxu0 %v10083_v58  ;;  %4013 = vmatprep.subr.bf16.mxu1 %v10086_v59  ;;  %v10173_v58 = vld [vmem:[%s12129_s9 + $0x584] ss:$16 sps:$4 sm:$0xff]   ;;  %v10176_v59 = vld [vmem:[%s12129_s9 + $0x58c] ss:$16 sps:$4 sm:$0xff]  }
 0x171   : > { %3686 = vmatpush1.bf16.msra.mxu0 %v10081_v60  ;;  %4014 = vmatpush1.bf16.msra.mxu1 %v10084_v61  ;;  %v10171_v60 = vld [vmem:[%s12129_s9 + $0x580] ss:$16 sps:$4 sm:$0xff]   ;;  %v10174_v61 = vld [vmem:[%s12129_s9 + $0x588] ss:$16 sps:$4 sm:$0xff]  }
 0x172   : > { %3687 = vmatprep.subr.bf16.mxu0 %v10089_v62  ;;  %4015 = vmatprep.subr.bf16.mxu1 %v10092_v63  ;;  %v10179_v62 = vld [vmem:[%s12129_s9 + $0x5a4] ss:$16 sps:$4 sm:$0xff]   ;;  %v10182_v63 = vld [vmem:[%s12129_s9 + $0x5ac] ss:$16 sps:$4 sm:$0xff]  }
 0x175   : > { %3688 = vmatpush1.bf16.msra.mxu0 %v10087_v0  ;;  %4016 = vmatpush1.bf16.msra.mxu1 %v10090_v1  ;;  %v10177_v0 = vld [vmem:[%s12129_s9 + $0x5a0] ss:$16 sps:$4 sm:$0xff]   ;;  %v10180_v1 = vld [vmem:[%s12129_s9 + $0x5a8] ss:$16 sps:$4 sm:$0xff]  }
 0x176   : > { %3689 = vmatprep.subr.bf16.mxu0 %v10095_v2  ;;  %4017 = vmatprep.subr.bf16.mxu1 %v10098_v3  ;;  %v10185_v2 = vld [vmem:[%s12129_s9 + $0x5c4] ss:$16 sps:$4 sm:$0xff]   ;;  %v10188_v3 = vld [vmem:[%s12129_s9 + $0x5cc] ss:$16 sps:$4 sm:$0xff]  }
 0x179   : > { %3690 = vmatpush1.bf16.msra.mxu0 %v10093_v4  ;;  %4018 = vmatpush1.bf16.msra.mxu1 %v10096_v5  ;;  %v10183_v4 = vld [vmem:[%s12129_s9 + $0x5c0] ss:$16 sps:$4 sm:$0xff]   ;;  %v10186_v5 = vld [vmem:[%s12129_s9 + $0x5c8] ss:$16 sps:$4 sm:$0xff]  }
 0x17a   : > { %3700 = vmatprep.subr.bf16.mxu0 %v10101_v6  ;;  %4028 = vmatprep.subr.bf16.mxu1 %v10104_v8  ;;  %v10191_v6 = vld [vmem:[%s12129_s9 + $0x5e4] ss:$16 sps:$4 sm:$0xff]   ;;  %v10189_v8 = vld [vmem:[%s12129_s9 + $0x5e0] ss:$16 sps:$4 sm:$0xff]  }
 0x17c   : > { %3692 = vmatmul.mubr.bf16.vlgmr.msra.gmra.mrb[0].mxu0 %v510_v11  ;;  %4020 = vmatmul.mubr.bf16.vlgmr.msra.gmra.mrb[0].mxu1 %v510_v11  ;;  %v496_v11 = vld [vmem:[#allocation2 + $0x20] sm:$0xff] }
 0x17d   : > { %3701 = vmatpush1.bf16.msra.mxu0 %v10099_v9  ;;  %4029 = vmatpush1.bf16.msra.mxu1 %v10102_v10  ;;  %v10192_v9 = vld [vmem:[%s12129_s9 + $0x5e8] ss:$16 sps:$4 sm:$0xff]   ;;  %v10197_v10 = vld [vmem:[%s12129_s9 + $0x604] ss:$16 sps:$4 sm:$0xff]  }
 0x17e   : > { %3702 = vmatprep.subr.bf16.mxu0 %v10107_v12  ;;  %4030 = vmatprep.subr.bf16.mxu1 %v10110_v13  ;;  %v10200_v12 = vld [vmem:[%s12129_s9 + $0x60c] ss:$16 sps:$4 sm:$0xff]   ;;  %v10195_v13 = vld [vmem:[%s12129_s9 + $0x600] ss:$16 sps:$4 sm:$0xff]  }
 0x17f   : > { %3732 = vmatprep.mubr.bf16.mxu0 %v513_v15  ;;  %4060 = vmatprep.mubr.bf16.mxu1 %v513_v15  ;;  %v512_v15 = vpack.c.bf16 %v496_v11, %v496_v11  ;;  %v10290_v11 = vld [vmem:[%s12129_s9 + $0x7ec] ss:$16 sps:$4 sm:$0xff]  }
 0x181   : > { %3703 = vmatpush1.bf16.msra.mxu0 %v10105_v16  ;;  %4031 = vmatpush1.bf16.msra.mxu1 %v10108_v17  ;;  %v499_v16 = vld [vmem:[#allocation2 + $0x38] sm:$0xff]  ;;  %v10203_v17 = vld [vmem:[%s12129_s9 + $0x624] ss:$16 sps:$4 sm:$0xff]  }
 0x182   : > { %3704 = vmatprep.subr.bf16.mxu0 %v10113_v18  ;;  %4032 = vmatprep.subr.bf16.mxu1 %v10116_v19  ;;  %v10206_v18 = vld [vmem:[%s12129_s9 + $0x62c] ss:$16 sps:$4 sm:$0xff]   ;;  %v515_v19 = vpack.c.bf16 %v499_v16, %v499_v16 }
 0x183   : > { %v10296_v16 = vld [vmem:[%s12129_s9 + $0x80c] ss:$16 sps:$4 sm:$0xff]  }
 0x185   : > { %3705 = vmatpush1.bf16.msra.mxu0 %v10111_v20  ;;  %4033 = vmatpush1.bf16.msra.mxu1 %v10114_v21  ;;  %v10201_v20 = vld [vmem:[%s12129_s9 + $0x620] ss:$16 sps:$4 sm:$0xff]   ;;  %v10204_v21 = vld [vmem:[%s12129_s9 + $0x628] ss:$16 sps:$4 sm:$0xff]  }
 0x186   : > { %3706 = vmatprep.subr.bf16.mxu0 %v10119_v22  ;;  %4034 = vmatprep.subr.bf16.mxu1 %v10122_v23  ;;  %v10209_v22 = vld [vmem:[%s12129_s9 + $0x644] ss:$16 sps:$4 sm:$0xff]   ;;  %v10212_v23 = vld [vmem:[%s12129_s9 + $0x64c] ss:$16 sps:$4 sm:$0xff]  }
 0x189   : > { %3707 = vmatpush1.bf16.msra.mxu0 %v10117_v24  ;;  %4035 = vmatpush1.bf16.msra.mxu1 %v10120_v25  ;;  %v10207_v24 = vld [vmem:[%s12129_s9 + $0x640] ss:$16 sps:$4 sm:$0xff]   ;;  %v10210_v25 = vld [vmem:[%s12129_s9 + $0x648] ss:$16 sps:$4 sm:$0xff]  }
 0x18a   : > { %3708 = vmatprep.subr.bf16.mxu0 %v10125_v26  ;;  %4036 = vmatprep.subr.bf16.mxu1 %v10128_v27  ;;  %v10215_v26 = vld [vmem:[%s12129_s9 + $0x664] ss:$16 sps:$4 sm:$0xff]   ;;  %v10218_v27 = vld [vmem:[%s12129_s9 + $0x66c] ss:$16 sps:$4 sm:$0xff]  }
 0x18d   : > { %3709 = vmatpush1.bf16.msra.mxu0 %v10123_v28  ;;  %4037 = vmatpush1.bf16.msra.mxu1 %v10126_v29  ;;  %v10213_v28 = vld [vmem:[%s12129_s9 + $0x660] ss:$16 sps:$4 sm:$0xff]   ;;  %v10216_v29 = vld [vmem:[%s12129_s9 + $0x668] ss:$16 sps:$4 sm:$0xff]  }
 0x18e   : > { %3710 = vmatprep.subr.bf16.mxu0 %v10131_v30  ;;  %4038 = vmatprep.subr.bf16.mxu1 %v10134_v31  ;;  %v10221_v30 = vld [vmem:[%s12129_s9 + $0x684] ss:$16 sps:$4 sm:$0xff]   ;;  %v10224_v31 = vld [vmem:[%s12129_s9 + $0x68c] ss:$16 sps:$4 sm:$0xff]  }
 0x191   : > { %3711 = vmatpush1.bf16.msra.mxu0 %v10129_v32  ;;  %4039 = vmatpush1.bf16.msra.mxu1 %v10132_v33  ;;  %v10219_v32 = vld [vmem:[%s12129_s9 + $0x680] ss:$16 sps:$4 sm:$0xff]   ;;  %v10222_v33 = vld [vmem:[%s12129_s9 + $0x688] ss:$16 sps:$4 sm:$0xff]  }
 0x192   : > { %3712 = vmatprep.subr.bf16.mxu0 %v10137_v34  ;;  %4040 = vmatprep.subr.bf16.mxu1 %v10140_v35  ;;  %v10227_v34 = vld [vmem:[%s12129_s9 + $0x6a4] ss:$16 sps:$4 sm:$0xff]   ;;  %v10230_v35 = vld [vmem:[%s12129_s9 + $0x6ac] ss:$16 sps:$4 sm:$0xff]  }
 0x195   : > { %3713 = vmatpush1.bf16.msra.mxu0 %v10135_v36  ;;  %4041 = vmatpush1.bf16.msra.mxu1 %v10138_v37  ;;  %v10225_v36 = vld [vmem:[%s12129_s9 + $0x6a0] ss:$16 sps:$4 sm:$0xff]   ;;  %v10228_v37 = vld [vmem:[%s12129_s9 + $0x6a8] ss:$16 sps:$4 sm:$0xff]  }
 0x196   : > { %3714 = vmatprep.subr.bf16.mxu0 %v10143_v38  ;;  %4042 = vmatprep.subr.bf16.mxu1 %v10146_v39  ;;  %v10233_v38 = vld [vmem:[%s12129_s9 + $0x6c4] ss:$16 sps:$4 sm:$0xff]   ;;  %v10236_v39 = vld [vmem:[%s12129_s9 + $0x6cc] ss:$16 sps:$4 sm:$0xff]  }
 0x199   : > { %3715 = vmatpush1.bf16.msra.mxu0 %v10141_v40  ;;  %4043 = vmatpush1.bf16.msra.mxu1 %v10144_v41  ;;  %v10231_v40 = vld [vmem:[%s12129_s9 + $0x6c0] ss:$16 sps:$4 sm:$0xff]   ;;  %v10234_v41 = vld [vmem:[%s12129_s9 + $0x6c8] ss:$16 sps:$4 sm:$0xff]  }
 0x19a   : > { %3716 = vmatprep.subr.bf16.mxu0 %v10149_v42  ;;  %4044 = vmatprep.subr.bf16.mxu1 %v10152_v43  ;;  %v10239_v42 = vld [vmem:[%s12129_s9 + $0x6e4] ss:$16 sps:$4 sm:$0xff]   ;;  %v10242_v43 = vld [vmem:[%s12129_s9 + $0x6ec] ss:$16 sps:$4 sm:$0xff]  }
 0x19d   : > { %3717 = vmatpush1.bf16.msra.mxu0 %v10147_v44  ;;  %4045 = vmatpush1.bf16.msra.mxu1 %v10150_v45  ;;  %v10237_v44 = vld [vmem:[%s12129_s9 + $0x6e0] ss:$16 sps:$4 sm:$0xff]   ;;  %v10240_v45 = vld [vmem:[%s12129_s9 + $0x6e8] ss:$16 sps:$4 sm:$0xff]  }
 0x19e   : > { %3718 = vmatprep.subr.bf16.mxu0 %v10155_v46  ;;  %4046 = vmatprep.subr.bf16.mxu1 %v10158_v47  ;;  %v10245_v46 = vld [vmem:[%s12129_s9 + $0x704] ss:$16 sps:$4 sm:$0xff]   ;;  %v10248_v47 = vld [vmem:[%s12129_s9 + $0x70c] ss:$16 sps:$4 sm:$0xff]  }
 0x1a1   : > { %3719 = vmatpush1.bf16.msra.mxu0 %v10153_v48  ;;  %4047 = vmatpush1.bf16.msra.mxu1 %v10156_v49  ;;  %v10243_v48 = vld [vmem:[%s12129_s9 + $0x700] ss:$16 sps:$4 sm:$0xff]   ;;  %v10246_v49 = vld [vmem:[%s12129_s9 + $0x708] ss:$16 sps:$4 sm:$0xff]  }
 0x1a2   : > { %3720 = vmatprep.subr.bf16.mxu0 %v10161_v50  ;;  %4048 = vmatprep.subr.bf16.mxu1 %v10164_v51  ;;  %v10251_v50 = vld [vmem:[%s12129_s9 + $0x724] ss:$16 sps:$4 sm:$0xff]   ;;  %v10254_v51 = vld [vmem:[%s12129_s9 + $0x72c] ss:$16 sps:$4 sm:$0xff]  }
 0x1a5   : > { %3721 = vmatpush1.bf16.msra.mxu0 %v10159_v52  ;;  %4049 = vmatpush1.bf16.msra.mxu1 %v10162_v53  ;;  %v10249_v52 = vld [vmem:[%s12129_s9 + $0x720] ss:$16 sps:$4 sm:$0xff]   ;;  %v10252_v53 = vld [vmem:[%s12129_s9 + $0x728] ss:$16 sps:$4 sm:$0xff]  }
 0x1a6   : > { %3722 = vmatprep.subr.bf16.mxu0 %v10167_v54  ;;  %4050 = vmatprep.subr.bf16.mxu1 %v10170_v55  ;;  %v10257_v54 = vld [vmem:[%s12129_s9 + $0x744] ss:$16 sps:$4 sm:$0xff]   ;;  %v10260_v55 = vld [vmem:[%s12129_s9 + $0x74c] ss:$16 sps:$4 sm:$0xff]  }
 0x1a9   : > { %3723 = vmatpush1.bf16.msra.mxu0 %v10165_v56  ;;  %4051 = vmatpush1.bf16.msra.mxu1 %v10168_v57  ;;  %v10255_v56 = vld [vmem:[%s12129_s9 + $0x740] ss:$16 sps:$4 sm:$0xff]   ;;  %v10258_v57 = vld [vmem:[%s12129_s9 + $0x748] ss:$16 sps:$4 sm:$0xff]  }
 0x1aa   : > { %3724 = vmatprep.subr.bf16.mxu0 %v10173_v58  ;;  %4052 = vmatprep.subr.bf16.mxu1 %v10176_v59  ;;  %v10263_v58 = vld [vmem:[%s12129_s9 + $0x764] ss:$16 sps:$4 sm:$0xff]   ;;  %v10266_v59 = vld [vmem:[%s12129_s9 + $0x76c] ss:$16 sps:$4 sm:$0xff]  }
 0x1ad   : > { %3725 = vmatpush1.bf16.msra.mxu0 %v10171_v60  ;;  %4053 = vmatpush1.bf16.msra.mxu1 %v10174_v61  ;;  %v10261_v60 = vld [vmem:[%s12129_s9 + $0x760] ss:$16 sps:$4 sm:$0xff]   ;;  %v10264_v61 = vld [vmem:[%s12129_s9 + $0x768] ss:$16 sps:$4 sm:$0xff]  }
 0x1ae   : > { %3726 = vmatprep.subr.bf16.mxu0 %v10179_v62  ;;  %4054 = vmatprep.subr.bf16.mxu1 %v10182_v63  ;;  %v10269_v62 = vld [vmem:[%s12129_s9 + $0x784] ss:$16 sps:$4 sm:$0xff]   ;;  %v10272_v63 = vld [vmem:[%s12129_s9 + $0x78c] ss:$16 sps:$4 sm:$0xff]  }
 0x1b1   : > { %3727 = vmatpush1.bf16.msra.mxu0 %v10177_v0  ;;  %4055 = vmatpush1.bf16.msra.mxu1 %v10180_v1  ;;  %v10267_v0 = vld [vmem:[%s12129_s9 + $0x780] ss:$16 sps:$4 sm:$0xff]   ;;  %v10270_v1 = vld [vmem:[%s12129_s9 + $0x788] ss:$16 sps:$4 sm:$0xff]  }
 0x1b2   : > { %3728 = vmatprep.subr.bf16.mxu0 %v10185_v2  ;;  %4056 = vmatprep.subr.bf16.mxu1 %v10188_v3  ;;  %v10275_v2 = vld [vmem:[%s12129_s9 + $0x7a4] ss:$16 sps:$4 sm:$0xff]   ;;  %v10278_v3 = vld [vmem:[%s12129_s9 + $0x7ac] ss:$16 sps:$4 sm:$0xff]  }
 0x1b5   : > { %3729 = vmatpush1.bf16.msra.mxu0 %v10183_v4  ;;  %4057 = vmatpush1.bf16.msra.mxu1 %v10186_v5  ;;  %v10273_v4 = vld [vmem:[%s12129_s9 + $0x7a0] ss:$16 sps:$4 sm:$0xff]   ;;  %v10276_v5 = vld [vmem:[%s12129_s9 + $0x7a8] ss:$16 sps:$4 sm:$0xff]  }
 0x1b6   : > { %3730 = vmatprep.subr.bf16.mxu0 %v10191_v6  ;;  %4058 = vmatprep.subr.bf16.mxu1 %v10194_v7  ;;  %v10281_v6 = vld [vmem:[%s12129_s9 + $0x7c4] ss:$16 sps:$4 sm:$0xff]   ;;  %v10284_v7 = vld [vmem:[%s12129_s9 + $0x7cc] ss:$16 sps:$4 sm:$0xff]  }
 0x1b9   : > { %3731 = vmatpush1.bf16.msra.mxu0 %v10189_v8  ;;  %4059 = vmatpush1.bf16.msra.mxu1 %v10192_v9  ;;  %v10279_v8 = vld [vmem:[%s12129_s9 + $0x7c0] ss:$16 sps:$4 sm:$0xff]   ;;  %v10282_v9 = vld [vmem:[%s12129_s9 + $0x7c8] ss:$16 sps:$4 sm:$0xff]  }
 0x1ba   : > { %3741 = vmatprep.subr.bf16.mxu0 %v10197_v10  ;;  %4069 = vmatprep.subr.bf16.mxu1 %v10200_v12  ;;  %v10287_v10 = vld [vmem:[%s12129_s9 + $0x7e4] ss:$16 sps:$4 sm:$0xff]   ;;  %v10285_v12 = vld [vmem:[%s12129_s9 + $0x7e0] ss:$16 sps:$4 sm:$0xff]  }
 0x1bc   : > { %3733 = vmatmul.mubr.bf16.vlgmr.msra.gmra.mrb[0].mxu0 %v512_v15  ;;  %4061 = vmatmul.mubr.bf16.vlgmr.msra.gmra.mrb[0].mxu1 %v512_v15  ;;  %v10293_v15 = vld [vmem:[%s12129_s9 + $0x804] ss:$16 sps:$4 sm:$0xff]  }
 0x1bd   : > { %3742 = vmatpush1.bf16.msra.mxu0 %v10195_v13  ;;  %4070 = vmatpush1.bf16.msra.mxu1 %v10198_v14  ;;  %v10288_v13 = vld [vmem:[%s12129_s9 + $0x7e8] ss:$16 sps:$4 sm:$0xff]   ;;  %v498_v14 = vld [vmem:[#allocation2 + $0x30] sm:$0xff] }
 0x1be   : > { %3743 = vmatprep.subr.bf16.mxu0 %v10203_v17  ;;  %4071 = vmatprep.subr.bf16.mxu1 %v10206_v18  ;;  %v514_v17 = vpack.c.bf16 %v498_v14, %v498_v14  ;;  %v501_v18 = vld [vmem:[#allocation2 + $0x48] sm:$0xff]  ;;  %v10383_v14 = vld [vmem:[%s12129_s9 + $0x9e4] ss:$16 sps:$4 sm:$0xff]  }
 0x1bf   : > { %3773 = vmatprep.mubr.bf16.mxu0 %v515_v19  ;;  %4101 = vmatprep.mubr.bf16.mxu1 %v515_v19  ;;  %v10291_v19 = vld [vmem:[%s12129_s9 + $0x800] ss:$16 sps:$4 sm:$0xff]  }
 0x1c1   : > { %3744 = vmatpush1.bf16.msra.mxu0 %v10201_v20  ;;  %4072 = vmatpush1.bf16.msra.mxu1 %v10204_v21  ;;  %v10294_v20 = vld [vmem:[%s12129_s9 + $0x808] ss:$16 sps:$4 sm:$0xff]   ;;  %v10299_v21 = vld [vmem:[%s12129_s9 + $0x824] ss:$16 sps:$4 sm:$0xff]  }
 0x1c2   : > { %3745 = vmatprep.subr.bf16.mxu0 %v10209_v22  ;;  %4073 = vmatprep.subr.bf16.mxu1 %v10212_v23  ;;  %v10302_v22 = vld [vmem:[%s12129_s9 + $0x82c] ss:$16 sps:$4 sm:$0xff]   ;;  %v517_v23 = vpack.c.bf16 %v501_v18, %v501_v18  ;;  %v10389_v18 = vld [vmem:[%s12129_s9 + $0xa04] ss:$16 sps:$4 sm:$0xff]  }
 0x1c5   : > { %3746 = vmatpush1.bf16.msra.mxu0 %v10207_v24  ;;  %4074 = vmatpush1.bf16.msra.mxu1 %v10210_v25  ;;  %v10297_v24 = vld [vmem:[%s12129_s9 + $0x820] ss:$16 sps:$4 sm:$0xff]   ;;  %v10300_v25 = vld [vmem:[%s12129_s9 + $0x828] ss:$16 sps:$4 sm:$0xff]  }
 0x1c6   : > { %3747 = vmatprep.subr.bf16.mxu0 %v10215_v26  ;;  %4075 = vmatprep.subr.bf16.mxu1 %v10218_v27  ;;  %v10305_v26 = vld [vmem:[%s12129_s9 + $0x844] ss:$16 sps:$4 sm:$0xff]   ;;  %v10308_v27 = vld [vmem:[%s12129_s9 + $0x84c] ss:$16 sps:$4 sm:$0xff]  }
 0x1c9   : > { %3748 = vmatpush1.bf16.msra.mxu0 %v10213_v28  ;;  %4076 = vmatpush1.bf16.msra.mxu1 %v10216_v29  ;;  %v10303_v28 = vld [vmem:[%s12129_s9 + $0x840] ss:$16 sps:$4 sm:$0xff]   ;;  %v10306_v29 = vld [vmem:[%s12129_s9 + $0x848] ss:$16 sps:$4 sm:$0xff]  }
 0x1ca   : > { %3749 = vmatprep.subr.bf16.mxu0 %v10221_v30  ;;  %4077 = vmatprep.subr.bf16.mxu1 %v10224_v31  ;;  %v10311_v30 = vld [vmem:[%s12129_s9 + $0x864] ss:$16 sps:$4 sm:$0xff]   ;;  %v10314_v31 = vld [vmem:[%s12129_s9 + $0x86c] ss:$16 sps:$4 sm:$0xff]  }
 0x1cd   : > { %3750 = vmatpush1.bf16.msra.mxu0 %v10219_v32  ;;  %4078 = vmatpush1.bf16.msra.mxu1 %v10222_v33  ;;  %v10309_v32 = vld [vmem:[%s12129_s9 + $0x860] ss:$16 sps:$4 sm:$0xff]   ;;  %v10312_v33 = vld [vmem:[%s12129_s9 + $0x868] ss:$16 sps:$4 sm:$0xff]  }
 0x1ce   : > { %3751 = vmatprep.subr.bf16.mxu0 %v10227_v34  ;;  %4079 = vmatprep.subr.bf16.mxu1 %v10230_v35  ;;  %v10317_v34 = vld [vmem:[%s12129_s9 + $0x884] ss:$16 sps:$4 sm:$0xff]   ;;  %v10320_v35 = vld [vmem:[%s12129_s9 + $0x88c] ss:$16 sps:$4 sm:$0xff]  }
 0x1d1   : > { %3752 = vmatpush1.bf16.msra.mxu0 %v10225_v36  ;;  %4080 = vmatpush1.bf16.msra.mxu1 %v10228_v37  ;;  %v10315_v36 = vld [vmem:[%s12129_s9 + $0x880] ss:$16 sps:$4 sm:$0xff]   ;;  %v10318_v37 = vld [vmem:[%s12129_s9 + $0x888] ss:$16 sps:$4 sm:$0xff]  }
 0x1d2   : > { %3753 = vmatprep.subr.bf16.mxu0 %v10233_v38  ;;  %4081 = vmatprep.subr.bf16.mxu1 %v10236_v39  ;;  %v10323_v38 = vld [vmem:[%s12129_s9 + $0x8a4] ss:$16 sps:$4 sm:$0xff]   ;;  %v10326_v39 = vld [vmem:[%s12129_s9 + $0x8ac] ss:$16 sps:$4 sm:$0xff]  }
 0x1d5   : > { %3754 = vmatpush1.bf16.msra.mxu0 %v10231_v40  ;;  %4082 = vmatpush1.bf16.msra.mxu1 %v10234_v41  ;;  %v10321_v40 = vld [vmem:[%s12129_s9 + $0x8a0] ss:$16 sps:$4 sm:$0xff]   ;;  %v10324_v41 = vld [vmem:[%s12129_s9 + $0x8a8] ss:$16 sps:$4 sm:$0xff]  }
 0x1d6   : > { %3755 = vmatprep.subr.bf16.mxu0 %v10239_v42  ;;  %4083 = vmatprep.subr.bf16.mxu1 %v10242_v43  ;;  %v10329_v42 = vld [vmem:[%s12129_s9 + $0x8c4] ss:$16 sps:$4 sm:$0xff]   ;;  %v10332_v43 = vld [vmem:[%s12129_s9 + $0x8cc] ss:$16 sps:$4 sm:$0xff]  }
 0x1d9   : > { %3756 = vmatpush1.bf16.msra.mxu0 %v10237_v44  ;;  %4084 = vmatpush1.bf16.msra.mxu1 %v10240_v45  ;;  %v10327_v44 = vld [vmem:[%s12129_s9 + $0x8c0] ss:$16 sps:$4 sm:$0xff]   ;;  %v10330_v45 = vld [vmem:[%s12129_s9 + $0x8c8] ss:$16 sps:$4 sm:$0xff]  }
 0x1da   : > { %3757 = vmatprep.subr.bf16.mxu0 %v10245_v46  ;;  %4085 = vmatprep.subr.bf16.mxu1 %v10248_v47  ;;  %v10335_v46 = vld [vmem:[%s12129_s9 + $0x8e4] ss:$16 sps:$4 sm:$0xff]   ;;  %v10338_v47 = vld [vmem:[%s12129_s9 + $0x8ec] ss:$16 sps:$4 sm:$0xff]  }
 0x1dd   : > { %3758 = vmatpush1.bf16.msra.mxu0 %v10243_v48  ;;  %4086 = vmatpush1.bf16.msra.mxu1 %v10246_v49  ;;  %v10333_v48 = vld [vmem:[%s12129_s9 + $0x8e0] ss:$16 sps:$4 sm:$0xff]   ;;  %v10336_v49 = vld [vmem:[%s12129_s9 + $0x8e8] ss:$16 sps:$4 sm:$0xff]  }
 0x1de   : > { %3759 = vmatprep.subr.bf16.mxu0 %v10251_v50  ;;  %4087 = vmatprep.subr.bf16.mxu1 %v10254_v51  ;;  %v10341_v50 = vld [vmem:[%s12129_s9 + $0x904] ss:$16 sps:$4 sm:$0xff]   ;;  %v10344_v51 = vld [vmem:[%s12129_s9 + $0x90c] ss:$16 sps:$4 sm:$0xff]  }
 0x1e1   : > { %3760 = vmatpush1.bf16.msra.mxu0 %v10249_v52  ;;  %4088 = vmatpush1.bf16.msra.mxu1 %v10252_v53  ;;  %v10339_v52 = vld [vmem:[%s12129_s9 + $0x900] ss:$16 sps:$4 sm:$0xff]   ;;  %v10342_v53 = vld [vmem:[%s12129_s9 + $0x908] ss:$16 sps:$4 sm:$0xff]  }
 0x1e2   : > { %3761 = vmatprep.subr.bf16.mxu0 %v10257_v54  ;;  %4089 = vmatprep.subr.bf16.mxu1 %v10260_v55  ;;  %v10347_v54 = vld [vmem:[%s12129_s9 + $0x924] ss:$16 sps:$4 sm:$0xff]   ;;  %v10350_v55 = vld [vmem:[%s12129_s9 + $0x92c] ss:$16 sps:$4 sm:$0xff]  }
 0x1e5   : > { %3762 = vmatpush1.bf16.msra.mxu0 %v10255_v56  ;;  %4090 = vmatpush1.bf16.msra.mxu1 %v10258_v57  ;;  %v10345_v56 = vld [vmem:[%s12129_s9 + $0x920] ss:$16 sps:$4 sm:$0xff]   ;;  %v10348_v57 = vld [vmem:[%s12129_s9 + $0x928] ss:$16 sps:$4 sm:$0xff]  }
 0x1e6   : > { %3763 = vmatprep.subr.bf16.mxu0 %v10263_v58  ;;  %4091 = vmatprep.subr.bf16.mxu1 %v10266_v59  ;;  %v10353_v58 = vld [vmem:[%s12129_s9 + $0x944] ss:$16 sps:$4 sm:$0xff]   ;;  %v10356_v59 = vld [vmem:[%s12129_s9 + $0x94c] ss:$16 sps:$4 sm:$0xff]  }
 0x1e9   : > { %3764 = vmatpush1.bf16.msra.mxu0 %v10261_v60  ;;  %4092 = vmatpush1.bf16.msra.mxu1 %v10264_v61  ;;  %v10351_v60 = vld [vmem:[%s12129_s9 + $0x940] ss:$16 sps:$4 sm:$0xff]   ;;  %v10354_v61 = vld [vmem:[%s12129_s9 + $0x948] ss:$16 sps:$4 sm:$0xff]  }
 0x1ea   : > { %3765 = vmatprep.subr.bf16.mxu0 %v10269_v62  ;;  %4093 = vmatprep.subr.bf16.mxu1 %v10272_v63  ;;  %v10359_v62 = vld [vmem:[%s12129_s9 + $0x964] ss:$16 sps:$4 sm:$0xff]   ;;  %v10362_v63 = vld [vmem:[%s12129_s9 + $0x96c] ss:$16 sps:$4 sm:$0xff]  }
 0x1ed   : > { %3766 = vmatpush1.bf16.msra.mxu0 %v10267_v0  ;;  %4094 = vmatpush1.bf16.msra.mxu1 %v10270_v1  ;;  %v10357_v0 = vld [vmem:[%s12129_s9 + $0x960] ss:$16 sps:$4 sm:$0xff]   ;;  %v10360_v1 = vld [vmem:[%s12129_s9 + $0x968] ss:$16 sps:$4 sm:$0xff]  }
 0x1ee   : > { %3767 = vmatprep.subr.bf16.mxu0 %v10275_v2  ;;  %4095 = vmatprep.subr.bf16.mxu1 %v10278_v3  ;;  %v10365_v2 = vld [vmem:[%s12129_s9 + $0x984] ss:$16 sps:$4 sm:$0xff]   ;;  %v10368_v3 = vld [vmem:[%s12129_s9 + $0x98c] ss:$16 sps:$4 sm:$0xff]  }
 0x1f1   : > { %3768 = vmatpush1.bf16.msra.mxu0 %v10273_v4  ;;  %4096 = vmatpush1.bf16.msra.mxu1 %v10276_v5  ;;  %v10363_v4 = vld [vmem:[%s12129_s9 + $0x980] ss:$16 sps:$4 sm:$0xff]   ;;  %v10366_v5 = vld [vmem:[%s12129_s9 + $0x988] ss:$16 sps:$4 sm:$0xff]  }
 0x1f2   : > { %3769 = vmatprep.subr.bf16.mxu0 %v10281_v6  ;;  %4097 = vmatprep.subr.bf16.mxu1 %v10284_v7  ;;  %v10371_v6 = vld [vmem:[%s12129_s9 + $0x9a4] ss:$16 sps:$4 sm:$0xff]   ;;  %v10374_v7 = vld [vmem:[%s12129_s9 + $0x9ac] ss:$16 sps:$4 sm:$0xff]  }
 0x1f5   : > { %3770 = vmatpush1.bf16.msra.mxu0 %v10279_v8  ;;  %4098 = vmatpush1.bf16.msra.mxu1 %v10282_v9  ;;  %v10369_v8 = vld [vmem:[%s12129_s9 + $0x9a0] ss:$16 sps:$4 sm:$0xff]   ;;  %v10372_v9 = vld [vmem:[%s12129_s9 + $0x9a8] ss:$16 sps:$4 sm:$0xff]  }
 0x1f6   : > { %3771 = vmatprep.subr.bf16.mxu0 %v10287_v10  ;;  %4099 = vmatprep.subr.bf16.mxu1 %v10290_v11  ;;  %v10377_v10 = vld [vmem:[%s12129_s9 + $0x9c4] ss:$16 sps:$4 sm:$0xff]   ;;  %v10380_v11 = vld [vmem:[%s12129_s9 + $0x9cc] ss:$16 sps:$4 sm:$0xff]  }
 0x1f9   : > { %3772 = vmatpush1.bf16.msra.mxu0 %v10285_v12  ;;  %4100 = vmatpush1.bf16.msra.mxu1 %v10288_v13  ;;  %v10375_v12 = vld [vmem:[%s12129_s9 + $0x9c0] ss:$16 sps:$4 sm:$0xff]   ;;  %v10378_v13 = vld [vmem:[%s12129_s9 + $0x9c8] ss:$16 sps:$4 sm:$0xff]  }
 0x1fa   : > { %3782 = vmatprep.subr.bf16.mxu0 %v10293_v15  ;;  %4110 = vmatprep.subr.bf16.mxu1 %v10296_v16  ;;  %v10386_v15 = vld [vmem:[%s12129_s9 + $0x9ec] ss:$16 sps:$4 sm:$0xff]   ;;  %v10381_v16 = vld [vmem:[%s12129_s9 + $0x9e0] ss:$16 sps:$4 sm:$0xff]  }
 0x1fc   : > { %3774 = vmatmul.mubr.bf16.vlgmr.msra.gmra.mrb[0].mxu0 %v514_v17  ;;  %4102 = vmatmul.mubr.bf16.vlgmr.msra.gmra.mrb[0].mxu1 %v514_v17  ;;  %v10384_v17 = vld [vmem:[%s12129_s9 + $0x9e8] ss:$16 sps:$4 sm:$0xff]  }
 0x1fd   : > { %3783 = vmatpush1.bf16.msra.mxu0 %v10291_v19  ;;  %4111 = vmatpush1.bf16.msra.mxu1 %v10294_v20  ;;  %v500_v19 = vld [vmem:[#allocation2 + $0x40] sm:$0xff]  ;;  %v10392_v20 = vld [vmem:[%s12129_s9 + $0xa0c] ss:$16 sps:$4 sm:$0xff]  }
 0x1fe   : > { %3784 = vmatprep.subr.bf16.mxu0 %v10299_v21  ;;  %4112 = vmatprep.subr.bf16.mxu1 %v10302_v22  ;;  %v503_v21 = vld [vmem:[#allocation2 + $0x58] sm:$0xff]  ;;  %v516_v22 = vpack.c.bf16 %v500_v19, %v500_v19 }
 0x1ff   : > { %3814 = vmatprep.mubr.bf16.mxu0 %v517_v23  ;;  %4142 = vmatprep.mubr.bf16.mxu1 %v517_v23  ;;  %v10387_v23 = vld [vmem:[%s12129_s9 + $0xa00] ss:$16 sps:$4 sm:$0xff]   ;;  %v10482_v19 = vld [vmem:[%s12129_s9 + $0xbec] ss:$16 sps:$4 sm:$0xff]  }
 0x201   : > { %3785 = vmatpush1.bf16.msra.mxu0 %v10297_v24  ;;  %4113 = vmatpush1.bf16.msra.mxu1 %v10300_v25  ;;  %v10390_v24 = vld [vmem:[%s12129_s9 + $0xa08] ss:$16 sps:$4 sm:$0xff]   ;;  %v10395_v25 = vld [vmem:[%s12129_s9 + $0xa24] ss:$16 sps:$4 sm:$0xff]  }
 0x202   : > { %3786 = vmatprep.subr.bf16.mxu0 %v10305_v26  ;;  %4114 = vmatprep.subr.bf16.mxu1 %v10308_v27  ;;  %v10398_v26 = vld [vmem:[%s12129_s9 + $0xa2c] ss:$16 sps:$4 sm:$0xff]   ;;  %v519_v27 = vpack.c.bf16 %v503_v21, %v503_v21  ;;  %v10480_v21 = vld [vmem:[%s12129_s9 + $0xbe8] ss:$16 sps:$4 sm:$0xff]  }
 0x205   : > { %3787 = vmatpush1.bf16.msra.mxu0 %v10303_v28  ;;  %4115 = vmatpush1.bf16.msra.mxu1 %v10306_v29  ;;  %v10393_v28 = vld [vmem:[%s12129_s9 + $0xa20] ss:$16 sps:$4 sm:$0xff]   ;;  %v10396_v29 = vld [vmem:[%s12129_s9 + $0xa28] ss:$16 sps:$4 sm:$0xff]  }
 0x206   : > { %3788 = vmatprep.subr.bf16.mxu0 %v10311_v30  ;;  %4116 = vmatprep.subr.bf16.mxu1 %v10314_v31  ;;  %v10401_v30 = vld [vmem:[%s12129_s9 + $0xa44] ss:$16 sps:$4 sm:$0xff]   ;;  %v10404_v31 = vld [vmem:[%s12129_s9 + $0xa4c] ss:$16 sps:$4 sm:$0xff]  }
 0x209   : > { %3789 = vmatpush1.bf16.msra.mxu0 %v10309_v32  ;;  %4117 = vmatpush1.bf16.msra.mxu1 %v10312_v33  ;;  %v10399_v32 = vld [vmem:[%s12129_s9 + $0xa40] ss:$16 sps:$4 sm:$0xff]   ;;  %v10402_v33 = vld [vmem:[%s12129_s9 + $0xa48] ss:$16 sps:$4 sm:$0xff]  }
 0x20a   : > { %3790 = vmatprep.subr.bf16.mxu0 %v10317_v34  ;;  %4118 = vmatprep.subr.bf16.mxu1 %v10320_v35  ;;  %v10407_v34 = vld [vmem:[%s12129_s9 + $0xa64] ss:$16 sps:$4 sm:$0xff]   ;;  %v10410_v35 = vld [vmem:[%s12129_s9 + $0xa6c] ss:$16 sps:$4 sm:$0xff]  }
 0x20d   : > { %3791 = vmatpush1.bf16.msra.mxu0 %v10315_v36  ;;  %4119 = vmatpush1.bf16.msra.mxu1 %v10318_v37  ;;  %v10405_v36 = vld [vmem:[%s12129_s9 + $0xa60] ss:$16 sps:$4 sm:$0xff]   ;;  %v10408_v37 = vld [vmem:[%s12129_s9 + $0xa68] ss:$16 sps:$4 sm:$0xff]  }
 0x20e   : > { %3792 = vmatprep.subr.bf16.mxu0 %v10323_v38  ;;  %4120 = vmatprep.subr.bf16.mxu1 %v10326_v39  ;;  %v10413_v38 = vld [vmem:[%s12129_s9 + $0xa84] ss:$16 sps:$4 sm:$0xff]   ;;  %v10416_v39 = vld [vmem:[%s12129_s9 + $0xa8c] ss:$16 sps:$4 sm:$0xff]  }
 0x211   : > { %3793 = vmatpush1.bf16.msra.mxu0 %v10321_v40  ;;  %4121 = vmatpush1.bf16.msra.mxu1 %v10324_v41  ;;  %v10411_v40 = vld [vmem:[%s12129_s9 + $0xa80] ss:$16 sps:$4 sm:$0xff]   ;;  %v10414_v41 = vld [vmem:[%s12129_s9 + $0xa88] ss:$16 sps:$4 sm:$0xff]  }
 0x212   : > { %3794 = vmatprep.subr.bf16.mxu0 %v10329_v42  ;;  %4122 = vmatprep.subr.bf16.mxu1 %v10332_v43  ;;  %v10419_v42 = vld [vmem:[%s12129_s9 + $0xaa4] ss:$16 sps:$4 sm:$0xff]   ;;  %v10422_v43 = vld [vmem:[%s12129_s9 + $0xaac] ss:$16 sps:$4 sm:$0xff]  }
 0x215   : > { %3795 = vmatpush1.bf16.msra.mxu0 %v10327_v44  ;;  %4123 = vmatpush1.bf16.msra.mxu1 %v10330_v45  ;;  %v10417_v44 = vld [vmem:[%s12129_s9 + $0xaa0] ss:$16 sps:$4 sm:$0xff]   ;;  %v10420_v45 = vld [vmem:[%s12129_s9 + $0xaa8] ss:$16 sps:$4 sm:$0xff]  }
 0x216   : > { %3796 = vmatprep.subr.bf16.mxu0 %v10335_v46  ;;  %4124 = vmatprep.subr.bf16.mxu1 %v10338_v47  ;;  %v10425_v46 = vld [vmem:[%s12129_s9 + $0xac4] ss:$16 sps:$4 sm:$0xff]   ;;  %v10428_v47 = vld [vmem:[%s12129_s9 + $0xacc] ss:$16 sps:$4 sm:$0xff]  }
 0x219   : > { %3797 = vmatpush1.bf16.msra.mxu0 %v10333_v48  ;;  %4125 = vmatpush1.bf16.msra.mxu1 %v10336_v49  ;;  %v10423_v48 = vld [vmem:[%s12129_s9 + $0xac0] ss:$16 sps:$4 sm:$0xff]   ;;  %v10426_v49 = vld [vmem:[%s12129_s9 + $0xac8] ss:$16 sps:$4 sm:$0xff]  }
 0x21a   : > { %3798 = vmatprep.subr.bf16.mxu0 %v10341_v50  ;;  %4126 = vmatprep.subr.bf16.mxu1 %v10344_v51  ;;  %v10431_v50 = vld [vmem:[%s12129_s9 + $0xae4] ss:$16 sps:$4 sm:$0xff]   ;;  %v10434_v51 = vld [vmem:[%s12129_s9 + $0xaec] ss:$16 sps:$4 sm:$0xff]  }
 0x21d   : > { %3799 = vmatpush1.bf16.msra.mxu0 %v10339_v52  ;;  %4127 = vmatpush1.bf16.msra.mxu1 %v10342_v53  ;;  %v10429_v52 = vld [vmem:[%s12129_s9 + $0xae0] ss:$16 sps:$4 sm:$0xff]   ;;  %v10432_v53 = vld [vmem:[%s12129_s9 + $0xae8] ss:$16 sps:$4 sm:$0xff]  }
 0x21e   : > { %3800 = vmatprep.subr.bf16.mxu0 %v10347_v54  ;;  %4128 = vmatprep.subr.bf16.mxu1 %v10350_v55  ;;  %v10437_v54 = vld [vmem:[%s12129_s9 + $0xb04] ss:$16 sps:$4 sm:$0xff]   ;;  %v10440_v55 = vld [vmem:[%s12129_s9 + $0xb0c] ss:$16 sps:$4 sm:$0xff]  }
 0x221   : > { %3801 = vmatpush1.bf16.msra.mxu0 %v10345_v56  ;;  %4129 = vmatpush1.bf16.msra.mxu1 %v10348_v57  ;;  %v10435_v56 = vld [vmem:[%s12129_s9 + $0xb00] ss:$16 sps:$4 sm:$0xff]   ;;  %v10438_v57 = vld [vmem:[%s12129_s9 + $0xb08] ss:$16 sps:$4 sm:$0xff]  }
 0x222   : > { %3802 = vmatprep.subr.bf16.mxu0 %v10353_v58  ;;  %4130 = vmatprep.subr.bf16.mxu1 %v10356_v59  ;;  %v10443_v58 = vld [vmem:[%s12129_s9 + $0xb24] ss:$16 sps:$4 sm:$0xff]   ;;  %v10446_v59 = vld [vmem:[%s12129_s9 + $0xb2c] ss:$16 sps:$4 sm:$0xff]  }
 0x225   : > { %3803 = vmatpush1.bf16.msra.mxu0 %v10351_v60  ;;  %4131 = vmatpush1.bf16.msra.mxu1 %v10354_v61  ;;  %v10441_v60 = vld [vmem:[%s12129_s9 + $0xb20] ss:$16 sps:$4 sm:$0xff]   ;;  %v10444_v61 = vld [vmem:[%s12129_s9 + $0xb28] ss:$16 sps:$4 sm:$0xff]  }
 0x226   : > { %3804 = vmatprep.subr.bf16.mxu0 %v10359_v62  ;;  %4132 = vmatprep.subr.bf16.mxu1 %v10362_v63  ;;  %v10449_v62 = vld [vmem:[%s12129_s9 + $0xb44] ss:$16 sps:$4 sm:$0xff]   ;;  %v10452_v63 = vld [vmem:[%s12129_s9 + $0xb4c] ss:$16 sps:$4 sm:$0xff]  }
 0x229   : > { %3805 = vmatpush1.bf16.msra.mxu0 %v10357_v0  ;;  %4133 = vmatpush1.bf16.msra.mxu1 %v10360_v1  ;;  %v10447_v0 = vld [vmem:[%s12129_s9 + $0xb40] ss:$16 sps:$4 sm:$0xff]   ;;  %v10450_v1 = vld [vmem:[%s12129_s9 + $0xb48] ss:$16 sps:$4 sm:$0xff]  }
 0x22a   : > { %3806 = vmatprep.subr.bf16.mxu0 %v10365_v2  ;;  %4134 = vmatprep.subr.bf16.mxu1 %v10368_v3  ;;  %v10455_v2 = vld [vmem:[%s12129_s9 + $0xb64] ss:$16 sps:$4 sm:$0xff]   ;;  %v10458_v3 = vld [vmem:[%s12129_s9 + $0xb6c] ss:$16 sps:$4 sm:$0xff]  }
 0x22d   : > { %3807 = vmatpush1.bf16.msra.mxu0 %v10363_v4  ;;  %4135 = vmatpush1.bf16.msra.mxu1 %v10366_v5  ;;  %v10453_v4 = vld [vmem:[%s12129_s9 + $0xb60] ss:$16 sps:$4 sm:$0xff]   ;;  %v10456_v5 = vld [vmem:[%s12129_s9 + $0xb68] ss:$16 sps:$4 sm:$0xff]  }
 0x22e   : > { %3808 = vmatprep.subr.bf16.mxu0 %v10371_v6  ;;  %4136 = vmatprep.subr.bf16.mxu1 %v10374_v7  ;;  %v10461_v6 = vld [vmem:[%s12129_s9 + $0xb84] ss:$16 sps:$4 sm:$0xff]   ;;  %v10464_v7 = vld [vmem:[%s12129_s9 + $0xb8c] ss:$16 sps:$4 sm:$0xff]  }
 0x231   : > { %3809 = vmatpush1.bf16.msra.mxu0 %v10369_v8  ;;  %4137 = vmatpush1.bf16.msra.mxu1 %v10372_v9  ;;  %v10459_v8 = vld [vmem:[%s12129_s9 + $0xb80] ss:$16 sps:$4 sm:$0xff]   ;;  %v10462_v9 = vld [vmem:[%s12129_s9 + $0xb88] ss:$16 sps:$4 sm:$0xff]  }
 0x232   : > { %3810 = vmatprep.subr.bf16.mxu0 %v10377_v10  ;;  %4138 = vmatprep.subr.bf16.mxu1 %v10380_v11  ;;  %v10467_v10 = vld [vmem:[%s12129_s9 + $0xba4] ss:$16 sps:$4 sm:$0xff]   ;;  %v10470_v11 = vld [vmem:[%s12129_s9 + $0xbac] ss:$16 sps:$4 sm:$0xff]  }
 0x235   : > { %3811 = vmatpush1.bf16.msra.mxu0 %v10375_v12  ;;  %4139 = vmatpush1.bf16.msra.mxu1 %v10378_v13  ;;  %v10465_v12 = vld [vmem:[%s12129_s9 + $0xba0] ss:$16 sps:$4 sm:$0xff]   ;;  %v10468_v13 = vld [vmem:[%s12129_s9 + $0xba8] ss:$16 sps:$4 sm:$0xff]  }
 0x236   : > { %3812 = vmatprep.subr.bf16.mxu0 %v10383_v14  ;;  %4140 = vmatprep.subr.bf16.mxu1 %v10386_v15  ;;  %v10473_v14 = vld [vmem:[%s12129_s9 + $0xbc4] ss:$16 sps:$4 sm:$0xff]   ;;  %v10476_v15 = vld [vmem:[%s12129_s9 + $0xbcc] ss:$16 sps:$4 sm:$0xff]  }
 0x239   : > { %3813 = vmatpush1.bf16.msra.mxu0 %v10381_v16  ;;  %4141 = vmatpush1.bf16.msra.mxu1 %v10384_v17  ;;  %v10471_v16 = vld [vmem:[%s12129_s9 + $0xbc0] ss:$16 sps:$4 sm:$0xff]   ;;  %v10474_v17 = vld [vmem:[%s12129_s9 + $0xbc8] ss:$16 sps:$4 sm:$0xff]  }
 0x23a   : > { %3823 = vmatprep.subr.bf16.mxu0 %v10389_v18  ;;  %4151 = vmatprep.subr.bf16.mxu1 %v10392_v20  ;;  %v10479_v18 = vld [vmem:[%s12129_s9 + $0xbe4] ss:$16 sps:$4 sm:$0xff]   ;;  %v10477_v20 = vld [vmem:[%s12129_s9 + $0xbe0] ss:$16 sps:$4 sm:$0xff]  }
 0x23c   : > { %3815 = vmatmul.mubr.bf16.vlgmr.msra.gmra.mrb[0].mxu0 %v516_v22  ;;  %4143 = vmatmul.mubr.bf16.vlgmr.msra.gmra.mrb[0].mxu1 %v516_v22  ;;  %v502_v22 = vld [vmem:[#allocation2 + $0x50] sm:$0xff] }
 0x23d   : > { %3824 = vmatpush1.bf16.msra.mxu0 %v10387_v23  ;;  %4152 = vmatpush1.bf16.msra.mxu1 %v10390_v24  ;;  %v10485_v23 = vld [vmem:[%s12129_s9 + $0xc04] ss:$16 sps:$4 sm:$0xff]   ;;  %v10488_v24 = vld [vmem:[%s12129_s9 + $0xc0c] ss:$16 sps:$4 sm:$0xff]  }
 0x23e   : > { %3825 = vmatprep.subr.bf16.mxu0 %v10395_v25  ;;  %4153 = vmatprep.subr.bf16.mxu1 %v10398_v26  ;;  %v10483_v25 = vld [vmem:[%s12129_s9 + $0xc00] ss:$16 sps:$4 sm:$0xff]   ;;  %v10486_v26 = vld [vmem:[%s12129_s9 + $0xc08] ss:$16 sps:$4 sm:$0xff]  }
 0x23f   : > { %3855 = vmatprep.mubr.bf16.mxu0 %v519_v27  ;;  %4183 = vmatprep.mubr.bf16.mxu1 %v519_v27  ;;  %v518_v27 = vpack.c.bf16 %v502_v22, %v502_v22  ;;  %v10575_v22 = vld [vmem:[%s12129_s9 + $0xde4] ss:$16 sps:$4 sm:$0xff]  }
 0x241   : > { %3826 = vmatpush1.bf16.msra.mxu0 %v10393_v28  ;;  %4154 = vmatpush1.bf16.msra.mxu1 %v10396_v29  ;;  %v10491_v28 = vld [vmem:[%s12129_s9 + $0xc24] ss:$16 sps:$4 sm:$0xff]   ;;  %v505_v29 = vld [vmem:[#allocation2 + $0x68] sm:$0xff] }
 0x242   : > { %3827 = vmatprep.subr.bf16.mxu0 %v10401_v30  ;;  %4155 = vmatprep.subr.bf16.mxu1 %v10404_v31  ;;  %v10494_v30 = vld [vmem:[%s12129_s9 + $0xc2c] ss:$16 sps:$4 sm:$0xff]   ;;  %v521_v31 = vpack.c.bf16 %v505_v29, %v505_v29 }
 0x243   : > { %v507_v29 = vld [vmem:[#allocation2 + $0x78] sm:$0xff] }
 0x245   : > { %3828 = vmatpush1.bf16.msra.mxu0 %v10399_v32  ;;  %4156 = vmatpush1.bf16.msra.mxu1 %v10402_v33  ;;  %v10489_v32 = vld [vmem:[%s12129_s9 + $0xc20] ss:$16 sps:$4 sm:$0xff]   ;;  %v10492_v33 = vld [vmem:[%s12129_s9 + $0xc28] ss:$16 sps:$4 sm:$0xff]  }
 0x246   : > { %3829 = vmatprep.subr.bf16.mxu0 %v10407_v34  ;;  %4157 = vmatprep.subr.bf16.mxu1 %v10410_v35  ;;  %v10497_v34 = vld [vmem:[%s12129_s9 + $0xc44] ss:$16 sps:$4 sm:$0xff]   ;;  %v10500_v35 = vld [vmem:[%s12129_s9 + $0xc4c] ss:$16 sps:$4 sm:$0xff]  }
 0x249   : > { %3830 = vmatpush1.bf16.msra.mxu0 %v10405_v36  ;;  %4158 = vmatpush1.bf16.msra.mxu1 %v10408_v37  ;;  %v10495_v36 = vld [vmem:[%s12129_s9 + $0xc40] ss:$16 sps:$4 sm:$0xff]   ;;  %v10498_v37 = vld [vmem:[%s12129_s9 + $0xc48] ss:$16 sps:$4 sm:$0xff]  }
 0x24a   : > { %3831 = vmatprep.subr.bf16.mxu0 %v10413_v38  ;;  %4159 = vmatprep.subr.bf16.mxu1 %v10416_v39  ;;  %v10503_v38 = vld [vmem:[%s12129_s9 + $0xc64] ss:$16 sps:$4 sm:$0xff]   ;;  %v10506_v39 = vld [vmem:[%s12129_s9 + $0xc6c] ss:$16 sps:$4 sm:$0xff]  }
 0x24d   : > { %3832 = vmatpush1.bf16.msra.mxu0 %v10411_v40  ;;  %4160 = vmatpush1.bf16.msra.mxu1 %v10414_v41  ;;  %v10501_v40 = vld [vmem:[%s12129_s9 + $0xc60] ss:$16 sps:$4 sm:$0xff]   ;;  %v10504_v41 = vld [vmem:[%s12129_s9 + $0xc68] ss:$16 sps:$4 sm:$0xff]  }
 0x24e   : > { %3833 = vmatprep.subr.bf16.mxu0 %v10419_v42  ;;  %4161 = vmatprep.subr.bf16.mxu1 %v10422_v43  ;;  %v10509_v42 = vld [vmem:[%s12129_s9 + $0xc84] ss:$16 sps:$4 sm:$0xff]   ;;  %v10512_v43 = vld [vmem:[%s12129_s9 + $0xc8c] ss:$16 sps:$4 sm:$0xff]  }
 0x251   : > { %3834 = vmatpush1.bf16.msra.mxu0 %v10417_v44  ;;  %4162 = vmatpush1.bf16.msra.mxu1 %v10420_v45  ;;  %v10507_v44 = vld [vmem:[%s12129_s9 + $0xc80] ss:$16 sps:$4 sm:$0xff]   ;;  %v10510_v45 = vld [vmem:[%s12129_s9 + $0xc88] ss:$16 sps:$4 sm:$0xff]  }
 0x252   : > { %3835 = vmatprep.subr.bf16.mxu0 %v10425_v46  ;;  %4163 = vmatprep.subr.bf16.mxu1 %v10428_v47  ;;  %v10515_v46 = vld [vmem:[%s12129_s9 + $0xca4] ss:$16 sps:$4 sm:$0xff]   ;;  %v10518_v47 = vld [vmem:[%s12129_s9 + $0xcac] ss:$16 sps:$4 sm:$0xff]  }
 0x255   : > { %3836 = vmatpush1.bf16.msra.mxu0 %v10423_v48  ;;  %4164 = vmatpush1.bf16.msra.mxu1 %v10426_v49  ;;  %v10513_v48 = vld [vmem:[%s12129_s9 + $0xca0] ss:$16 sps:$4 sm:$0xff]   ;;  %v10516_v49 = vld [vmem:[%s12129_s9 + $0xca8] ss:$16 sps:$4 sm:$0xff]  }
 0x256   : > { %3837 = vmatprep.subr.bf16.mxu0 %v10431_v50  ;;  %4165 = vmatprep.subr.bf16.mxu1 %v10434_v51  ;;  %v10521_v50 = vld [vmem:[%s12129_s9 + $0xcc4] ss:$16 sps:$4 sm:$0xff]   ;;  %v10524_v51 = vld [vmem:[%s12129_s9 + $0xccc] ss:$16 sps:$4 sm:$0xff]  }
 0x259   : > { %3838 = vmatpush1.bf16.msra.mxu0 %v10429_v52  ;;  %4166 = vmatpush1.bf16.msra.mxu1 %v10432_v53  ;;  %v10519_v52 = vld [vmem:[%s12129_s9 + $0xcc0] ss:$16 sps:$4 sm:$0xff]   ;;  %v10522_v53 = vld [vmem:[%s12129_s9 + $0xcc8] ss:$16 sps:$4 sm:$0xff]  }
 0x25a   : > { %3839 = vmatprep.subr.bf16.mxu0 %v10437_v54  ;;  %4167 = vmatprep.subr.bf16.mxu1 %v10440_v55  ;;  %v10527_v54 = vld [vmem:[%s12129_s9 + $0xce4] ss:$16 sps:$4 sm:$0xff]   ;;  %v10530_v55 = vld [vmem:[%s12129_s9 + $0xcec] ss:$16 sps:$4 sm:$0xff]  }
 0x25d   : > { %3840 = vmatpush1.bf16.msra.mxu0 %v10435_v56  ;;  %4168 = vmatpush1.bf16.msra.mxu1 %v10438_v57  ;;  %v10525_v56 = vld [vmem:[%s12129_s9 + $0xce0] ss:$16 sps:$4 sm:$0xff]   ;;  %v10528_v57 = vld [vmem:[%s12129_s9 + $0xce8] ss:$16 sps:$4 sm:$0xff]  }
 0x25e   : > { %3841 = vmatprep.subr.bf16.mxu0 %v10443_v58  ;;  %4169 = vmatprep.subr.bf16.mxu1 %v10446_v59  ;;  %v10533_v58 = vld [vmem:[%s12129_s9 + $0xd04] ss:$16 sps:$4 sm:$0xff]   ;;  %v10536_v59 = vld [vmem:[%s12129_s9 + $0xd0c] ss:$16 sps:$4 sm:$0xff]  }
 0x261   : > { %3842 = vmatpush1.bf16.msra.mxu0 %v10441_v60  ;;  %4170 = vmatpush1.bf16.msra.mxu1 %v10444_v61  ;;  %v10531_v60 = vld [vmem:[%s12129_s9 + $0xd00] ss:$16 sps:$4 sm:$0xff]   ;;  %v10534_v61 = vld [vmem:[%s12129_s9 + $0xd08] ss:$16 sps:$4 sm:$0xff]  }
 0x262   : > { %3843 = vmatprep.subr.bf16.mxu0 %v10449_v62  ;;  %4171 = vmatprep.subr.bf16.mxu1 %v10452_v63  ;;  %v10539_v62 = vld [vmem:[%s12129_s9 + $0xd24] ss:$16 sps:$4 sm:$0xff]   ;;  %v10542_v63 = vld [vmem:[%s12129_s9 + $0xd2c] ss:$16 sps:$4 sm:$0xff]  }
 0x265   : > { %3844 = vmatpush1.bf16.msra.mxu0 %v10447_v0  ;;  %4172 = vmatpush1.bf16.msra.mxu1 %v10450_v1  ;;  %v10537_v0 = vld [vmem:[%s12129_s9 + $0xd20] ss:$16 sps:$4 sm:$0xff]   ;;  %v10540_v1 = vld [vmem:[%s12129_s9 + $0xd28] ss:$16 sps:$4 sm:$0xff]  }
 0x266   : > { %3845 = vmatprep.subr.bf16.mxu0 %v10455_v2  ;;  %4173 = vmatprep.subr.bf16.mxu1 %v10458_v3  ;;  %v10545_v2 = vld [vmem:[%s12129_s9 + $0xd44] ss:$16 sps:$4 sm:$0xff]   ;;  %v10548_v3 = vld [vmem:[%s12129_s9 + $0xd4c] ss:$16 sps:$4 sm:$0xff]  }
 0x269   : > { %3846 = vmatpush1.bf16.msra.mxu0 %v10453_v4  ;;  %4174 = vmatpush1.bf16.msra.mxu1 %v10456_v5  ;;  %v10543_v4 = vld [vmem:[%s12129_s9 + $0xd40] ss:$16 sps:$4 sm:$0xff]   ;;  %v10546_v5 = vld [vmem:[%s12129_s9 + $0xd48] ss:$16 sps:$4 sm:$0xff]  }
 0x26a   : > { %3847 = vmatprep.subr.bf16.mxu0 %v10461_v6  ;;  %4175 = vmatprep.subr.bf16.mxu1 %v10464_v7  ;;  %v10551_v6 = vld [vmem:[%s12129_s9 + $0xd64] ss:$16 sps:$4 sm:$0xff]   ;;  %v10554_v7 = vld [vmem:[%s12129_s9 + $0xd6c] ss:$16 sps:$4 sm:$0xff]  }
 0x26d   : > { %3848 = vmatpush1.bf16.msra.mxu0 %v10459_v8  ;;  %4176 = vmatpush1.bf16.msra.mxu1 %v10462_v9  ;;  %v10549_v8 = vld [vmem:[%s12129_s9 + $0xd60] ss:$16 sps:$4 sm:$0xff]   ;;  %v10552_v9 = vld [vmem:[%s12129_s9 + $0xd68] ss:$16 sps:$4 sm:$0xff]  }
 0x26e   : > { %3849 = vmatprep.subr.bf16.mxu0 %v10467_v10  ;;  %4177 = vmatprep.subr.bf16.mxu1 %v10470_v11  ;;  %v10557_v10 = vld [vmem:[%s12129_s9 + $0xd84] ss:$16 sps:$4 sm:$0xff]   ;;  %v10560_v11 = vld [vmem:[%s12129_s9 + $0xd8c] ss:$16 sps:$4 sm:$0xff]  }
 0x271   : > { %3850 = vmatpush1.bf16.msra.mxu0 %v10465_v12  ;;  %4178 = vmatpush1.bf16.msra.mxu1 %v10468_v13  ;;  %v10555_v12 = vld [vmem:[%s12129_s9 + $0xd80] ss:$16 sps:$4 sm:$0xff]   ;;  %v10558_v13 = vld [vmem:[%s12129_s9 + $0xd88] ss:$16 sps:$4 sm:$0xff]  }
 0x272   : > { %3851 = vmatprep.subr.bf16.mxu0 %v10473_v14  ;;  %4179 = vmatprep.subr.bf16.mxu1 %v10476_v15  ;;  %v10563_v14 = vld [vmem:[%s12129_s9 + $0xda4] ss:$16 sps:$4 sm:$0xff]   ;;  %v10566_v15 = vld [vmem:[%s12129_s9 + $0xdac] ss:$16 sps:$4 sm:$0xff]  }
 0x275   : > { %3852 = vmatpush1.bf16.msra.mxu0 %v10471_v16  ;;  %4180 = vmatpush1.bf16.msra.mxu1 %v10474_v17  ;;  %v10561_v16 = vld [vmem:[%s12129_s9 + $0xda0] ss:$16 sps:$4 sm:$0xff]   ;;  %v10564_v17 = vld [vmem:[%s12129_s9 + $0xda8] ss:$16 sps:$4 sm:$0xff]  }
 0x276   : > { %3853 = vmatprep.subr.bf16.mxu0 %v10479_v18  ;;  %4181 = vmatprep.subr.bf16.mxu1 %v10482_v19  ;;  %v10569_v18 = vld [vmem:[%s12129_s9 + $0xdc4] ss:$16 sps:$4 sm:$0xff]   ;;  %v10572_v19 = vld [vmem:[%s12129_s9 + $0xdcc] ss:$16 sps:$4 sm:$0xff]  }
 0x279   : > { %3854 = vmatpush1.bf16.msra.mxu0 %v10477_v20  ;;  %4182 = vmatpush1.bf16.msra.mxu1 %v10480_v21  ;;  %v10567_v20 = vld [vmem:[%s12129_s9 + $0xdc0] ss:$16 sps:$4 sm:$0xff]   ;;  %v10570_v21 = vld [vmem:[%s12129_s9 + $0xdc8] ss:$16 sps:$4 sm:$0xff]  }
 0x27a   : > { %3864 = vmatprep.subr.bf16.mxu0 %v10485_v23  ;;  %4192 = vmatprep.subr.bf16.mxu1 %v10488_v24  ;;  %v10578_v23 = vld [vmem:[%s12129_s9 + $0xdec] ss:$16 sps:$4 sm:$0xff]   ;;  %v10573_v24 = vld [vmem:[%s12129_s9 + $0xde0] ss:$16 sps:$4 sm:$0xff]  }
 0x27c   : > { %3856 = vmatmul.mubr.bf16.vlgmr.msra.gmra.mrb[0].mxu0 %v518_v27  ;;  %4184 = vmatmul.mubr.bf16.vlgmr.msra.gmra.mrb[0].mxu1 %v518_v27  ;;  %v10581_v27 = vld [vmem:[%s12129_s9 + $0xe04] ss:$16 sps:$4 sm:$0xff]  }
 0x27d   : > { %3865 = vmatpush1.bf16.msra.mxu0 %v10483_v25  ;;  %4193 = vmatpush1.bf16.msra.mxu1 %v10486_v26  ;;  %v10576_v25 = vld [vmem:[%s12129_s9 + $0xde8] ss:$16 sps:$4 sm:$0xff]   ;;  %v504_v26 = vld [vmem:[#allocation2 + $0x60] sm:$0xff] }
 0x27e   : > { %3866 = vmatprep.subr.bf16.mxu0 %v10491_v28  ;;  %4194 = vmatprep.subr.bf16.mxu1 %v10494_v30  ;;  %v10584_v28 = vld [vmem:[%s12129_s9 + $0xe0c] ss:$16 sps:$4 sm:$0xff]   ;;  %v10579_v30 = vld [vmem:[%s12129_s9 + $0xe00] ss:$16 sps:$4 sm:$0xff]  }
 0x27f   : > { %3896 = vmatprep.mubr.bf16.mxu0 %v521_v31  ;;  %4224 = vmatprep.mubr.bf16.mxu1 %v521_v31  ;;  %v10582_v31 = vld [vmem:[%s12129_s9 + $0xe08] ss:$16 sps:$4 sm:$0xff]  }
 0x281   : > { %3867 = vmatpush1.bf16.msra.mxu0 %v10489_v32  ;;  %4195 = vmatpush1.bf16.msra.mxu1 %v10492_v33  ;;  %v520_v32 = vpack.c.bf16 %v504_v26, %v504_v26  ;;  %v10587_v33 = vld [vmem:[%s12129_s9 + $0xe24] ss:$16 sps:$4 sm:$0xff]  }
 0x282   : > { %3868 = vmatprep.subr.bf16.mxu0 %v10497_v34  ;;  %4196 = vmatprep.subr.bf16.mxu1 %v10500_v35  ;;  %v10590_v34 = vld [vmem:[%s12129_s9 + $0xe2c] ss:$16 sps:$4 sm:$0xff]   ;;  %v10585_v35 = vld [vmem:[%s12129_s9 + $0xe20] ss:$16 sps:$4 sm:$0xff]   ;;  %v10671_v26 = vld [vmem:[%s12129_s9 + $0xfe4] ss:$16 sps:$4 sm:$0xff]  }
 0x285   : > { %3869 = vmatpush1.bf16.msra.mxu0 %v10495_v36  ;;  %4197 = vmatpush1.bf16.msra.mxu1 %v10498_v37  ;;  %v10588_v36 = vld [vmem:[%s12129_s9 + $0xe28] ss:$16 sps:$4 sm:$0xff]   ;;  %v523_v37 = vpack.c.bf16 %v507_v29, %v507_v29 }
 0x286   : > { %3870 = vmatprep.subr.bf16.mxu0 %v10503_v38  ;;  %4198 = vmatprep.subr.bf16.mxu1 %v10506_v39  ;;  %v10593_v38 = vld [vmem:[%s12129_s9 + $0xe44] ss:$16 sps:$4 sm:$0xff]   ;;  %v10596_v39 = vld [vmem:[%s12129_s9 + $0xe4c] ss:$16 sps:$4 sm:$0xff]   ;;  %v10672_v29 = vld [vmem:[%s12129_s9 + $0xfe8] ss:$16 sps:$4 sm:$0xff]  }
 0x289   : > { %3871 = vmatpush1.bf16.msra.mxu0 %v10501_v40  ;;  %4199 = vmatpush1.bf16.msra.mxu1 %v10504_v41  ;;  %v10591_v40 = vld [vmem:[%s12129_s9 + $0xe40] ss:$16 sps:$4 sm:$0xff]   ;;  %v10594_v41 = vld [vmem:[%s12129_s9 + $0xe48] ss:$16 sps:$4 sm:$0xff]  }
 0x28a   : > { %3872 = vmatprep.subr.bf16.mxu0 %v10509_v42  ;;  %4200 = vmatprep.subr.bf16.mxu1 %v10512_v43  ;;  %v10599_v42 = vld [vmem:[%s12129_s9 + $0xe64] ss:$16 sps:$4 sm:$0xff]   ;;  %v10602_v43 = vld [vmem:[%s12129_s9 + $0xe6c] ss:$16 sps:$4 sm:$0xff]  }
 0x28d   : > { %3873 = vmatpush1.bf16.msra.mxu0 %v10507_v44  ;;  %4201 = vmatpush1.bf16.msra.mxu1 %v10510_v45  ;;  %v10597_v44 = vld [vmem:[%s12129_s9 + $0xe60] ss:$16 sps:$4 sm:$0xff]   ;;  %v10600_v45 = vld [vmem:[%s12129_s9 + $0xe68] ss:$16 sps:$4 sm:$0xff]  }
 0x28e   : > { %3874 = vmatprep.subr.bf16.mxu0 %v10515_v46  ;;  %4202 = vmatprep.subr.bf16.mxu1 %v10518_v47  ;;  %v10605_v46 = vld [vmem:[%s12129_s9 + $0xe84] ss:$16 sps:$4 sm:$0xff]   ;;  %v10608_v47 = vld [vmem:[%s12129_s9 + $0xe8c] ss:$16 sps:$4 sm:$0xff]  }
 0x291   : > { %3875 = vmatpush1.bf16.msra.mxu0 %v10513_v48  ;;  %4203 = vmatpush1.bf16.msra.mxu1 %v10516_v49  ;;  %v10603_v48 = vld [vmem:[%s12129_s9 + $0xe80] ss:$16 sps:$4 sm:$0xff]   ;;  %v10606_v49 = vld [vmem:[%s12129_s9 + $0xe88] ss:$16 sps:$4 sm:$0xff]  }
 0x292   : > { %3876 = vmatprep.subr.bf16.mxu0 %v10521_v50  ;;  %4204 = vmatprep.subr.bf16.mxu1 %v10524_v51  ;;  %v10611_v50 = vld [vmem:[%s12129_s9 + $0xea4] ss:$16 sps:$4 sm:$0xff]   ;;  %v10614_v51 = vld [vmem:[%s12129_s9 + $0xeac] ss:$16 sps:$4 sm:$0xff]  }
 0x295   : > { %3877 = vmatpush1.bf16.msra.mxu0 %v10519_v52  ;;  %4205 = vmatpush1.bf16.msra.mxu1 %v10522_v53  ;;  %v10609_v52 = vld [vmem:[%s12129_s9 + $0xea0] ss:$16 sps:$4 sm:$0xff]   ;;  %v10612_v53 = vld [vmem:[%s12129_s9 + $0xea8] ss:$16 sps:$4 sm:$0xff]  }
 0x296   : > { %3878 = vmatprep.subr.bf16.mxu0 %v10527_v54  ;;  %4206 = vmatprep.subr.bf16.mxu1 %v10530_v55  ;;  %v10617_v54 = vld [vmem:[%s12129_s9 + $0xec4] ss:$16 sps:$4 sm:$0xff]   ;;  %v10620_v55 = vld [vmem:[%s12129_s9 + $0xecc] ss:$16 sps:$4 sm:$0xff]  }
 0x299   : > { %3879 = vmatpush1.bf16.msra.mxu0 %v10525_v56  ;;  %4207 = vmatpush1.bf16.msra.mxu1 %v10528_v57  ;;  %v10615_v56 = vld [vmem:[%s12129_s9 + $0xec0] ss:$16 sps:$4 sm:$0xff]   ;;  %v10618_v57 = vld [vmem:[%s12129_s9 + $0xec8] ss:$16 sps:$4 sm:$0xff]  }
 0x29a   : > { %3880 = vmatprep.subr.bf16.mxu0 %v10533_v58  ;;  %4208 = vmatprep.subr.bf16.mxu1 %v10536_v59  ;;  %v10623_v58 = vld [vmem:[%s12129_s9 + $0xee4] ss:$16 sps:$4 sm:$0xff]   ;;  %v10626_v59 = vld [vmem:[%s12129_s9 + $0xeec] ss:$16 sps:$4 sm:$0xff]  }
 0x29d   : > { %3881 = vmatpush1.bf16.msra.mxu0 %v10531_v60  ;;  %4209 = vmatpush1.bf16.msra.mxu1 %v10534_v61  ;;  %v10621_v60 = vld [vmem:[%s12129_s9 + $0xee0] ss:$16 sps:$4 sm:$0xff]   ;;  %v10624_v61 = vld [vmem:[%s12129_s9 + $0xee8] ss:$16 sps:$4 sm:$0xff]  }
 0x29e   : > { %3882 = vmatprep.subr.bf16.mxu0 %v10539_v62  ;;  %4210 = vmatprep.subr.bf16.mxu1 %v10542_v63  ;;  %v10629_v62 = vld [vmem:[%s12129_s9 + $0xf04] ss:$16 sps:$4 sm:$0xff]   ;;  %v10632_v63 = vld [vmem:[%s12129_s9 + $0xf0c] ss:$16 sps:$4 sm:$0xff]  }
 0x2a1   : > { %3883 = vmatpush1.bf16.msra.mxu0 %v10537_v0  ;;  %4211 = vmatpush1.bf16.msra.mxu1 %v10540_v1  ;;  %v10627_v0 = vld [vmem:[%s12129_s9 + $0xf00] ss:$16 sps:$4 sm:$0xff]   ;;  %v10630_v1 = vld [vmem:[%s12129_s9 + $0xf08] ss:$16 sps:$4 sm:$0xff]  }
 0x2a2   : > { %3884 = vmatprep.subr.bf16.mxu0 %v10545_v2  ;;  %4212 = vmatprep.subr.bf16.mxu1 %v10548_v3  ;;  %v10635_v2 = vld [vmem:[%s12129_s9 + $0xf24] ss:$16 sps:$4 sm:$0xff]   ;;  %v10638_v3 = vld [vmem:[%s12129_s9 + $0xf2c] ss:$16 sps:$4 sm:$0xff]  }
 0x2a5   : > { %3885 = vmatpush1.bf16.msra.mxu0 %v10543_v4  ;;  %4213 = vmatpush1.bf16.msra.mxu1 %v10546_v5  ;;  %v10633_v4 = vld [vmem:[%s12129_s9 + $0xf20] ss:$16 sps:$4 sm:$0xff]   ;;  %v10636_v5 = vld [vmem:[%s12129_s9 + $0xf28] ss:$16 sps:$4 sm:$0xff]  }
 0x2a6   : > { %3886 = vmatprep.subr.bf16.mxu0 %v10551_v6  ;;  %4214 = vmatprep.subr.bf16.mxu1 %v10554_v7  ;;  %v10641_v6 = vld [vmem:[%s12129_s9 + $0xf44] ss:$16 sps:$4 sm:$0xff]   ;;  %v10644_v7 = vld [vmem:[%s12129_s9 + $0xf4c] ss:$16 sps:$4 sm:$0xff]  }
 0x2a9   : > { %3887 = vmatpush1.bf16.msra.mxu0 %v10549_v8  ;;  %4215 = vmatpush1.bf16.msra.mxu1 %v10552_v9  ;;  %v10639_v8 = vld [vmem:[%s12129_s9 + $0xf40] ss:$16 sps:$4 sm:$0xff]   ;;  %v10642_v9 = vld [vmem:[%s12129_s9 + $0xf48] ss:$16 sps:$4 sm:$0xff]  }
 0x2aa   : > { %3888 = vmatprep.subr.bf16.mxu0 %v10557_v10  ;;  %4216 = vmatprep.subr.bf16.mxu1 %v10560_v11  ;;  %v10647_v10 = vld [vmem:[%s12129_s9 + $0xf64] ss:$16 sps:$4 sm:$0xff]   ;;  %v10650_v11 = vld [vmem:[%s12129_s9 + $0xf6c] ss:$16 sps:$4 sm:$0xff]  }
 0x2ad   : > { %3889 = vmatpush1.bf16.msra.mxu0 %v10555_v12  ;;  %4217 = vmatpush1.bf16.msra.mxu1 %v10558_v13  ;;  %v10645_v12 = vld [vmem:[%s12129_s9 + $0xf60] ss:$16 sps:$4 sm:$0xff]   ;;  %v10648_v13 = vld [vmem:[%s12129_s9 + $0xf68] ss:$16 sps:$4 sm:$0xff]  }
 0x2ae   : > { %3890 = vmatprep.subr.bf16.mxu0 %v10563_v14  ;;  %4218 = vmatprep.subr.bf16.mxu1 %v10566_v15  ;;  %v10653_v14 = vld [vmem:[%s12129_s9 + $0xf84] ss:$16 sps:$4 sm:$0xff]   ;;  %v10656_v15 = vld [vmem:[%s12129_s9 + $0xf8c] ss:$16 sps:$4 sm:$0xff]  }
 0x2b1   : > { %3891 = vmatpush1.bf16.msra.mxu0 %v10561_v16  ;;  %4219 = vmatpush1.bf16.msra.mxu1 %v10564_v17  ;;  %v10651_v16 = vld [vmem:[%s12129_s9 + $0xf80] ss:$16 sps:$4 sm:$0xff]   ;;  %v10654_v17 = vld [vmem:[%s12129_s9 + $0xf88] ss:$16 sps:$4 sm:$0xff]  }
 0x2b2   : > { %3892 = vmatprep.subr.bf16.mxu0 %v10569_v18  ;;  %4220 = vmatprep.subr.bf16.mxu1 %v10572_v19  ;;  %v10659_v18 = vld [vmem:[%s12129_s9 + $0xfa4] ss:$16 sps:$4 sm:$0xff]   ;;  %v10662_v19 = vld [vmem:[%s12129_s9 + $0xfac] ss:$16 sps:$4 sm:$0xff]  }
 0x2b5   : > { %3893 = vmatpush1.bf16.msra.mxu0 %v10567_v20  ;;  %4221 = vmatpush1.bf16.msra.mxu1 %v10570_v21  ;;  %v10657_v20 = vld [vmem:[%s12129_s9 + $0xfa0] ss:$16 sps:$4 sm:$0xff]   ;;  %v10660_v21 = vld [vmem:[%s12129_s9 + $0xfa8] ss:$16 sps:$4 sm:$0xff]  }
 0x2b6   : > { %3894 = vmatprep.subr.bf16.mxu0 %v10575_v22  ;;  %4222 = vmatprep.subr.bf16.mxu1 %v10578_v23  ;;  %v10665_v22 = vld [vmem:[%s12129_s9 + $0xfc4] ss:$16 sps:$4 sm:$0xff]   ;;  %v10668_v23 = vld [vmem:[%s12129_s9 + $0xfcc] ss:$16 sps:$4 sm:$0xff]  }
 0x2b9   : > { %3895 = vmatpush1.bf16.msra.mxu0 %v10573_v24  ;;  %4223 = vmatpush1.bf16.msra.mxu1 %v10576_v25  ;;  %v10663_v24 = vld [vmem:[%s12129_s9 + $0xfc0] ss:$16 sps:$4 sm:$0xff]   ;;  %v10666_v25 = vld [vmem:[%s12129_s9 + $0xfc8] ss:$16 sps:$4 sm:$0xff]  }
 0x2ba   : > { %3905 = vmatprep.subr.bf16.mxu0 %v10581_v27  ;;  %4233 = vmatprep.subr.bf16.mxu1 %v10584_v28  ;;  %v10674_v27 = vld [vmem:[%s12129_s9 + $0xfec] ss:$16 sps:$4 sm:$0xff]   ;;  %v10669_v28 = vld [vmem:[%s12129_s9 + $0xfe0] ss:$16 sps:$4 sm:$0xff]   ;;  %s11689_s9 = scalar_lea.vmem %s11688_s26, 64 }
 0x2bb   : > { %p11691_p0 = scmp.lt.s32.totalorder %s11689_s9, %s11683_s29 }
 0x2bc   : > { %3897 = vmatmul.mubr.bf16.vlgmr.msra.gmra.mrb[0].mxu0 %v520_v32  ;;  %4225 = vmatmul.mubr.bf16.vlgmr.msra.gmra.mrb[0].mxu1 %v520_v32  ;;  %v10680_v32 = vld [vmem:[%s12138_s23 + $0x604] ss:$16 sps:$4 sm:$0xff]  }
 0x2bd   : > { %3906 = vmatpush1.bf16.msra.mxu0 %v10579_v30  ;;  %4234 = vmatpush1.bf16.msra.mxu1 %v10582_v31  ;;  %v506_v30 = vld [vmem:[#allocation2 + $0x70] sm:$0xff]  ;;  %v10677_v31 = vld [vmem:[%s12138_s23 + $0x404] ss:$16 sps:$4 sm:$0xff]   ;;  %p11692_p1 = por %p11691_p0, %p11690_p9 }
 0x2be   : > { %3907 = vmatprep.subr.bf16.mxu0 %v10587_v33  ;;  %4235 = vmatprep.subr.bf16.mxu1 %v10590_v34  ;;  %v10675_v33 = vld [vmem:[%s12138_s23 + $0x400] ss:$16 sps:$4 sm:$0xff]  }
 0x2bf   : > { %3937 = vmatprep.mubr.bf16.mxu0 %v523_v37  ;;  %4265 = vmatprep.mubr.bf16.mxu1 %v523_v37  ;;  %v10678_v34 = vld [vmem:[%s12138_s23 + $0x600] ss:$16 sps:$4 sm:$0xff]   ;;  %v10686_v37 = vld [vmem:[%s12138_s23 + $0x624] ss:$16 sps:$4 sm:$0xff]   ;;  %p11693_p6 = pnand %p11692_p1, %p11686_p8 }
 0x2c1   : > { %3908 = vmatpush1.bf16.msra.mxu0 %v10585_v35  ;;  %4236 = vmatpush1.bf16.msra.mxu1 %v10588_v36  ;;  %v522_v35 = vpack.c.bf16 %v506_v30, %v506_v30  ;;  %v10683_v36 = vld [vmem:[%s12138_s23 + $0x424] ss:$16 sps:$4 sm:$0xff]   ;;  %v10765_v30 = vld [vmem:[%s12138_s23 + $0x5e0] ss:$16 sps:$4 sm:$0xff]  }
 0x2c2   : > { %3909 = vmatprep.subr.bf16.mxu0 %v10593_v38  ;;  %4237 = vmatprep.subr.bf16.mxu1 %v10596_v39  ;;  %v10681_v38 = vld [vmem:[%s12138_s23 + $0x420] ss:$16 sps:$4 sm:$0xff]  }
 0x2c3   : > { %v10684_v39 = vld [vmem:[%s12138_s23 + $0x620] ss:$16 sps:$4 sm:$0xff]  }
 0x2c5   : > { %3910 = vmatpush1.bf16.msra.mxu0 %v10591_v40  ;;  %4238 = vmatpush1.bf16.msra.mxu1 %v10594_v41  ;;  %v10689_v40 = vld [vmem:[%s12138_s23 + $0x444] ss:$16 sps:$4 sm:$0xff]  }
 0x2c6   : > { %3911 = vmatprep.subr.bf16.mxu0 %v10599_v42  ;;  %4239 = vmatprep.subr.bf16.mxu1 %v10602_v43  ;;  %v10692_v41 = vld [vmem:[%s12138_s23 + $0x644] ss:$16 sps:$4 sm:$0xff]   ;;  %v10687_v42 = vld [vmem:[%s12138_s23 + $0x440] ss:$16 sps:$4 sm:$0xff]  }
 0x2c7   : > { %v10690_v43 = vld [vmem:[%s12138_s23 + $0x640] ss:$16 sps:$4 sm:$0xff]  }
 0x2c9   : > { %3912 = vmatpush1.bf16.msra.mxu0 %v10597_v44  ;;  %4240 = vmatpush1.bf16.msra.mxu1 %v10600_v45  ;;  %v10695_v44 = vld [vmem:[%s12138_s23 + $0x464] ss:$16 sps:$4 sm:$0xff]  }
 0x2ca   : > { %3913 = vmatprep.subr.bf16.mxu0 %v10605_v46  ;;  %4241 = vmatprep.subr.bf16.mxu1 %v10608_v47  ;;  %v10698_v45 = vld [vmem:[%s12138_s23 + $0x664] ss:$16 sps:$4 sm:$0xff]   ;;  %v10693_v46 = vld [vmem:[%s12138_s23 + $0x460] ss:$16 sps:$4 sm:$0xff]  }
 0x2cb   : > { %v10696_v47 = vld [vmem:[%s12138_s23 + $0x660] ss:$16 sps:$4 sm:$0xff]  }
 0x2cd   : > { %3914 = vmatpush1.bf16.msra.mxu0 %v10603_v48  ;;  %4242 = vmatpush1.bf16.msra.mxu1 %v10606_v49  ;;  %v10701_v48 = vld [vmem:[%s12138_s23 + $0x484] ss:$16 sps:$4 sm:$0xff]  }
 0x2ce   : > { %3915 = vmatprep.subr.bf16.mxu0 %v10611_v50  ;;  %4243 = vmatprep.subr.bf16.mxu1 %v10614_v51  ;;  %v10704_v49 = vld [vmem:[%s12138_s23 + $0x684] ss:$16 sps:$4 sm:$0xff]   ;;  %v10699_v50 = vld [vmem:[%s12138_s23 + $0x480] ss:$16 sps:$4 sm:$0xff]  }
 0x2cf   : > { %v10702_v51 = vld [vmem:[%s12138_s23 + $0x680] ss:$16 sps:$4 sm:$0xff]  }
 0x2d1   : > { %3916 = vmatpush1.bf16.msra.mxu0 %v10609_v52  ;;  %4244 = vmatpush1.bf16.msra.mxu1 %v10612_v53  ;;  %v10707_v52 = vld [vmem:[%s12138_s23 + $0x4a4] ss:$16 sps:$4 sm:$0xff]  }
 0x2d2   : > { %3917 = vmatprep.subr.bf16.mxu0 %v10617_v54  ;;  %4245 = vmatprep.subr.bf16.mxu1 %v10620_v55  ;;  %v10710_v53 = vld [vmem:[%s12138_s23 + $0x6a4] ss:$16 sps:$4 sm:$0xff]   ;;  %v10705_v54 = vld [vmem:[%s12138_s23 + $0x4a0] ss:$16 sps:$4 sm:$0xff]  }
 0x2d3   : > { %v10708_v55 = vld [vmem:[%s12138_s23 + $0x6a0] ss:$16 sps:$4 sm:$0xff]  }
 0x2d5   : > { %3918 = vmatpush1.bf16.msra.mxu0 %v10615_v56  ;;  %4246 = vmatpush1.bf16.msra.mxu1 %v10618_v57  ;;  %v10713_v56 = vld [vmem:[%s12138_s23 + $0x4c4] ss:$16 sps:$4 sm:$0xff]  }
 0x2d6   : > { %3919 = vmatprep.subr.bf16.mxu0 %v10623_v58  ;;  %4247 = vmatprep.subr.bf16.mxu1 %v10626_v59  ;;  %v10716_v57 = vld [vmem:[%s12138_s23 + $0x6c4] ss:$16 sps:$4 sm:$0xff]   ;;  %v10711_v58 = vld [vmem:[%s12138_s23 + $0x4c0] ss:$16 sps:$4 sm:$0xff]  }
 0x2d7   : > { %v10714_v59 = vld [vmem:[%s12138_s23 + $0x6c0] ss:$16 sps:$4 sm:$0xff]  }
 0x2d9   : > { %3920 = vmatpush1.bf16.msra.mxu0 %v10621_v60  ;;  %4248 = vmatpush1.bf16.msra.mxu1 %v10624_v61  ;;  %v10719_v60 = vld [vmem:[%s12138_s23 + $0x4e4] ss:$16 sps:$4 sm:$0xff]  }
 0x2da   : > { %3921 = vmatprep.subr.bf16.mxu0 %v10629_v62  ;;  %4249 = vmatprep.subr.bf16.mxu1 %v10632_v63  ;;  %v10722_v61 = vld [vmem:[%s12138_s23 + $0x6e4] ss:$16 sps:$4 sm:$0xff]   ;;  %v10717_v62 = vld [vmem:[%s12138_s23 + $0x4e0] ss:$16 sps:$4 sm:$0xff]  }
 0x2db   : > { %v10720_v63 = vld [vmem:[%s12138_s23 + $0x6e0] ss:$16 sps:$4 sm:$0xff]  }
 0x2dd   : > { %3922 = vmatpush1.bf16.msra.mxu0 %v10627_v0  ;;  %4250 = vmatpush1.bf16.msra.mxu1 %v10630_v1  ;;  %v10725_v0 = vld [vmem:[%s12138_s23 + $0x504] ss:$16 sps:$4 sm:$0xff]  }
 0x2de   : > { %3923 = vmatprep.subr.bf16.mxu0 %v10635_v2  ;;  %4251 = vmatprep.subr.bf16.mxu1 %v10638_v3  ;;  %v10728_v1 = vld [vmem:[%s12138_s23 + $0x704] ss:$16 sps:$4 sm:$0xff]   ;;  %v10723_v2 = vld [vmem:[%s12138_s23 + $0x500] ss:$16 sps:$4 sm:$0xff]  }
 0x2df   : > { %v10726_v3 = vld [vmem:[%s12138_s23 + $0x700] ss:$16 sps:$4 sm:$0xff]  }
 0x2e1   : > { %3924 = vmatpush1.bf16.msra.mxu0 %v10633_v4  ;;  %4252 = vmatpush1.bf16.msra.mxu1 %v10636_v5  ;;  %v10731_v4 = vld [vmem:[%s12138_s23 + $0x524] ss:$16 sps:$4 sm:$0xff]  }
 0x2e2   : > { %3925 = vmatprep.subr.bf16.mxu0 %v10641_v6  ;;  %4253 = vmatprep.subr.bf16.mxu1 %v10644_v7  ;;  %v10734_v5 = vld [vmem:[%s12138_s23 + $0x724] ss:$16 sps:$4 sm:$0xff]   ;;  %v10729_v6 = vld [vmem:[%s12138_s23 + $0x520] ss:$16 sps:$4 sm:$0xff]  }
 0x2e3   : > { %v10732_v7 = vld [vmem:[%s12138_s23 + $0x720] ss:$16 sps:$4 sm:$0xff]  }
 0x2e5   : > { %3926 = vmatpush1.bf16.msra.mxu0 %v10639_v8  ;;  %4254 = vmatpush1.bf16.msra.mxu1 %v10642_v9  ;;  %v10737_v8 = vld [vmem:[%s12138_s23 + $0x544] ss:$16 sps:$4 sm:$0xff]  }
 0x2e6   : > { %3927 = vmatprep.subr.bf16.mxu0 %v10647_v10  ;;  %4255 = vmatprep.subr.bf16.mxu1 %v10650_v11  ;;  %v10740_v9 = vld [vmem:[%s12138_s23 + $0x744] ss:$16 sps:$4 sm:$0xff]   ;;  %v10735_v10 = vld [vmem:[%s12138_s23 + $0x540] ss:$16 sps:$4 sm:$0xff]  }
 0x2e7   : > { %v10738_v11 = vld [vmem:[%s12138_s23 + $0x740] ss:$16 sps:$4 sm:$0xff]  }
 0x2e9   : > { %3928 = vmatpush1.bf16.msra.mxu0 %v10645_v12  ;;  %4256 = vmatpush1.bf16.msra.mxu1 %v10648_v13  ;;  %v10743_v12 = vld [vmem:[%s12138_s23 + $0x564] ss:$16 sps:$4 sm:$0xff]  }
 0x2ea   : > { %3929 = vmatprep.subr.bf16.mxu0 %v10653_v14  ;;  %4257 = vmatprep.subr.bf16.mxu1 %v10656_v15  ;;  %v10746_v13 = vld [vmem:[%s12138_s23 + $0x764] ss:$16 sps:$4 sm:$0xff]   ;;  %v10741_v14 = vld [vmem:[%s12138_s23 + $0x560] ss:$16 sps:$4 sm:$0xff]  }
 0x2eb   : > { %v10744_v15 = vld [vmem:[%s12138_s23 + $0x760] ss:$16 sps:$4 sm:$0xff]  }
 0x2ed   : > { %3930 = vmatpush1.bf16.msra.mxu0 %v10651_v16  ;;  %4258 = vmatpush1.bf16.msra.mxu1 %v10654_v17  ;;  %v10749_v16 = vld [vmem:[%s12138_s23 + $0x584] ss:$16 sps:$4 sm:$0xff]  }
 0x2ee   : > { %3931 = vmatprep.subr.bf16.mxu0 %v10659_v18  ;;  %4259 = vmatprep.subr.bf16.mxu1 %v10662_v19  ;;  %v10752_v17 = vld [vmem:[%s12138_s23 + $0x784] ss:$16 sps:$4 sm:$0xff]   ;;  %v10747_v18 = vld [vmem:[%s12138_s23 + $0x580] ss:$16 sps:$4 sm:$0xff]  }
 0x2ef   : > { %v10750_v19 = vld [vmem:[%s12138_s23 + $0x780] ss:$16 sps:$4 sm:$0xff]  }
 0x2f1   : > { %3932 = vmatpush1.bf16.msra.mxu0 %v10657_v20  ;;  %4260 = vmatpush1.bf16.msra.mxu1 %v10660_v21  ;;  %v10755_v20 = vld [vmem:[%s12138_s23 + $0x5a4] ss:$16 sps:$4 sm:$0xff]  }
 0x2f2   : > { %3933 = vmatprep.subr.bf16.mxu0 %v10665_v22  ;;  %4261 = vmatprep.subr.bf16.mxu1 %v10668_v23  ;;  %v10758_v21 = vld [vmem:[%s12138_s23 + $0x7a4] ss:$16 sps:$4 sm:$0xff]   ;;  %v10753_v22 = vld [vmem:[%s12138_s23 + $0x5a0] ss:$16 sps:$4 sm:$0xff]  }
 0x2f3   : > { %v10756_v23 = vld [vmem:[%s12138_s23 + $0x7a0] ss:$16 sps:$4 sm:$0xff]  }
 0x2f5   : > { %3934 = vmatpush1.bf16.msra.mxu0 %v10663_v24  ;;  %4262 = vmatpush1.bf16.msra.mxu1 %v10666_v25  ;;  %v10761_v24 = vld [vmem:[%s12138_s23 + $0x5c4] ss:$16 sps:$4 sm:$0xff]  }
 0x2f6   : > { %3935 = vmatprep.subr.bf16.mxu0 %v10671_v26  ;;  %4263 = vmatprep.subr.bf16.mxu1 %v10674_v27  ;;  %v10764_v25 = vld [vmem:[%s12138_s23 + $0x7c4] ss:$16 sps:$4 sm:$0xff]   ;;  %v10759_v26 = vld [vmem:[%s12138_s23 + $0x5c0] ss:$16 sps:$4 sm:$0xff]  }
 0x2f7   : > { %v10762_v27 = vld [vmem:[%s12138_s23 + $0x7c0] ss:$16 sps:$4 sm:$0xff]  }
 0x2f9   : > { %3936 = vmatpush1.bf16.msra.mxu0 %v10669_v28  ;;  %4264 = vmatpush1.bf16.msra.mxu1 %v10672_v29  ;;  %v10767_v28 = vld [vmem:[%s12138_s23 + $0x5e4] ss:$16 sps:$4 sm:$0xff]  }
 0x2fa   : > { %5190 = vmatprep.subr.bf16.mxu0 %v10677_v31  ;;  %5231 = vmatprep.subr.bf16.mxu1 %v10680_v32  ;;  %v10770_v29 = vld [vmem:[%s12138_s23 + $0x7e4] ss:$16 sps:$4 sm:$0xff]   ;;  %v10768_v31 = vld [vmem:[%s12138_s23 + $0x7e0] ss:$16 sps:$4 sm:$0xff]   ;;  %v10773_v32 = vld [vmem:[%s12138_s23 + $0x40c] ss:$16 sps:$4 sm:$0xff]  }
 0x2fc   : > { %3938 = vmatmul.mubr.bf16.vlgmr.msra.gmra.mrb[0].mxu0 %v522_v35  ;;  %4266 = vmatmul.mubr.bf16.vlgmr.msra.gmra.mrb[0].mxu1 %v522_v35 }
 0x2fd   : > { %5191 = vmatpush1.bf16.msra.mxu0 %v10675_v33  ;;  %5232 = vmatpush1.bf16.msra.mxu1 %v10678_v34  ;;  %v10776_v33 = vld [vmem:[%s12138_s23 + $0x60c] ss:$16 sps:$4 sm:$0xff]   ;;  %v1038_v34 = vlaneseq }
 0x2fe   : > { %5192 = vmatprep.subr.bf16.mxu0 %v10683_v36  ;;  %5233 = vmatprep.subr.bf16.mxu1 %v10686_v37 }
 0x2ff   : > { %v12731_v35 = vshrl.u32 %v1038_v34, 7  ;;  %v10816_v34 = vld [vmem:[%s12138_s23 + $0x6e8] ss:$16 sps:$4 sm:$0xff]  }
 0x301   : > { %5193 = vmatpush1.bf16.msra.mxu0 %v10681_v38  ;;  %5234 = vmatpush1.bf16.msra.mxu1 %v10684_v39  ;;  %v1040_v36 = vsub.s32 0, %v12731_v35  ;;  %v1048_v37 = vsub.s32 2, %v12731_v35  ;;  %v1036_v38 = vld [vmem:[%s12136_s13] sm:$0xf]  ;;  %v1044_v39 = vsub.s32 1, %v12731_v35 }
 0x302   : > { %5194 = vmatprep.subr.bf16.mxu0 %v10689_v40  ;;  %5235 = vmatprep.subr.bf16.mxu1 %v10692_v41  ;;  %v1052_v40 = vsub.s32 3, %v12731_v35 }
 0x303   : > { %v1041_v41 = vrot.slane %v1036_v38, %v1040_v36 }
 0x305   : > { %5195 = vmatpush1.bf16.msra.mxu0 %v10687_v42  ;;  %5236 = vmatpush1.bf16.msra.mxu1 %v10690_v43  ;;  %v1049_v42 = vrot.slane %v1036_v38, %v1048_v37  ;;  %v1045_v43 = vrot.slane %v1036_v38, %v1044_v39 }
 0x306   : > { %5196 = vmatprep.subr.bf16.mxu0 %v10695_v44  ;;  %5237 = vmatprep.subr.bf16.mxu1 %v10698_v45  ;;  %v1053_v44 = vrot.slane %v1036_v38, %v1052_v40  ;;  %v10821_v38 = vld [vmem:[%s12138_s23 + $0x50c] ss:$16 sps:$4 sm:$0xff]  }
 0x309   : > { %5197 = vmatpush1.bf16.msra.mxu0 %v10693_v46  ;;  %5238 = vmatpush1.bf16.msra.mxu1 %v10696_v47 }
 0x30a   : > { %5198 = vmatprep.subr.bf16.mxu0 %v10701_v48  ;;  %5239 = vmatprep.subr.bf16.mxu1 %v10704_v49 }
 0x30d   : > { %5199 = vmatpush1.bf16.msra.mxu0 %v10699_v50  ;;  %5240 = vmatpush1.bf16.msra.mxu1 %v10702_v51 }
 0x30e   : > { %5200 = vmatprep.subr.bf16.mxu0 %v10707_v52  ;;  %5241 = vmatprep.subr.bf16.mxu1 %v10710_v53 }
 0x311   : > { %5201 = vmatpush1.bf16.msra.mxu0 %v10705_v54  ;;  %5242 = vmatpush1.bf16.msra.mxu1 %v10708_v55 }
 0x312   : > { %5202 = vmatprep.subr.bf16.mxu0 %v10713_v56  ;;  %5243 = vmatprep.subr.bf16.mxu1 %v10716_v57 }
 0x315   : > { %5203 = vmatpush1.bf16.msra.mxu0 %v10711_v58  ;;  %5244 = vmatpush1.bf16.msra.mxu1 %v10714_v59 }
 0x316   : > { %5204 = vmatprep.subr.bf16.mxu0 %v10719_v60  ;;  %5245 = vmatprep.subr.bf16.mxu1 %v10722_v61 }
 0x319   : > { %5205 = vmatpush1.bf16.msra.mxu0 %v10717_v62  ;;  %5246 = vmatpush1.bf16.msra.mxu1 %v10720_v63 }
 0x31a   : > { %5206 = vmatprep.subr.bf16.mxu0 %v10725_v0  ;;  %5247 = vmatprep.subr.bf16.mxu1 %v10728_v1 }
 0x31d   : > { %5207 = vmatpush1.bf16.msra.mxu0 %v10723_v2  ;;  %5248 = vmatpush1.bf16.msra.mxu1 %v10726_v3  ;;  %v10771_v3 = vld [vmem:[%s12138_s23 + $0x408] ss:$16 sps:$4 sm:$0xff]  }
 0x31e   : > { %5208 = vmatprep.subr.bf16.mxu0 %v10731_v4  ;;  %5249 = vmatprep.subr.bf16.mxu1 %v10734_v5  ;;  %v10774_v4 = vld [vmem:[%s12138_s23 + $0x608] ss:$16 sps:$4 sm:$0xff]  }
 0x321   : > { %5209 = vmatpush1.bf16.msra.mxu0 %v10729_v6  ;;  %5250 = vmatpush1.bf16.msra.mxu1 %v10732_v7  ;;  %v10779_v7 = vld [vmem:[%s12138_s23 + $0x42c] ss:$16 sps:$4 sm:$0xff]  }
 0x322   : > { %5210 = vmatprep.subr.bf16.mxu0 %v10737_v8  ;;  %5251 = vmatprep.subr.bf16.mxu1 %v10740_v9  ;;  %v10782_v8 = vld [vmem:[%s12138_s23 + $0x62c] ss:$16 sps:$4 sm:$0xff]   ;;  %v10777_v9 = vld [vmem:[%s12138_s23 + $0x428] ss:$16 sps:$4 sm:$0xff]  }
 0x325   : > { %5211 = vmatpush1.bf16.msra.mxu0 %v10735_v10  ;;  %5252 = vmatpush1.bf16.msra.mxu1 %v10738_v11  ;;  %v10780_v10 = vld [vmem:[%s12138_s23 + $0x628] ss:$16 sps:$4 sm:$0xff]   ;;  %v10785_v11 = vld [vmem:[%s12138_s23 + $0x44c] ss:$16 sps:$4 sm:$0xff]  }
 0x326   : > { %5212 = vmatprep.subr.bf16.mxu0 %v10743_v12  ;;  %5253 = vmatprep.subr.bf16.mxu1 %v10746_v13  ;;  %v10788_v12 = vld [vmem:[%s12138_s23 + $0x64c] ss:$16 sps:$4 sm:$0xff]   ;;  %v10783_v13 = vld [vmem:[%s12138_s23 + $0x448] ss:$16 sps:$4 sm:$0xff]  }
 0x329   : > { %5213 = vmatpush1.bf16.msra.mxu0 %v10741_v14  ;;  %5254 = vmatpush1.bf16.msra.mxu1 %v10744_v15  ;;  %v10786_v14 = vld [vmem:[%s12138_s23 + $0x648] ss:$16 sps:$4 sm:$0xff]   ;;  %v10791_v15 = vld [vmem:[%s12138_s23 + $0x46c] ss:$16 sps:$4 sm:$0xff]  }
 0x32a   : > { %5214 = vmatprep.subr.bf16.mxu0 %v10749_v16  ;;  %5255 = vmatprep.subr.bf16.mxu1 %v10752_v17  ;;  %v10794_v16 = vld [vmem:[%s12138_s23 + $0x66c] ss:$16 sps:$4 sm:$0xff]   ;;  %v10789_v17 = vld [vmem:[%s12138_s23 + $0x468] ss:$16 sps:$4 sm:$0xff]  }
 0x32d   : > { %5215 = vmatpush1.bf16.msra.mxu0 %v10747_v18  ;;  %5256 = vmatpush1.bf16.msra.mxu1 %v10750_v19  ;;  %v10792_v18 = vld [vmem:[%s12138_s23 + $0x668] ss:$16 sps:$4 sm:$0xff]   ;;  %v10797_v19 = vld [vmem:[%s12138_s23 + $0x48c] ss:$16 sps:$4 sm:$0xff]  }
 0x32e   : > { %5216 = vmatprep.subr.bf16.mxu0 %v10755_v20  ;;  %5257 = vmatprep.subr.bf16.mxu1 %v10758_v21  ;;  %v10800_v20 = vld [vmem:[%s12138_s23 + $0x68c] ss:$16 sps:$4 sm:$0xff]   ;;  %v10795_v21 = vld [vmem:[%s12138_s23 + $0x488] ss:$16 sps:$4 sm:$0xff]  }
 0x331   : > { %5217 = vmatpush1.bf16.msra.mxu0 %v10753_v22  ;;  %5258 = vmatpush1.bf16.msra.mxu1 %v10756_v23  ;;  %v10798_v22 = vld [vmem:[%s12138_s23 + $0x688] ss:$16 sps:$4 sm:$0xff]   ;;  %v10803_v23 = vld [vmem:[%s12138_s23 + $0x4ac] ss:$16 sps:$4 sm:$0xff]  }
 0x332   : > { %5218 = vmatprep.subr.bf16.mxu0 %v10761_v24  ;;  %5259 = vmatprep.subr.bf16.mxu1 %v10764_v25  ;;  %v10806_v24 = vld [vmem:[%s12138_s23 + $0x6ac] ss:$16 sps:$4 sm:$0xff]   ;;  %v10801_v25 = vld [vmem:[%s12138_s23 + $0x4a8] ss:$16 sps:$4 sm:$0xff]  }
 0x335   : > { %5219 = vmatpush1.bf16.msra.mxu0 %v10759_v26  ;;  %5260 = vmatpush1.bf16.msra.mxu1 %v10762_v27  ;;  %v10804_v26 = vld [vmem:[%s12138_s23 + $0x6a8] ss:$16 sps:$4 sm:$0xff]   ;;  %v10809_v27 = vld [vmem:[%s12138_s23 + $0x4cc] ss:$16 sps:$4 sm:$0xff]  }
 0x336   : > { %5220 = vmatprep.subr.bf16.mxu0 %v10767_v28  ;;  %5261 = vmatprep.subr.bf16.mxu1 %v10770_v29  ;;  %v10812_v28 = vld [vmem:[%s12138_s23 + $0x6cc] ss:$16 sps:$4 sm:$0xff]   ;;  %v10807_v29 = vld [vmem:[%s12138_s23 + $0x4c8] ss:$16 sps:$4 sm:$0xff]  }
 0x339   : > { %5221 = vmatpush1.bf16.msra.mxu0 %v10765_v30  ;;  %5262 = vmatpush1.bf16.msra.mxu1 %v10768_v31  ;;  %v10810_v30 = vld [vmem:[%s12138_s23 + $0x6c8] ss:$16 sps:$4 sm:$0xff]   ;;  %v10815_v31 = vld [vmem:[%s12138_s23 + $0x4ec] ss:$16 sps:$4 sm:$0xff]  }
 0x33a   : > { %5272 = vmatprep.subr.bf16.mxu0 %v10773_v32  ;;  %5313 = vmatprep.subr.bf16.mxu1 %v10776_v33  ;;  %v10818_v32 = vld [vmem:[%s12138_s23 + $0x6ec] ss:$16 sps:$4 sm:$0xff]   ;;  %v10813_v33 = vld [vmem:[%s12138_s23 + $0x4e8] ss:$16 sps:$4 sm:$0xff]  }
 0x3cf   : > { %v3939_v45 = vpop.f32.mrb[0].mxu0  ;;  %v4267_v46 = vpop.f32.mrb[0].mxu1 }
 0x3d0   : > { %v9761_v47 = vadd.f32 %v3939_v45, %v1041_v41  ;;  %v9763_v48 = vadd.f32 %v4267_v46, %v1049_v42  ;;  %v3941_v49 = vpop.f32.mrb[1].mxu0  ;;  %v4269_v50 = vpop.f32.mrb[1].mxu1  ;;  %v10824_v41 = vld [vmem:[%s12138_s23 + $0x70c] ss:$16 sps:$4 sm:$0xff]   ;;  %v10819_v42 = vld [vmem:[%s12138_s23 + $0x508] ss:$16 sps:$4 sm:$0xff]  }
 0x3d1   : > { %v9762_v51 = vadd.f32 %v3941_v49, %v1045_v43  ;;  %v9764_v52 = vadd.f32 %v4269_v50, %v1053_v44  ;;  %v3943_v53 = vpop.f32.mrb[2].mxu0  ;;  %v4271_v54 = vpop.f32.mrb[2].mxu1  ;;  %v10822_v43 = vld [vmem:[%s12138_s23 + $0x708] ss:$16 sps:$4 sm:$0xff]   ;;  %v10827_v44 = vld [vmem:[%s12138_s23 + $0x52c] ss:$16 sps:$4 sm:$0xff]  }
 0x3d2   : > { %v4274_v55 = vmax.f32 %v9761_v47, 0.0  ;;  %v4276_v56 = vmax.f32 %v9763_v48, 0.0  ;;  %v3944_v57 = vpop.f32.mrb[3].mxu0  ;;  %v4272_v58 = vpop.f32.mrb[3].mxu1  ;;  %v10830_v45 = vld [vmem:[%s12138_s23 + $0x72c] ss:$16 sps:$4 sm:$0xff]  }
 0x3d3   : > { %v4275_v59 = vmax.f32 %v9762_v51, 0.0  ;;  %v4277_v60 = vmax.f32 %v9764_v52, 0.0  ;;  %v10825_v46 = vld [vmem:[%s12138_s23 + $0x528] ss:$16 sps:$4 sm:$0xff]   ;;  %v10833_v48 = vld [vmem:[%s12138_s23 + $0x54c] ss:$16 sps:$4 sm:$0xff]  }
 0x3d4   : > { %v12746_v61 = vpack.c.bf16 %v4274_v55, %v4274_v55  ;;  %v12748_v62 = vpack.c.bf16 %v4276_v56, %v4276_v56  ;;  %v10828_v47 = vld [vmem:[%s12138_s23 + $0x728] ss:$16 sps:$4 sm:$0xff]   ;;  %v10836_v49 = vld [vmem:[%s12138_s23 + $0x74c] ss:$16 sps:$4 sm:$0xff]  }
 0x3d5   : > { %v12750_v63 = vpack.c.bf16 %v4275_v59, %v4275_v59  ;;  %v12752_v0 = vpack.c.bf16 %v4277_v60, %v4277_v60  ;;  %v10831_v50 = vld [vmem:[%s12138_s23 + $0x548] ss:$16 sps:$4 sm:$0xff]   ;;  %v10839_v52 = vld [vmem:[%s12138_s23 + $0x56c] ss:$16 sps:$4 sm:$0xff]  }
 0x3d6   : > { %v4542_v5 = vrot.slane %v12746_v61, 1  ;;  %v4544_v6 = vrot.slane %v12748_v62, 1  ;;  %v10834_v51 = vld [vmem:[%s12138_s23 + $0x748] ss:$16 sps:$4 sm:$0xff]   ;;  %v10842_v53 = vld [vmem:[%s12138_s23 + $0x76c] ss:$16 sps:$4 sm:$0xff]  }
 0x3d7   : > { %v4543_v1 = vrot.slane %v12750_v63, 1  ;;  %v4545_v2 = vrot.slane %v12752_v0, 1  ;;  %v10837_v54 = vld [vmem:[%s12138_s23 + $0x568] ss:$16 sps:$4 sm:$0xff]   ;;  %v10845_v56 = vld [vmem:[%s12138_s23 + $0x58c] ss:$16 sps:$4 sm:$0xff]  }
 0x3d8   : > { %v10840_v55 = vld [vmem:[%s12138_s23 + $0x768] ss:$16 sps:$4 sm:$0xff]   ;;  %v10848_v57 = vld [vmem:[%s12138_s23 + $0x78c] ss:$16 sps:$4 sm:$0xff]  }
 0x3d9   : > { %5222 = vmatprep.mubr.bf16.mxu0 %v4543_v1  ;;  %5263 = vmatprep.mubr.bf16.mxu1 %v4545_v2  ;;  %v10843_v58 = vld [vmem:[%s12138_s23 + $0x588] ss:$16 sps:$4 sm:$0xff]   ;;  %v10851_v60 = vld [vmem:[%s12138_s23 + $0x5ac] ss:$16 sps:$4 sm:$0xff]  }
 0x3da   : > { %5223 = vmatmul.mubr.bf16.vlgmr.msra.gmra.mrb[4].mxu0 %v4542_v5  ;;  %5264 = vmatmul.mubr.bf16.vlgmr.msra.gmra.mrb[4].mxu1 %v4544_v6  ;;  %v10846_v59 = vld [vmem:[%s12138_s23 + $0x788] ss:$16 sps:$4 sm:$0xff]  }
 0x3db   : > { %5273 = vmatpush1.bf16.msra.mxu0 %v10771_v3  ;;  %5314 = vmatpush1.bf16.msra.mxu1 %v10774_v4  ;;  %v10852_v3 = vld [vmem:[%s12138_s23 + $0x7a8] ss:$16 sps:$4 sm:$0xff]   ;;  %v10857_v4 = vld [vmem:[%s12138_s23 + $0x5cc] ss:$16 sps:$4 sm:$0xff]  }
 0x3dc   : > { %5304 = vmatprep.mubr.bf16.mxu0 %v4543_v1  ;;  %5345 = vmatprep.mubr.bf16.mxu1 %v4545_v2  ;;  %v10854_v1 = vld [vmem:[%s12138_s23 + $0x7ac] ss:$16 sps:$4 sm:$0xff]   ;;  %v10849_v2 = vld [vmem:[%s12138_s23 + $0x5a8] ss:$16 sps:$4 sm:$0xff]  }
 0x3dd   : > { %5274 = vmatprep.subr.bf16.mxu0 %v10779_v7  ;;  %5315 = vmatprep.subr.bf16.mxu1 %v10782_v8  ;;  %v10860_v7 = vld [vmem:[%s12138_s23 + $0x7cc] ss:$16 sps:$4 sm:$0xff]   ;;  %v10855_v8 = vld [vmem:[%s12138_s23 + $0x5c8] ss:$16 sps:$4 sm:$0xff]  }
 0x3df   : > { %5275 = vmatpush1.bf16.msra.mxu0 %v10777_v9  ;;  %5316 = vmatpush1.bf16.msra.mxu1 %v10780_v10  ;;  %v10858_v9 = vld [vmem:[%s12138_s23 + $0x7c8] ss:$16 sps:$4 sm:$0xff]   ;;  %v10863_v10 = vld [vmem:[%s12138_s23 + $0x5ec] ss:$16 sps:$4 sm:$0xff]  }
 0x3e0   : > { %5276 = vmatprep.subr.bf16.mxu0 %v10785_v11  ;;  %5317 = vmatprep.subr.bf16.mxu1 %v10788_v12  ;;  %v10866_v11 = vld [vmem:[%s12138_s23 + $0x7ec] ss:$16 sps:$4 sm:$0xff]   ;;  %v10861_v12 = vld [vmem:[%s12138_s23 + $0x5e8] ss:$16 sps:$4 sm:$0xff]  }
 0x3e3   : > { %5277 = vmatpush1.bf16.msra.mxu0 %v10783_v13  ;;  %5318 = vmatpush1.bf16.msra.mxu1 %v10786_v14  ;;  %v10864_v13 = vld [vmem:[%s12138_s23 + $0x7e8] ss:$16 sps:$4 sm:$0xff]   ;;  %v10869_v14 = vld [vmem:[%s12138_s23 + $0x4] ss:$16 sps:$4 sm:$0xff]  }
 0x3e4   : > { %5278 = vmatprep.subr.bf16.mxu0 %v10791_v15  ;;  %5319 = vmatprep.subr.bf16.mxu1 %v10794_v16  ;;  %v10872_v15 = vld [vmem:[%s12138_s23 + $0x204] ss:$16 sps:$4 sm:$0xff]   ;;  %v10867_v16 = vld [vmem:[%s12138_s23] ss:$16 sps:$4 sm:$0xff]  }
 0x3e7   : > { %5279 = vmatpush1.bf16.msra.mxu0 %v10789_v17  ;;  %5320 = vmatpush1.bf16.msra.mxu1 %v10792_v18  ;;  %v10870_v17 = vld [vmem:[%s12138_s23 + $0x200] ss:$16 sps:$4 sm:$0xff]   ;;  %v10875_v18 = vld [vmem:[%s12138_s23 + $0x24] ss:$16 sps:$4 sm:$0xff]  }
 0x3e8   : > { %5280 = vmatprep.subr.bf16.mxu0 %v10797_v19  ;;  %5321 = vmatprep.subr.bf16.mxu1 %v10800_v20  ;;  %v10878_v19 = vld [vmem:[%s12138_s23 + $0x224] ss:$16 sps:$4 sm:$0xff]   ;;  %v10873_v20 = vld [vmem:[%s12138_s23 + $0x20] ss:$16 sps:$4 sm:$0xff]  }
 0x3eb   : > { %5281 = vmatpush1.bf16.msra.mxu0 %v10795_v21  ;;  %5322 = vmatpush1.bf16.msra.mxu1 %v10798_v22  ;;  %v10876_v21 = vld [vmem:[%s12138_s23 + $0x220] ss:$16 sps:$4 sm:$0xff]   ;;  %v10881_v22 = vld [vmem:[%s12138_s23 + $0x44] ss:$16 sps:$4 sm:$0xff]  }
 0x3ec   : > { %5282 = vmatprep.subr.bf16.mxu0 %v10803_v23  ;;  %5323 = vmatprep.subr.bf16.mxu1 %v10806_v24  ;;  %v10882_v23 = vld [vmem:[%s12138_s23 + $0x240] ss:$16 sps:$4 sm:$0xff]   ;;  %v10887_v24 = vld [vmem:[%s12138_s23 + $0x64] ss:$16 sps:$4 sm:$0xff]  }
 0x3ef   : > { %5283 = vmatpush1.bf16.msra.mxu0 %v10801_v25  ;;  %5324 = vmatpush1.bf16.msra.mxu1 %v10804_v26  ;;  %v10890_v25 = vld [vmem:[%s12138_s23 + $0x264] ss:$16 sps:$4 sm:$0xff]   ;;  %v10885_v26 = vld [vmem:[%s12138_s23 + $0x60] ss:$16 sps:$4 sm:$0xff]  }
 0x3f0   : > { %5284 = vmatprep.subr.bf16.mxu0 %v10809_v27  ;;  %5325 = vmatprep.subr.bf16.mxu1 %v10812_v28  ;;  %v10888_v27 = vld [vmem:[%s12138_s23 + $0x260] ss:$16 sps:$4 sm:$0xff]   ;;  %v10893_v28 = vld [vmem:[%s12138_s23 + $0x84] ss:$16 sps:$4 sm:$0xff]  }
 0x3f3   : > { %5285 = vmatpush1.bf16.msra.mxu0 %v10807_v29  ;;  %5326 = vmatpush1.bf16.msra.mxu1 %v10810_v30  ;;  %v10896_v29 = vld [vmem:[%s12138_s23 + $0x284] ss:$16 sps:$4 sm:$0xff]   ;;  %v10891_v30 = vld [vmem:[%s12138_s23 + $0x80] ss:$16 sps:$4 sm:$0xff]  }
 0x3f4   : > { %5286 = vmatprep.subr.bf16.mxu0 %v10815_v31  ;;  %5327 = vmatprep.subr.bf16.mxu1 %v10818_v32  ;;  %v10894_v31 = vld [vmem:[%s12138_s23 + $0x280] ss:$16 sps:$4 sm:$0xff]   ;;  %v10899_v32 = vld [vmem:[%s12138_s23 + $0xa4] ss:$16 sps:$4 sm:$0xff]  }
 0x3f7   : > { %5287 = vmatpush1.bf16.msra.mxu0 %v10813_v33  ;;  %5328 = vmatpush1.bf16.msra.mxu1 %v10816_v34  ;;  %v10902_v33 = vld [vmem:[%s12138_s23 + $0x2a4] ss:$16 sps:$4 sm:$0xff]   ;;  %v10897_v34 = vld [vmem:[%s12138_s23 + $0xa0] ss:$16 sps:$4 sm:$0xff]  }
 0x3f8   : > { %5288 = vmatprep.subr.bf16.mxu0 %v10821_v38  ;;  %5329 = vmatprep.subr.bf16.mxu1 %v10824_v41  ;;  %v10900_v38 = vld [vmem:[%s12138_s23 + $0x2a0] ss:$16 sps:$4 sm:$0xff]   ;;  %v10905_v41 = vld [vmem:[%s12138_s23 + $0xc4] ss:$16 sps:$4 sm:$0xff]  }
 0x3fb   : > { %5289 = vmatpush1.bf16.msra.mxu0 %v10819_v42  ;;  %5330 = vmatpush1.bf16.msra.mxu1 %v10822_v43  ;;  %v10908_v42 = vld [vmem:[%s12138_s23 + $0x2c4] ss:$16 sps:$4 sm:$0xff]   ;;  %v10903_v43 = vld [vmem:[%s12138_s23 + $0xc0] ss:$16 sps:$4 sm:$0xff]  }
 0x3fc   : > { %5290 = vmatprep.subr.bf16.mxu0 %v10827_v44  ;;  %5331 = vmatprep.subr.bf16.mxu1 %v10830_v45  ;;  %v10906_v44 = vld [vmem:[%s12138_s23 + $0x2c0] ss:$16 sps:$4 sm:$0xff]   ;;  %v10911_v45 = vld [vmem:[%s12138_s23 + $0xe4] ss:$16 sps:$4 sm:$0xff]  }
 0x3ff   : > { %5291 = vmatpush1.bf16.msra.mxu0 %v10825_v46  ;;  %5332 = vmatpush1.bf16.msra.mxu1 %v10828_v47  ;;  %v10914_v46 = vld [vmem:[%s12138_s23 + $0x2e4] ss:$16 sps:$4 sm:$0xff]   ;;  %v10909_v47 = vld [vmem:[%s12138_s23 + $0xe0] ss:$16 sps:$4 sm:$0xff]  }
 0x400   : > { %5292 = vmatprep.subr.bf16.mxu0 %v10833_v48  ;;  %5333 = vmatprep.subr.bf16.mxu1 %v10836_v49  ;;  %v10912_v48 = vld [vmem:[%s12138_s23 + $0x2e0] ss:$16 sps:$4 sm:$0xff]   ;;  %v10917_v49 = vld [vmem:[%s12138_s23 + $0x104] ss:$16 sps:$4 sm:$0xff]  }
 0x403   : > { %5293 = vmatpush1.bf16.msra.mxu0 %v10831_v50  ;;  %5334 = vmatpush1.bf16.msra.mxu1 %v10834_v51  ;;  %v10920_v50 = vld [vmem:[%s12138_s23 + $0x304] ss:$16 sps:$4 sm:$0xff]   ;;  %v10915_v51 = vld [vmem:[%s12138_s23 + $0x100] ss:$16 sps:$4 sm:$0xff]  }
 0x404   : > { %5294 = vmatprep.subr.bf16.mxu0 %v10839_v52  ;;  %5335 = vmatprep.subr.bf16.mxu1 %v10842_v53  ;;  %v10918_v52 = vld [vmem:[%s12138_s23 + $0x300] ss:$16 sps:$4 sm:$0xff]   ;;  %v10923_v53 = vld [vmem:[%s12138_s23 + $0x124] ss:$16 sps:$4 sm:$0xff]  }
 0x407   : > { %5295 = vmatpush1.bf16.msra.mxu0 %v10837_v54  ;;  %5336 = vmatpush1.bf16.msra.mxu1 %v10840_v55  ;;  %v10926_v54 = vld [vmem:[%s12138_s23 + $0x324] ss:$16 sps:$4 sm:$0xff]   ;;  %v10921_v55 = vld [vmem:[%s12138_s23 + $0x120] ss:$16 sps:$4 sm:$0xff]  }
 0x408   : > { %5296 = vmatprep.subr.bf16.mxu0 %v10845_v56  ;;  %5337 = vmatprep.subr.bf16.mxu1 %v10848_v57  ;;  %v10924_v56 = vld [vmem:[%s12138_s23 + $0x320] ss:$16 sps:$4 sm:$0xff]   ;;  %v10929_v57 = vld [vmem:[%s12138_s23 + $0x144] ss:$16 sps:$4 sm:$0xff]  }
 0x40b   : > { %5297 = vmatpush1.bf16.msra.mxu0 %v10843_v58  ;;  %5338 = vmatpush1.bf16.msra.mxu1 %v10846_v59  ;;  %v10932_v58 = vld [vmem:[%s12138_s23 + $0x344] ss:$16 sps:$4 sm:$0xff]   ;;  %v10927_v59 = vld [vmem:[%s12138_s23 + $0x140] ss:$16 sps:$4 sm:$0xff]  }
 0x40c   : > { %5298 = vmatprep.subr.bf16.mxu0 %v10851_v60  ;;  %5339 = vmatprep.subr.bf16.mxu1 %v10854_v1  ;;  %v10930_v60 = vld [vmem:[%s12138_s23 + $0x340] ss:$16 sps:$4 sm:$0xff]   ;;  %v10935_v1 = vld [vmem:[%s12138_s23 + $0x164] ss:$16 sps:$4 sm:$0xff]  }
 0x40f   : > { %5299 = vmatpush1.bf16.msra.mxu0 %v10849_v2  ;;  %5340 = vmatpush1.bf16.msra.mxu1 %v10852_v3  ;;  %v10938_v2 = vld [vmem:[%s12138_s23 + $0x364] ss:$16 sps:$4 sm:$0xff]   ;;  %v10933_v3 = vld [vmem:[%s12138_s23 + $0x160] ss:$16 sps:$4 sm:$0xff]  }
 0x410   : > { %5300 = vmatprep.subr.bf16.mxu0 %v10857_v4  ;;  %5341 = vmatprep.subr.bf16.mxu1 %v10860_v7  ;;  %v10936_v4 = vld [vmem:[%s12138_s23 + $0x360] ss:$16 sps:$4 sm:$0xff]   ;;  %v10941_v7 = vld [vmem:[%s12138_s23 + $0x184] ss:$16 sps:$4 sm:$0xff]  }
 0x413   : > { %5301 = vmatpush1.bf16.msra.mxu0 %v10855_v8  ;;  %5342 = vmatpush1.bf16.msra.mxu1 %v10858_v9  ;;  %v10944_v8 = vld [vmem:[%s12138_s23 + $0x384] ss:$16 sps:$4 sm:$0xff]   ;;  %v10939_v9 = vld [vmem:[%s12138_s23 + $0x180] ss:$16 sps:$4 sm:$0xff]  }
 0x414   : > { %5302 = vmatprep.subr.bf16.mxu0 %v10863_v10  ;;  %5343 = vmatprep.subr.bf16.mxu1 %v10866_v11  ;;  %v10942_v10 = vld [vmem:[%s12138_s23 + $0x380] ss:$16 sps:$4 sm:$0xff]   ;;  %v10947_v11 = vld [vmem:[%s12138_s23 + $0x1a4] ss:$16 sps:$4 sm:$0xff]  }
 0x417   : > { %5303 = vmatpush1.bf16.msra.mxu0 %v10861_v12  ;;  %5344 = vmatpush1.bf16.msra.mxu1 %v10864_v13  ;;  %v10950_v12 = vld [vmem:[%s12138_s23 + $0x3a4] ss:$16 sps:$4 sm:$0xff]   ;;  %v10945_v13 = vld [vmem:[%s12138_s23 + $0x1a0] ss:$16 sps:$4 sm:$0xff]  }
 0x418   : > { %5994 = vmatprep.subr.bf16.mxu0 %v10869_v14  ;;  %6035 = vmatprep.subr.bf16.mxu1 %v10872_v15  ;;  %v10948_v14 = vld [vmem:[%s12138_s23 + $0x3a0] ss:$16 sps:$4 sm:$0xff]   ;;  %v10953_v15 = vld [vmem:[%s12138_s23 + $0x1c4] ss:$16 sps:$4 sm:$0xff]  }
 0x41a   : > { %5305 = vmatmul.mubr.bf16.vlgmr.msra.gmra.mrb[8].mxu0 %v4542_v5  ;;  %5346 = vmatmul.mubr.bf16.vlgmr.msra.gmra.mrb[8].mxu1 %v4544_v6  ;;  %v10884_v5 = vld [vmem:[%s12138_s23 + $0x244] ss:$16 sps:$4 sm:$0xff]   ;;  %v10879_v6 = vld [vmem:[%s12138_s23 + $0x40] ss:$16 sps:$4 sm:$0xff]  }
 0x41b   : > { %5995 = vmatpush1.bf16.msra.mxu0 %v10867_v16  ;;  %6026 = vmatprep.mubr.bf16.mxu0 %v12750_v63  ;;  %v10956_v16 = vld [vmem:[%s12138_s23 + $0x3c4] ss:$16 sps:$4 sm:$0xff]  }
 0x41c   : > { %6036 = vmatpush1.bf16.msra.mxu1 %v10870_v17  ;;  %6067 = vmatprep.mubr.bf16.mxu1 %v12752_v0  ;;  %v10951_v17 = vld [vmem:[%s12138_s23 + $0x1c0] ss:$16 sps:$4 sm:$0xff]  }
 0x41d   : > { %5996 = vmatprep.subr.bf16.mxu0 %v10875_v18  ;;  %6037 = vmatprep.subr.bf16.mxu1 %v10878_v19  ;;  %v10954_v18 = vld [vmem:[%s12138_s23 + $0x3c0] ss:$16 sps:$4 sm:$0xff]   ;;  %v10959_v19 = vld [vmem:[%s12138_s23 + $0x1e4] ss:$16 sps:$4 sm:$0xff]  }
 0x41f   : > { %5997 = vmatpush1.bf16.msra.mxu0 %v10873_v20  ;;  %v10962_v20 = vld [vmem:[%s12138_s23 + $0x3e4] ss:$16 sps:$4 sm:$0xff]  }
 0x420   : > { %6038 = vmatpush1.bf16.msra.mxu1 %v10876_v21  ;;  %5998 = vmatprep.subr.bf16.mxu0 %v10881_v22  ;;  %v10957_v21 = vld [vmem:[%s12138_s23 + $0x1e0] ss:$16 sps:$4 sm:$0xff]  }
 0x421   : > { %6039 = vmatprep.subr.bf16.mxu1 %v10884_v5  ;;  %v10960_v22 = vld [vmem:[%s12138_s23 + $0x3e0] ss:$16 sps:$4 sm:$0xff]   ;;  %v10965_v5 = vld [vmem:[%s12138_s23 + $0xc] ss:$16 sps:$4 sm:$0xff]  }
 0x423   : > { %5999 = vmatpush1.bf16.msra.mxu0 %v10879_v6  ;;  %v10968_v6 = vld [vmem:[%s12138_s23 + $0x20c] ss:$16 sps:$4 sm:$0xff]  }
 0x424   : > { %6040 = vmatpush1.bf16.msra.mxu1 %v10882_v23  ;;  %6000 = vmatprep.subr.bf16.mxu0 %v10887_v24  ;;  %v10963_v23 = vld [vmem:[%s12138_s23 + $0x8] ss:$16 sps:$4 sm:$0xff]  }
 0x425   : > { %6041 = vmatprep.subr.bf16.mxu1 %v10890_v25  ;;  %v10966_v24 = vld [vmem:[%s12138_s23 + $0x208] ss:$16 sps:$4 sm:$0xff]   ;;  %v10971_v25 = vld [vmem:[%s12138_s23 + $0x2c] ss:$16 sps:$4 sm:$0xff]  }
 0x427   : > { %6001 = vmatpush1.bf16.msra.mxu0 %v10885_v26  ;;  %v10974_v26 = vld [vmem:[%s12138_s23 + $0x22c] ss:$16 sps:$4 sm:$0xff]  }
 0x428   : > { %6042 = vmatpush1.bf16.msra.mxu1 %v10888_v27  ;;  %6002 = vmatprep.subr.bf16.mxu0 %v10893_v28  ;;  %v10969_v27 = vld [vmem:[%s12138_s23 + $0x28] ss:$16 sps:$4 sm:$0xff]  }
 0x429   : > { %6043 = vmatprep.subr.bf16.mxu1 %v10896_v29  ;;  %v10972_v28 = vld [vmem:[%s12138_s23 + $0x228] ss:$16 sps:$4 sm:$0xff]   ;;  %v10977_v29 = vld [vmem:[%s12138_s23 + $0x4c] ss:$16 sps:$4 sm:$0xff]  }
 0x42b   : > { %6003 = vmatpush1.bf16.msra.mxu0 %v10891_v30  ;;  %v10980_v30 = vld [vmem:[%s12138_s23 + $0x24c] ss:$16 sps:$4 sm:$0xff]  }
 0x42c   : > { %6044 = vmatpush1.bf16.msra.mxu1 %v10894_v31  ;;  %6004 = vmatprep.subr.bf16.mxu0 %v10899_v32  ;;  %v10975_v31 = vld [vmem:[%s12138_s23 + $0x48] ss:$16 sps:$4 sm:$0xff]  }
 0x42d   : > { %6045 = vmatprep.subr.bf16.mxu1 %v10902_v33  ;;  %v10978_v32 = vld [vmem:[%s12138_s23 + $0x248] ss:$16 sps:$4 sm:$0xff]   ;;  %v10983_v33 = vld [vmem:[%s12138_s23 + $0x6c] ss:$16 sps:$4 sm:$0xff]  }
 0x42f   : > { %6005 = vmatpush1.bf16.msra.mxu0 %v10897_v34  ;;  %v10986_v34 = vld [vmem:[%s12138_s23 + $0x26c] ss:$16 sps:$4 sm:$0xff]  }
 0x430   : > { %6046 = vmatpush1.bf16.msra.mxu1 %v10900_v38  ;;  %6006 = vmatprep.subr.bf16.mxu0 %v10905_v41  ;;  %v10981_v38 = vld [vmem:[%s12138_s23 + $0x68] ss:$16 sps:$4 sm:$0xff]  }
 0x431   : > { %6047 = vmatprep.subr.bf16.mxu1 %v10908_v42  ;;  %v10984_v41 = vld [vmem:[%s12138_s23 + $0x268] ss:$16 sps:$4 sm:$0xff]   ;;  %v10989_v42 = vld [vmem:[%s12138_s23 + $0x8c] ss:$16 sps:$4 sm:$0xff]  }
 0x433   : > { %6007 = vmatpush1.bf16.msra.mxu0 %v10903_v43  ;;  %v10992_v43 = vld [vmem:[%s12138_s23 + $0x28c] ss:$16 sps:$4 sm:$0xff]  }
 0x434   : > { %6048 = vmatpush1.bf16.msra.mxu1 %v10906_v44  ;;  %6008 = vmatprep.subr.bf16.mxu0 %v10911_v45  ;;  %v10987_v44 = vld [vmem:[%s12138_s23 + $0x88] ss:$16 sps:$4 sm:$0xff]  }
 0x435   : > { %6049 = vmatprep.subr.bf16.mxu1 %v10914_v46  ;;  %v10990_v45 = vld [vmem:[%s12138_s23 + $0x288] ss:$16 sps:$4 sm:$0xff]   ;;  %v10995_v46 = vld [vmem:[%s12138_s23 + $0xac] ss:$16 sps:$4 sm:$0xff]  }
 0x437   : > { %6009 = vmatpush1.bf16.msra.mxu0 %v10909_v47  ;;  %v10998_v47 = vld [vmem:[%s12138_s23 + $0x2ac] ss:$16 sps:$4 sm:$0xff]  }
 0x438   : > { %6050 = vmatpush1.bf16.msra.mxu1 %v10912_v48  ;;  %6010 = vmatprep.subr.bf16.mxu0 %v10917_v49  ;;  %v10993_v48 = vld [vmem:[%s12138_s23 + $0xa8] ss:$16 sps:$4 sm:$0xff]  }
 0x439   : > { %6051 = vmatprep.subr.bf16.mxu1 %v10920_v50  ;;  %v10996_v49 = vld [vmem:[%s12138_s23 + $0x2a8] ss:$16 sps:$4 sm:$0xff]   ;;  %v11001_v50 = vld [vmem:[%s12138_s23 + $0xcc] ss:$16 sps:$4 sm:$0xff]  }
 0x43b   : > { %6011 = vmatpush1.bf16.msra.mxu0 %v10915_v51  ;;  %v11004_v51 = vld [vmem:[%s12138_s23 + $0x2cc] ss:$16 sps:$4 sm:$0xff]  }
 0x43c   : > { %6052 = vmatpush1.bf16.msra.mxu1 %v10918_v52  ;;  %6012 = vmatprep.subr.bf16.mxu0 %v10923_v53  ;;  %v10999_v52 = vld [vmem:[%s12138_s23 + $0xc8] ss:$16 sps:$4 sm:$0xff]  }
 0x43d   : > { %6053 = vmatprep.subr.bf16.mxu1 %v10926_v54  ;;  %v11002_v53 = vld [vmem:[%s12138_s23 + $0x2c8] ss:$16 sps:$4 sm:$0xff]   ;;  %v11007_v54 = vld [vmem:[%s12138_s23 + $0xec] ss:$16 sps:$4 sm:$0xff]  }
 0x43f   : > { %6013 = vmatpush1.bf16.msra.mxu0 %v10921_v55  ;;  %v11010_v55 = vld [vmem:[%s12138_s23 + $0x2ec] ss:$16 sps:$4 sm:$0xff]  }
 0x440   : > { %6054 = vmatpush1.bf16.msra.mxu1 %v10924_v56  ;;  %6014 = vmatprep.subr.bf16.mxu0 %v10929_v57  ;;  %v11005_v56 = vld [vmem:[%s12138_s23 + $0xe8] ss:$16 sps:$4 sm:$0xff]  }
 0x441   : > { %6055 = vmatprep.subr.bf16.mxu1 %v10932_v58  ;;  %v11008_v57 = vld [vmem:[%s12138_s23 + $0x2e8] ss:$16 sps:$4 sm:$0xff]   ;;  %v11013_v58 = vld [vmem:[%s12138_s23 + $0x10c] ss:$16 sps:$4 sm:$0xff]  }
 0x443   : > { %6015 = vmatpush1.bf16.msra.mxu0 %v10927_v59  ;;  %v11016_v59 = vld [vmem:[%s12138_s23 + $0x30c] ss:$16 sps:$4 sm:$0xff]  }
 0x444   : > { %6056 = vmatpush1.bf16.msra.mxu1 %v10930_v60  ;;  %6016 = vmatprep.subr.bf16.mxu0 %v10935_v1  ;;  %v11011_v60 = vld [vmem:[%s12138_s23 + $0x108] ss:$16 sps:$4 sm:$0xff]  }
 0x445   : > { %6057 = vmatprep.subr.bf16.mxu1 %v10938_v2  ;;  %v11014_v1 = vld [vmem:[%s12138_s23 + $0x308] ss:$16 sps:$4 sm:$0xff]   ;;  %v11019_v2 = vld [vmem:[%s12138_s23 + $0x12c] ss:$16 sps:$4 sm:$0xff]  }
 0x447   : > { %6017 = vmatpush1.bf16.msra.mxu0 %v10933_v3  ;;  %v11022_v3 = vld [vmem:[%s12138_s23 + $0x32c] ss:$16 sps:$4 sm:$0xff]  }
 0x448   : > { %6058 = vmatpush1.bf16.msra.mxu1 %v10936_v4  ;;  %6018 = vmatprep.subr.bf16.mxu0 %v10941_v7  ;;  %v11017_v4 = vld [vmem:[%s12138_s23 + $0x128] ss:$16 sps:$4 sm:$0xff]  }
 0x449   : > { %6059 = vmatprep.subr.bf16.mxu1 %v10944_v8  ;;  %v11020_v7 = vld [vmem:[%s12138_s23 + $0x328] ss:$16 sps:$4 sm:$0xff]   ;;  %v11025_v8 = vld [vmem:[%s12138_s23 + $0x14c] ss:$16 sps:$4 sm:$0xff]  }
 0x44b   : > { %6019 = vmatpush1.bf16.msra.mxu0 %v10939_v9  ;;  %v11028_v9 = vld [vmem:[%s12138_s23 + $0x34c] ss:$16 sps:$4 sm:$0xff]  }
 0x44c   : > { %6060 = vmatpush1.bf16.msra.mxu1 %v10942_v10  ;;  %6020 = vmatprep.subr.bf16.mxu0 %v10947_v11  ;;  %v11023_v10 = vld [vmem:[%s12138_s23 + $0x148] ss:$16 sps:$4 sm:$0xff]  }
 0x44d   : > { %6061 = vmatprep.subr.bf16.mxu1 %v10950_v12  ;;  %v11026_v11 = vld [vmem:[%s12138_s23 + $0x348] ss:$16 sps:$4 sm:$0xff]   ;;  %v11031_v12 = vld [vmem:[%s12138_s23 + $0x16c] ss:$16 sps:$4 sm:$0xff]  }
 0x44f   : > { %6021 = vmatpush1.bf16.msra.mxu0 %v10945_v13  ;;  %v11034_v13 = vld [vmem:[%s12138_s23 + $0x36c] ss:$16 sps:$4 sm:$0xff]  }
 0x450   : > { %6062 = vmatpush1.bf16.msra.mxu1 %v10948_v14  ;;  %6022 = vmatprep.subr.bf16.mxu0 %v10953_v15  ;;  %v11029_v14 = vld [vmem:[%s12138_s23 + $0x168] ss:$16 sps:$4 sm:$0xff]  }
 0x451   : > { %6063 = vmatprep.subr.bf16.mxu1 %v10956_v16  ;;  %v11032_v15 = vld [vmem:[%s12138_s23 + $0x368] ss:$16 sps:$4 sm:$0xff]   ;;  %v11037_v16 = vld [vmem:[%s12138_s23 + $0x18c] ss:$16 sps:$4 sm:$0xff]  }
 0x453   : > { %6023 = vmatpush1.bf16.msra.mxu0 %v10951_v17  ;;  %v11040_v17 = vld [vmem:[%s12138_s23 + $0x38c] ss:$16 sps:$4 sm:$0xff]  }
 0x454   : > { %6064 = vmatpush1.bf16.msra.mxu1 %v10954_v18  ;;  %6024 = vmatprep.subr.bf16.mxu0 %v10959_v19  ;;  %v11035_v18 = vld [vmem:[%s12138_s23 + $0x188] ss:$16 sps:$4 sm:$0xff]  }
 0x455   : > { %6065 = vmatprep.subr.bf16.mxu1 %v10962_v20  ;;  %v11038_v19 = vld [vmem:[%s12138_s23 + $0x388] ss:$16 sps:$4 sm:$0xff]   ;;  %v11043_v20 = vld [vmem:[%s12138_s23 + $0x1ac] ss:$16 sps:$4 sm:$0xff]  }
 0x457   : > { %6025 = vmatpush1.bf16.msra.mxu0 %v10957_v21  ;;  %v11046_v21 = vld [vmem:[%s12138_s23 + $0x3ac] ss:$16 sps:$4 sm:$0xff]  }
 0x458   : > { %6066 = vmatpush1.bf16.msra.mxu1 %v10960_v22  ;;  %6076 = vmatprep.subr.bf16.mxu0 %v10965_v5  ;;  %v11041_v22 = vld [vmem:[%s12138_s23 + $0x1a8] ss:$16 sps:$4 sm:$0xff]  }
 0x459   : > { %6117 = vmatprep.subr.bf16.mxu1 %v10968_v6  ;;  %v11044_v5 = vld [vmem:[%s12138_s23 + $0x3a8] ss:$16 sps:$4 sm:$0xff]   ;;  %v11049_v6 = vld [vmem:[%s12138_s23 + $0x1cc] ss:$16 sps:$4 sm:$0xff]  }
 0x45a   : > { %6027 = vmatmul.mubr.bf16.vlgmr.msra.gmra.mrb[12].mxu0 %v12746_v61 }
 0x45b   : > { %6068 = vmatmul.mubr.bf16.vlgmr.msra.gmra.mrb[12].mxu1 %v12748_v62  ;;  %6077 = vmatpush1.bf16.msra.mxu0 %v10963_v23  ;;  %v11052_v23 = vld [vmem:[%s12138_s23 + $0x3cc] ss:$16 sps:$4 sm:$0xff]  }
 0x45c   : > { %6108 = vmatprep.mubr.bf16.mxu0 %v12750_v63  ;;  %6118 = vmatpush1.bf16.msra.mxu1 %v10966_v24  ;;  %v11047_v24 = vld [vmem:[%s12138_s23 + $0x1c8] ss:$16 sps:$4 sm:$0xff]  }
 0x45d   : > { %6149 = vmatprep.mubr.bf16.mxu1 %v12752_v0  ;;  %6078 = vmatprep.subr.bf16.mxu0 %v10971_v25  ;;  %v11050_v25 = vld [vmem:[%s12138_s23 + $0x3c8] ss:$16 sps:$4 sm:$0xff]  }
 0x45e   : > { %6119 = vmatprep.subr.bf16.mxu1 %v10974_v26  ;;  %v11055_v26 = vld [vmem:[%s12138_s23 + $0x1ec] ss:$16 sps:$4 sm:$0xff]  }
 0x45f   : > { %6079 = vmatpush1.bf16.msra.mxu0 %v10969_v27  ;;  %v11058_v27 = vld [vmem:[%s12138_s23 + $0x3ec] ss:$16 sps:$4 sm:$0xff]  }
 0x460   : > { %6120 = vmatpush1.bf16.msra.mxu1 %v10972_v28  ;;  %6080 = vmatprep.subr.bf16.mxu0 %v10977_v29  ;;  %v11053_v28 = vld [vmem:[%s12138_s23 + $0x1e8] ss:$16 sps:$4 sm:$0xff]  }
 0x461   : > { %6121 = vmatprep.subr.bf16.mxu1 %v10980_v30  ;;  %v11056_v29 = vld [vmem:[%s12138_s23 + $0x3e8] ss:$16 sps:$4 sm:$0xff]   ;;  %v11061_v30 = vld [vmem:[%s12138_s23 + $0x804] ss:$16 sps:$4 sm:$0xff]  }
 0x463   : > { %6081 = vmatpush1.bf16.msra.mxu0 %v10975_v31  ;;  %v11064_v31 = vld [vmem:[%s12138_s23 + $0xa04] ss:$16 sps:$4 sm:$0xff]  }
 0x464   : > { %6122 = vmatpush1.bf16.msra.mxu1 %v10978_v32  ;;  %6082 = vmatprep.subr.bf16.mxu0 %v10983_v33  ;;  %v11059_v32 = vld [vmem:[%s12138_s23 + $0x800] ss:$16 sps:$4 sm:$0xff]  }
 0x465   : > { %6123 = vmatprep.subr.bf16.mxu1 %v10986_v34  ;;  %v11062_v33 = vld [vmem:[%s12138_s23 + $0xa00] ss:$16 sps:$4 sm:$0xff]   ;;  %v11067_v34 = vld [vmem:[%s12138_s23 + $0x824] ss:$16 sps:$4 sm:$0xff]  }
 0x467   : > { %6083 = vmatpush1.bf16.msra.mxu0 %v10981_v38  ;;  %v6287_v38 = vrot.slane %v12750_v63, 2 }
 0x468   : > { %6124 = vmatpush1.bf16.msra.mxu1 %v10984_v41  ;;  %6084 = vmatprep.subr.bf16.mxu0 %v10989_v42  ;;  %v11070_v41 = vld [vmem:[%s12138_s23 + $0xa24] ss:$16 sps:$4 sm:$0xff]   ;;  %v6289_v42 = vrot.slane %v12752_v0, 2 }
 0x469   : > { %6125 = vmatprep.subr.bf16.mxu1 %v10992_v43  ;;  %v11065_v43 = vld [vmem:[%s12138_s23 + $0x820] ss:$16 sps:$4 sm:$0xff]  }
 0x46b   : > { %6085 = vmatpush1.bf16.msra.mxu0 %v10987_v44  ;;  %v11068_v44 = vld [vmem:[%s12138_s23 + $0xa20] ss:$16 sps:$4 sm:$0xff]  }
 0x46c   : > { %6126 = vmatpush1.bf16.msra.mxu1 %v10990_v45  ;;  %6086 = vmatprep.subr.bf16.mxu0 %v10995_v46  ;;  %v11073_v45 = vld [vmem:[%s12138_s23 + $0x844] ss:$16 sps:$4 sm:$0xff]  }
 0x46d   : > { %6127 = vmatprep.subr.bf16.mxu1 %v10998_v47  ;;  %v11076_v46 = vld [vmem:[%s12138_s23 + $0xa44] ss:$16 sps:$4 sm:$0xff]   ;;  %v11071_v47 = vld [vmem:[%s12138_s23 + $0x840] ss:$16 sps:$4 sm:$0xff]  }
 0x46f   : > { %6087 = vmatpush1.bf16.msra.mxu0 %v10993_v48  ;;  %v11074_v48 = vld [vmem:[%s12138_s23 + $0xa40] ss:$16 sps:$4 sm:$0xff]  }
 0x470   : > { %6128 = vmatpush1.bf16.msra.mxu1 %v10996_v49  ;;  %6088 = vmatprep.subr.bf16.mxu0 %v11001_v50  ;;  %v11079_v49 = vld [vmem:[%s12138_s23 + $0x864] ss:$16 sps:$4 sm:$0xff]  }
 0x471   : > { %6129 = vmatprep.subr.bf16.mxu1 %v11004_v51  ;;  %v11082_v50 = vld [vmem:[%s12138_s23 + $0xa64] ss:$16 sps:$4 sm:$0xff]   ;;  %v11077_v51 = vld [vmem:[%s12138_s23 + $0x860] ss:$16 sps:$4 sm:$0xff]  }
 0x473   : > { %6089 = vmatpush1.bf16.msra.mxu0 %v10999_v52  ;;  %v11080_v52 = vld [vmem:[%s12138_s23 + $0xa60] ss:$16 sps:$4 sm:$0xff]  }
 0x474   : > { %6130 = vmatpush1.bf16.msra.mxu1 %v11002_v53  ;;  %6090 = vmatprep.subr.bf16.mxu0 %v11007_v54  ;;  %v11085_v53 = vld [vmem:[%s12138_s23 + $0x884] ss:$16 sps:$4 sm:$0xff]  }
 0x475   : > { %6131 = vmatprep.subr.bf16.mxu1 %v11010_v55  ;;  %v11088_v54 = vld [vmem:[%s12138_s23 + $0xa84] ss:$16 sps:$4 sm:$0xff]   ;;  %v11083_v55 = vld [vmem:[%s12138_s23 + $0x880] ss:$16 sps:$4 sm:$0xff]  }
 0x477   : > { %6091 = vmatpush1.bf16.msra.mxu0 %v11005_v56  ;;  %v11086_v56 = vld [vmem:[%s12138_s23 + $0xa80] ss:$16 sps:$4 sm:$0xff]  }
 0x478   : > { %6132 = vmatpush1.bf16.msra.mxu1 %v11008_v57  ;;  %6092 = vmatprep.subr.bf16.mxu0 %v11013_v58  ;;  %v11091_v57 = vld [vmem:[%s12138_s23 + $0x8a4] ss:$16 sps:$4 sm:$0xff]  }
 0x479   : > { %6133 = vmatprep.subr.bf16.mxu1 %v11016_v59  ;;  %v11094_v58 = vld [vmem:[%s12138_s23 + $0xaa4] ss:$16 sps:$4 sm:$0xff]   ;;  %v11089_v59 = vld [vmem:[%s12138_s23 + $0x8a0] ss:$16 sps:$4 sm:$0xff]  }
 0x47b   : > { %6093 = vmatpush1.bf16.msra.mxu0 %v11011_v60  ;;  %v11092_v60 = vld [vmem:[%s12138_s23 + $0xaa0] ss:$16 sps:$4 sm:$0xff]  }
 0x47c   : > { %6134 = vmatpush1.bf16.msra.mxu1 %v11014_v1  ;;  %6094 = vmatprep.subr.bf16.mxu0 %v11019_v2  ;;  %v11097_v1 = vld [vmem:[%s12138_s23 + $0x8c4] ss:$16 sps:$4 sm:$0xff]  }
 0x47d   : > { %6135 = vmatprep.subr.bf16.mxu1 %v11022_v3 }
 0x47f   : > { %6095 = vmatpush1.bf16.msra.mxu0 %v11017_v4  ;;  %v11100_v4 = vld [vmem:[%s12138_s23 + $0xac4] ss:$16 sps:$4 sm:$0xff]  }
 0x480   : > { %6136 = vmatpush1.bf16.msra.mxu1 %v11020_v7  ;;  %6096 = vmatprep.subr.bf16.mxu0 %v11025_v8 }
 0x481   : > { %6137 = vmatprep.subr.bf16.mxu1 %v11028_v9 }
 0x483   : > { %6097 = vmatpush1.bf16.msra.mxu0 %v11023_v10 }
 0x484   : > { %6138 = vmatpush1.bf16.msra.mxu1 %v11026_v11  ;;  %6098 = vmatprep.subr.bf16.mxu0 %v11031_v12 }
 0x485   : > { %6139 = vmatprep.subr.bf16.mxu1 %v11034_v13  ;;  %v11095_v13 = vld [vmem:[%s12138_s23 + $0x8c0] ss:$16 sps:$4 sm:$0xff]  }
 0x487   : > { %6099 = vmatpush1.bf16.msra.mxu0 %v11029_v14 }
 0x488   : > { %6140 = vmatpush1.bf16.msra.mxu1 %v11032_v15  ;;  %6100 = vmatprep.subr.bf16.mxu0 %v11037_v16  ;;  %v11098_v16 = vld [vmem:[%s12138_s23 + $0xac0] ss:$16 sps:$4 sm:$0xff]  }
 0x489   : > { %6141 = vmatprep.subr.bf16.mxu1 %v11040_v17  ;;  %v11103_v17 = vld [vmem:[%s12138_s23 + $0x8e4] ss:$16 sps:$4 sm:$0xff]  }
 0x48b   : > { %6101 = vmatpush1.bf16.msra.mxu0 %v11035_v18  ;;  %v11106_v18 = vld [vmem:[%s12138_s23 + $0xae4] ss:$16 sps:$4 sm:$0xff]  }
 0x48c   : > { %6142 = vmatpush1.bf16.msra.mxu1 %v11038_v19  ;;  %6102 = vmatprep.subr.bf16.mxu0 %v11043_v20  ;;  %v11101_v19 = vld [vmem:[%s12138_s23 + $0x8e0] ss:$16 sps:$4 sm:$0xff]  }
 0x48d   : > { %6143 = vmatprep.subr.bf16.mxu1 %v11046_v21  ;;  %v11104_v20 = vld [vmem:[%s12138_s23 + $0xae0] ss:$16 sps:$4 sm:$0xff]   ;;  %v11109_v21 = vld [vmem:[%s12138_s23 + $0x904] ss:$16 sps:$4 sm:$0xff]  }
 0x48f   : > { %6103 = vmatpush1.bf16.msra.mxu0 %v11041_v22  ;;  %v11112_v22 = vld [vmem:[%s12138_s23 + $0xb04] ss:$16 sps:$4 sm:$0xff]  }
 0x490   : > { %6144 = vmatpush1.bf16.msra.mxu1 %v11044_v5  ;;  %6104 = vmatprep.subr.bf16.mxu0 %v11049_v6  ;;  %v11107_v5 = vld [vmem:[%s12138_s23 + $0x900] ss:$16 sps:$4 sm:$0xff]  }
 0x491   : > { %6145 = vmatprep.subr.bf16.mxu1 %v11052_v23  ;;  %v11110_v6 = vld [vmem:[%s12138_s23 + $0xb00] ss:$16 sps:$4 sm:$0xff]   ;;  %v11115_v23 = vld [vmem:[%s12138_s23 + $0x924] ss:$16 sps:$4 sm:$0xff]  }
 0x493   : > { %6105 = vmatpush1.bf16.msra.mxu0 %v11047_v24  ;;  %v11118_v24 = vld [vmem:[%s12138_s23 + $0xb24] ss:$16 sps:$4 sm:$0xff]  }
 0x494   : > { %6146 = vmatpush1.bf16.msra.mxu1 %v11050_v25  ;;  %6106 = vmatprep.subr.bf16.mxu0 %v11055_v26  ;;  %v11113_v25 = vld [vmem:[%s12138_s23 + $0x920] ss:$16 sps:$4 sm:$0xff]  }
 0x495   : > { %6147 = vmatprep.subr.bf16.mxu1 %v11058_v27  ;;  %v11116_v26 = vld [vmem:[%s12138_s23 + $0xb20] ss:$16 sps:$4 sm:$0xff]   ;;  %v11121_v27 = vld [vmem:[%s12138_s23 + $0x944] ss:$16 sps:$4 sm:$0xff]  }
 0x497   : > { %6107 = vmatpush1.bf16.msra.mxu0 %v11053_v28  ;;  %v11124_v28 = vld [vmem:[%s12138_s23 + $0xb44] ss:$16 sps:$4 sm:$0xff]  }
 0x498   : > { %6148 = vmatpush1.bf16.msra.mxu1 %v11056_v29  ;;  %6934 = vmatprep.subr.bf16.mxu0 %v11061_v30  ;;  %v11119_v29 = vld [vmem:[%s12138_s23 + $0x940] ss:$16 sps:$4 sm:$0xff]  }
 0x499   : > { %6975 = vmatprep.subr.bf16.mxu1 %v11064_v31  ;;  %v11122_v30 = vld [vmem:[%s12138_s23 + $0xb40] ss:$16 sps:$4 sm:$0xff]   ;;  %v11127_v31 = vld [vmem:[%s12138_s23 + $0x964] ss:$16 sps:$4 sm:$0xff]  }
 0x49a   : > { %6109 = vmatmul.mubr.bf16.vlgmr.msra.gmra.mrb[16].mxu0 %v12746_v61 }
 0x49b   : > { %6150 = vmatmul.mubr.bf16.vlgmr.msra.gmra.mrb[16].mxu1 %v12748_v62  ;;  %6935 = vmatpush1.bf16.msra.mxu0 %v11059_v32  ;;  %v11130_v32 = vld [vmem:[%s12138_s23 + $0xb64] ss:$16 sps:$4 sm:$0xff]  }
 0x49c   : > { %6966 = vmatprep.mubr.bf16.mxu0 %v6287_v38  ;;  %6976 = vmatpush1.bf16.msra.mxu1 %v11062_v33  ;;  %v11125_v33 = vld [vmem:[%s12138_s23 + $0x960] ss:$16 sps:$4 sm:$0xff]  }
 0x49d   : > { %7007 = vmatprep.mubr.bf16.mxu1 %v6289_v42  ;;  %6936 = vmatprep.subr.bf16.mxu0 %v11067_v34  ;;  %v11128_v34 = vld [vmem:[%s12138_s23 + $0xb60] ss:$16 sps:$4 sm:$0xff]  }
 0x49e   : > { %6977 = vmatprep.subr.bf16.mxu1 %v11070_v41  ;;  %v11133_v41 = vld [vmem:[%s12138_s23 + $0x984] ss:$16 sps:$4 sm:$0xff]  }
 0x49f   : > { %6937 = vmatpush1.bf16.msra.mxu0 %v11065_v43  ;;  %v11136_v43 = vld [vmem:[%s12138_s23 + $0xb84] ss:$16 sps:$4 sm:$0xff]  }
 0x4a0   : > { %6978 = vmatpush1.bf16.msra.mxu1 %v11068_v44  ;;  %6938 = vmatprep.subr.bf16.mxu0 %v11073_v45  ;;  %v11131_v44 = vld [vmem:[%s12138_s23 + $0x980] ss:$16 sps:$4 sm:$0xff]  }
 0x4a1   : > { %6979 = vmatprep.subr.bf16.mxu1 %v11076_v46  ;;  %v11134_v45 = vld [vmem:[%s12138_s23 + $0xb80] ss:$16 sps:$4 sm:$0xff]   ;;  %v11139_v46 = vld [vmem:[%s12138_s23 + $0x9a4] ss:$16 sps:$4 sm:$0xff]  }
 0x4a3   : > { %6939 = vmatpush1.bf16.msra.mxu0 %v11071_v47  ;;  %v11142_v47 = vld [vmem:[%s12138_s23 + $0xba4] ss:$16 sps:$4 sm:$0xff]  }
 0x4a4   : > { %6980 = vmatpush1.bf16.msra.mxu1 %v11074_v48  ;;  %6940 = vmatprep.subr.bf16.mxu0 %v11079_v49  ;;  %v11137_v48 = vld [vmem:[%s12138_s23 + $0x9a0] ss:$16 sps:$4 sm:$0xff]  }
 0x4a5   : > { %6981 = vmatprep.subr.bf16.mxu1 %v11082_v50  ;;  %v11140_v49 = vld [vmem:[%s12138_s23 + $0xba0] ss:$16 sps:$4 sm:$0xff]   ;;  %v11145_v50 = vld [vmem:[%s12138_s23 + $0x9c4] ss:$16 sps:$4 sm:$0xff]  }
 0x4a7   : > { %6941 = vmatpush1.bf16.msra.mxu0 %v11077_v51  ;;  %v11148_v51 = vld [vmem:[%s12138_s23 + $0xbc4] ss:$16 sps:$4 sm:$0xff]  }
 0x4a8   : > { %6982 = vmatpush1.bf16.msra.mxu1 %v11080_v52  ;;  %6942 = vmatprep.subr.bf16.mxu0 %v11085_v53  ;;  %v11143_v52 = vld [vmem:[%s12138_s23 + $0x9c0] ss:$16 sps:$4 sm:$0xff]  }
 0x4a9   : > { %6983 = vmatprep.subr.bf16.mxu1 %v11088_v54  ;;  %v11146_v53 = vld [vmem:[%s12138_s23 + $0xbc0] ss:$16 sps:$4 sm:$0xff]   ;;  %v11151_v54 = vld [vmem:[%s12138_s23 + $0x9e4] ss:$16 sps:$4 sm:$0xff]  }
 0x4ab   : > { %6943 = vmatpush1.bf16.msra.mxu0 %v11083_v55  ;;  %v11154_v55 = vld [vmem:[%s12138_s23 + $0xbe4] ss:$16 sps:$4 sm:$0xff]  }
 0x4ac   : > { %6984 = vmatpush1.bf16.msra.mxu1 %v11086_v56  ;;  %6944 = vmatprep.subr.bf16.mxu0 %v11091_v57  ;;  %v11149_v56 = vld [vmem:[%s12138_s23 + $0x9e0] ss:$16 sps:$4 sm:$0xff]  }
 0x4ad   : > { %v5224_v2 = vpop.f32.mrb[4].mxu0  ;;  %v5265_v3 = vpop.f32.mrb[4].mxu1  ;;  %6985 = vmatprep.subr.bf16.mxu1 %v11094_v58  ;;  %v11152_v57 = vld [vmem:[%s12138_s23 + $0xbe0] ss:$16 sps:$4 sm:$0xff]   ;;  %v11157_v58 = vld [vmem:[%s12138_s23 + $0x80c] ss:$16 sps:$4 sm:$0xff]  }
 0x4ae   : > { %v12996_v7 = vadd.f32 %v5265_v3, %v5224_v2  ;;  %v5226_v8 = vpop.f32.mrb[5].mxu0  ;;  %v5267_v9 = vpop.f32.mrb[5].mxu1  ;;  %v11158_v2 = vld [vmem:[%s12138_s23 + $0xa08] ss:$16 sps:$4 sm:$0xff]   ;;  %v6288_v3 = vrot.slane %v12748_v62, 2 }
 0x4af   : > { %v12998_v10 = vadd.f32 %v5267_v9, %v5226_v8  ;;  %6945 = vmatpush1.bf16.msra.mxu0 %v11089_v59  ;;  %v5228_v11 = vpop.f32.mrb[6].mxu0  ;;  %v5269_v12 = vpop.f32.mrb[6].mxu1  ;;  %v11160_v59 = vld [vmem:[%s12138_s23 + $0xa0c] ss:$16 sps:$4 sm:$0xff]   ;;  %v11161_v9 = vld [vmem:[%s12138_s23 + $0x828] ss:$16 sps:$4 sm:$0xff]  }
 0x4b0   : > { %6986 = vmatpush1.bf16.msra.mxu1 %v11092_v60  ;;  %v5229_v14 = vpop.f32.mrb[7].mxu0  ;;  %v5270_v15 = vpop.f32.mrb[7].mxu1  ;;  %6946 = vmatprep.subr.bf16.mxu0 %v11097_v1  ;;  %v11155_v60 = vld [vmem:[%s12138_s23 + $0x808] ss:$16 sps:$4 sm:$0xff]   ;;  %v6286_v1 = vrot.slane %v12746_v61, 2 }
 0x4b1   : > { %6987 = vmatprep.subr.bf16.mxu1 %v11100_v4  ;;  %v11163_v4 = vld [vmem:[%s12138_s23 + $0x82c] ss:$16 sps:$4 sm:$0xff]   ;;  %v11164_v11 = vld [vmem:[%s12138_s23 + $0xa28] ss:$16 sps:$4 sm:$0xff]  }
 0x4b2   : > { %v11166_v8 = vld [vmem:[%s12138_s23 + $0xa2c] ss:$16 sps:$4 sm:$0xff]   ;;  %v11167_v14 = vld [vmem:[%s12138_s23 + $0x848] ss:$16 sps:$4 sm:$0xff]  }
 0x4b3   : > { %6947 = vmatpush1.bf16.msra.mxu0 %v11095_v13  ;;  %v11169_v12 = vld [vmem:[%s12138_s23 + $0x84c] ss:$16 sps:$4 sm:$0xff]   ;;  %v11170_v15 = vld [vmem:[%s12138_s23 + $0xa48] ss:$16 sps:$4 sm:$0xff]  }
 0x4b4   : > { %6988 = vmatpush1.bf16.msra.mxu1 %v11098_v16  ;;  %6948 = vmatprep.subr.bf16.mxu0 %v11103_v17  ;;  %v11172_v13 = vld [vmem:[%s12138_s23 + $0xa4c] ss:$16 sps:$4 sm:$0xff]   ;;  %v11176_v17 = vld [vmem:[%s12138_s23 + $0xa68] ss:$16 sps:$4 sm:$0xff]  }
 0x4b5   : > { %6989 = vmatprep.subr.bf16.mxu1 %v11106_v18  ;;  %v11178_v16 = vld [vmem:[%s12138_s23 + $0xa6c] ss:$16 sps:$4 sm:$0xff]  }
 0x4b6   : > { %v11181_v18 = vld [vmem:[%s12138_s23 + $0x88c] ss:$16 sps:$4 sm:$0xff]  }
 0x4b7   : > { %6949 = vmatpush1.bf16.msra.mxu0 %v11101_v19  ;;  %v11184_v19 = vld [vmem:[%s12138_s23 + $0xa8c] ss:$16 sps:$4 sm:$0xff]  }
 0x4b8   : > { %6990 = vmatpush1.bf16.msra.mxu1 %v11104_v20  ;;  %6950 = vmatprep.subr.bf16.mxu0 %v11109_v21  ;;  %v11179_v20 = vld [vmem:[%s12138_s23 + $0x888] ss:$16 sps:$4 sm:$0xff]  }
 0x4b9   : > { %6991 = vmatprep.subr.bf16.mxu1 %v11112_v22  ;;  %v11182_v21 = vld [vmem:[%s12138_s23 + $0xa88] ss:$16 sps:$4 sm:$0xff]   ;;  %v11187_v22 = vld [vmem:[%s12138_s23 + $0x8ac] ss:$16 sps:$4 sm:$0xff]  }
 0x4bb   : > { %6951 = vmatpush1.bf16.msra.mxu0 %v11107_v5  ;;  %v11190_v5 = vld [vmem:[%s12138_s23 + $0xaac] ss:$16 sps:$4 sm:$0xff]  }
 0x4bc   : > { %6992 = vmatpush1.bf16.msra.mxu1 %v11110_v6  ;;  %6952 = vmatprep.subr.bf16.mxu0 %v11115_v23  ;;  %v11185_v6 = vld [vmem:[%s12138_s23 + $0x8a8] ss:$16 sps:$4 sm:$0xff]  }
 0x4bd   : > { %6993 = vmatprep.subr.bf16.mxu1 %v11118_v24  ;;  %v11188_v23 = vld [vmem:[%s12138_s23 + $0xaa8] ss:$16 sps:$4 sm:$0xff]   ;;  %v11193_v24 = vld [vmem:[%s12138_s23 + $0x8cc] ss:$16 sps:$4 sm:$0xff]  }
 0x4bf   : > { %6953 = vmatpush1.bf16.msra.mxu0 %v11113_v25 }
 0x4c0   : > { %6994 = vmatpush1.bf16.msra.mxu1 %v11116_v26  ;;  %6954 = vmatprep.subr.bf16.mxu0 %v11121_v27  ;;  %v11196_v27 = vld [vmem:[%s12138_s23 + $0xacc] ss:$16 sps:$4 sm:$0xff]  }
 0x4c1   : > { %6995 = vmatprep.subr.bf16.mxu1 %v11124_v28 }
 0x4c3   : > { %6955 = vmatpush1.bf16.msra.mxu0 %v11119_v29 }
 0x4c4   : > { %6996 = vmatpush1.bf16.msra.mxu1 %v11122_v30  ;;  %6956 = vmatprep.subr.bf16.mxu0 %v11127_v31 }
 0x4c5   : > { %6997 = vmatprep.subr.bf16.mxu1 %v11130_v32 }
 0x4c7   : > { %6957 = vmatpush1.bf16.msra.mxu0 %v11125_v33 }
 0x4c8   : > { %6998 = vmatpush1.bf16.msra.mxu1 %v11128_v34  ;;  %6958 = vmatprep.subr.bf16.mxu0 %v11133_v41  ;;  %v11191_v34 = vld [vmem:[%s12138_s23 + $0x8c8] ss:$16 sps:$4 sm:$0xff]  }
 0x4c9   : > { %6999 = vmatprep.subr.bf16.mxu1 %v11136_v43 }
 0x4cb   : > { %6959 = vmatpush1.bf16.msra.mxu0 %v11131_v44  ;;  %v11194_v44 = vld [vmem:[%s12138_s23 + $0xac8] ss:$16 sps:$4 sm:$0xff]  }
 0x4cc   : > { %7000 = vmatpush1.bf16.msra.mxu1 %v11134_v45  ;;  %6960 = vmatprep.subr.bf16.mxu0 %v11139_v46  ;;  %v11199_v45 = vld [vmem:[%s12138_s23 + $0x8ec] ss:$16 sps:$4 sm:$0xff]  }
 0x4cd   : > { %7001 = vmatprep.subr.bf16.mxu1 %v11142_v47  ;;  %v11202_v46 = vld [vmem:[%s12138_s23 + $0xaec] ss:$16 sps:$4 sm:$0xff]   ;;  %v11197_v47 = vld [vmem:[%s12138_s23 + $0x8e8] ss:$16 sps:$4 sm:$0xff]  }
 0x4cf   : > { %6961 = vmatpush1.bf16.msra.mxu0 %v11137_v48  ;;  %v11200_v48 = vld [vmem:[%s12138_s23 + $0xae8] ss:$16 sps:$4 sm:$0xff]  }
 0x4d0   : > { %7002 = vmatpush1.bf16.msra.mxu1 %v11140_v49  ;;  %6962 = vmatprep.subr.bf16.mxu0 %v11145_v50  ;;  %v11205_v49 = vld [vmem:[%s12138_s23 + $0x90c] ss:$16 sps:$4 sm:$0xff]  }
 0x4d1   : > { %7003 = vmatprep.subr.bf16.mxu1 %v11148_v51  ;;  %v11208_v50 = vld [vmem:[%s12138_s23 + $0xb0c] ss:$16 sps:$4 sm:$0xff]   ;;  %v11203_v51 = vld [vmem:[%s12138_s23 + $0x908] ss:$16 sps:$4 sm:$0xff]  }
 0x4d3   : > { %6963 = vmatpush1.bf16.msra.mxu0 %v11143_v52  ;;  %v11206_v52 = vld [vmem:[%s12138_s23 + $0xb08] ss:$16 sps:$4 sm:$0xff]  }
 0x4d4   : > { %7004 = vmatpush1.bf16.msra.mxu1 %v11146_v53  ;;  %6964 = vmatprep.subr.bf16.mxu0 %v11151_v54  ;;  %v11211_v53 = vld [vmem:[%s12138_s23 + $0x92c] ss:$16 sps:$4 sm:$0xff]  }
 0x4d5   : > { %7005 = vmatprep.subr.bf16.mxu1 %v11154_v55  ;;  %v11214_v54 = vld [vmem:[%s12138_s23 + $0xb2c] ss:$16 sps:$4 sm:$0xff]   ;;  %v11209_v55 = vld [vmem:[%s12138_s23 + $0x928] ss:$16 sps:$4 sm:$0xff]  }
 0x4d7   : > { %6965 = vmatpush1.bf16.msra.mxu0 %v11149_v56  ;;  %v11212_v56 = vld [vmem:[%s12138_s23 + $0xb28] ss:$16 sps:$4 sm:$0xff]  }
 0x4d8   : > { %7006 = vmatpush1.bf16.msra.mxu1 %v11152_v57  ;;  %7016 = vmatprep.subr.bf16.mxu0 %v11157_v58  ;;  %v11217_v57 = vld [vmem:[%s12138_s23 + $0x94c] ss:$16 sps:$4 sm:$0xff]  }
 0x4d9   : > { %7057 = vmatprep.subr.bf16.mxu1 %v11160_v59  ;;  %v11220_v58 = vld [vmem:[%s12138_s23 + $0xb4c] ss:$16 sps:$4 sm:$0xff]   ;;  %v11215_v59 = vld [vmem:[%s12138_s23 + $0x948] ss:$16 sps:$4 sm:$0xff]  }
 0x4da   : > { %6967 = vmatmul.mubr.bf16.vlgmr.msra.gmra.mrb[20].mxu0 %v6286_v1 }
 0x4db   : > { %7008 = vmatmul.mubr.bf16.vlgmr.msra.gmra.mrb[20].mxu1 %v6288_v3  ;;  %7017 = vmatpush1.bf16.msra.mxu0 %v11155_v60  ;;  %v11218_v60 = vld [vmem:[%s12138_s23 + $0xb48] ss:$16 sps:$4 sm:$0xff]  }
 0x4dc   : > { %7048 = vmatprep.mubr.bf16.mxu0 %v6287_v38  ;;  %7058 = vmatpush1.bf16.msra.mxu1 %v11158_v2  ;;  %v11175_v38 = vld [vmem:[%s12138_s23 + $0x86c] ss:$16 sps:$4 sm:$0xff]  }
 0x4dd   : > { %7089 = vmatprep.mubr.bf16.mxu1 %v6289_v42  ;;  %7018 = vmatprep.subr.bf16.mxu0 %v11163_v4  ;;  %v11173_v42 = vld [vmem:[%s12138_s23 + $0x868] ss:$16 sps:$4 sm:$0xff]   ;;  %v11223_v2 = vld [vmem:[%s12138_s23 + $0x96c] ss:$16 sps:$4 sm:$0xff]  }
 0x4de   : > { %7059 = vmatprep.subr.bf16.mxu1 %v11166_v8  ;;  %v11226_v4 = vld [vmem:[%s12138_s23 + $0xb6c] ss:$16 sps:$4 sm:$0xff]   ;;  %v11221_v8 = vld [vmem:[%s12138_s23 + $0x968] ss:$16 sps:$4 sm:$0xff]  }
 0x4df   : > { %7019 = vmatpush1.bf16.msra.mxu0 %v11161_v9  ;;  %v11224_v9 = vld [vmem:[%s12138_s23 + $0xb68] ss:$16 sps:$4 sm:$0xff]  }
 0x4e0   : > { %7060 = vmatpush1.bf16.msra.mxu1 %v11164_v11  ;;  %7020 = vmatprep.subr.bf16.mxu0 %v11169_v12  ;;  %v11229_v11 = vld [vmem:[%s12138_s23 + $0x98c] ss:$16 sps:$4 sm:$0xff]  }
 0x4e1   : > { %7061 = vmatprep.subr.bf16.mxu1 %v11172_v13  ;;  %v11232_v12 = vld [vmem:[%s12138_s23 + $0xb8c] ss:$16 sps:$4 sm:$0xff]   ;;  %v11227_v13 = vld [vmem:[%s12138_s23 + $0x988] ss:$16 sps:$4 sm:$0xff]  }
 0x4e3   : > { %7021 = vmatpush1.bf16.msra.mxu0 %v11167_v14  ;;  %v11230_v14 = vld [vmem:[%s12138_s23 + $0xb88] ss:$16 sps:$4 sm:$0xff]  }
 0x4e4   : > { %7062 = vmatpush1.bf16.msra.mxu1 %v11170_v15  ;;  %7022 = vmatprep.subr.bf16.mxu0 %v11175_v38  ;;  %v11235_v15 = vld [vmem:[%s12138_s23 + $0x9ac] ss:$16 sps:$4 sm:$0xff]  }
 0x4e5   : > { %7063 = vmatprep.subr.bf16.mxu1 %v11178_v16  ;;  %v11238_v38 = vld [vmem:[%s12138_s23 + $0xbac] ss:$16 sps:$4 sm:$0xff]   ;;  %v11233_v16 = vld [vmem:[%s12138_s23 + $0x9a8] ss:$16 sps:$4 sm:$0xff]  }
 0x4e7   : > { %7023 = vmatpush1.bf16.msra.mxu0 %v11173_v42  ;;  %v11236_v42 = vld [vmem:[%s12138_s23 + $0xba8] ss:$16 sps:$4 sm:$0xff]  }
 0x4e8   : > { %7064 = vmatpush1.bf16.msra.mxu1 %v11176_v17  ;;  %7024 = vmatprep.subr.bf16.mxu0 %v11181_v18  ;;  %v11241_v17 = vld [vmem:[%s12138_s23 + $0x9cc] ss:$16 sps:$4 sm:$0xff]  }
 0x4e9   : > { %7065 = vmatprep.subr.bf16.mxu1 %v11184_v19  ;;  %v11244_v18 = vld [vmem:[%s12138_s23 + $0xbcc] ss:$16 sps:$4 sm:$0xff]   ;;  %v11239_v19 = vld [vmem:[%s12138_s23 + $0x9c8] ss:$16 sps:$4 sm:$0xff]  }
 0x4eb   : > { %7025 = vmatpush1.bf16.msra.mxu0 %v11179_v20  ;;  %v11242_v20 = vld [vmem:[%s12138_s23 + $0xbc8] ss:$16 sps:$4 sm:$0xff]  }
 0x4ec   : > { %7066 = vmatpush1.bf16.msra.mxu1 %v11182_v21  ;;  %7026 = vmatprep.subr.bf16.mxu0 %v11187_v22  ;;  %v11247_v21 = vld [vmem:[%s12138_s23 + $0x9ec] ss:$16 sps:$4 sm:$0xff]  }
 0x4ed   : > { %v5306_v25 = vpop.f32.mrb[8].mxu0  ;;  %v5347_v26 = vpop.f32.mrb[8].mxu1  ;;  %7067 = vmatprep.subr.bf16.mxu1 %v11190_v5  ;;  %v11250_v22 = vld [vmem:[%s12138_s23 + $0xbec] ss:$16 sps:$4 sm:$0xff]   ;;  %v11245_v5 = vld [vmem:[%s12138_s23 + $0x9e8] ss:$16 sps:$4 sm:$0xff]  }
 0x4ee   : > { %v13074_v28 = vadd.f32 %v5347_v26, %v5306_v25  ;;  %v5308_v29 = vpop.f32.mrb[9].mxu0  ;;  %v5349_v30 = vpop.f32.mrb[9].mxu1  ;;  %v11251_v25 = vld [vmem:[%s12138_s23 + $0xc00] ss:$16 sps:$4 sm:$0xff]  }
 0x4ef   : > { %v13076_v31 = vadd.f32 %v5349_v30, %v5308_v29  ;;  %v5310_v32 = vpop.f32.mrb[10].mxu0  ;;  %v5351_v33 = vpop.f32.mrb[10].mxu1  ;;  %7027 = vmatpush1.bf16.msra.mxu0 %v11185_v6  ;;  %v11248_v6 = vld [vmem:[%s12138_s23 + $0xbe8] ss:$16 sps:$4 sm:$0xff]   ;;  %v11254_v26 = vld [vmem:[%s12138_s23 + $0xe00] ss:$16 sps:$4 sm:$0xff]  }
 0x4f0   : > { %7068 = vmatpush1.bf16.msra.mxu1 %v11188_v23  ;;  %v5311_v41 = vpop.f32.mrb[11].mxu0  ;;  %v5352_v43 = vpop.f32.mrb[11].mxu1  ;;  %7028 = vmatprep.subr.bf16.mxu0 %v11193_v24  ;;  %v11253_v23 = vld [vmem:[%s12138_s23 + $0xc04] ss:$16 sps:$4 sm:$0xff]   ;;  %v7231_v29 = vrot.slane %v12750_v63, 3  ;;  %v7233_v32 = vrot.slane %v12752_v0, 3 }
 0x4f1   : > { %7069 = vmatprep.subr.bf16.mxu1 %v11196_v27  ;;  %v11256_v24 = vld [vmem:[%s12138_s23 + $0xe04] ss:$16 sps:$4 sm:$0xff]   ;;  %v11257_v33 = vld [vmem:[%s12138_s23 + $0xc20] ss:$16 sps:$4 sm:$0xff]   ;;  %v11362_v63 = vld [vmem:[%s12138_s23 + $0xe48] ss:$16 sps:$4 sm:$0xff]  }
 0x4f2   : > { %v11259_v27 = vld [vmem:[%s12138_s23 + $0xc24] ss:$16 sps:$4 sm:$0xff]   ;;  %v11263_v41 = vld [vmem:[%s12138_s23 + $0xc40] ss:$16 sps:$4 sm:$0xff]   ;;  %v11365_v0 = vld [vmem:[%s12138_s23 + $0xc68] ss:$16 sps:$4 sm:$0xff]  }
 0x4f3   : > { %7029 = vmatpush1.bf16.msra.mxu0 %v11191_v34  ;;  %v11262_v30 = vld [vmem:[%s12138_s23 + $0xe24] ss:$16 sps:$4 sm:$0xff]   ;;  %v11266_v43 = vld [vmem:[%s12138_s23 + $0xe40] ss:$16 sps:$4 sm:$0xff]  }
 0x4f4   : > { %7070 = vmatpush1.bf16.msra.mxu1 %v11194_v44  ;;  %7030 = vmatprep.subr.bf16.mxu0 %v11199_v45  ;;  %v11265_v34 = vld [vmem:[%s12138_s23 + $0xc44] ss:$16 sps:$4 sm:$0xff]  }
 0x4f5   : > { %7071 = vmatprep.subr.bf16.mxu1 %v11202_v46  ;;  %v11271_v44 = vld [vmem:[%s12138_s23 + $0xc64] ss:$16 sps:$4 sm:$0xff]   ;;  %v11269_v46 = vld [vmem:[%s12138_s23 + $0xc60] ss:$16 sps:$4 sm:$0xff]  }
 0x4f6   : > { %v11274_v45 = vld [vmem:[%s12138_s23 + $0xe64] ss:$16 sps:$4 sm:$0xff]  }
 0x4f7   : > { %7031 = vmatpush1.bf16.msra.mxu0 %v11197_v47  ;;  %v11272_v47 = vld [vmem:[%s12138_s23 + $0xe60] ss:$16 sps:$4 sm:$0xff]  }
 0x4f8   : > { %7072 = vmatpush1.bf16.msra.mxu1 %v11200_v48  ;;  %7032 = vmatprep.subr.bf16.mxu0 %v11205_v49  ;;  %v11277_v48 = vld [vmem:[%s12138_s23 + $0xc84] ss:$16 sps:$4 sm:$0xff]  }
 0x4f9   : > { %7073 = vmatprep.subr.bf16.mxu1 %v11208_v50  ;;  %v11280_v49 = vld [vmem:[%s12138_s23 + $0xe84] ss:$16 sps:$4 sm:$0xff]   ;;  %v11275_v50 = vld [vmem:[%s12138_s23 + $0xc80] ss:$16 sps:$4 sm:$0xff]  }
 0x4fb   : > { %7033 = vmatpush1.bf16.msra.mxu0 %v11203_v51  ;;  %v11278_v51 = vld [vmem:[%s12138_s23 + $0xe80] ss:$16 sps:$4 sm:$0xff]  }
 0x4fc   : > { %7074 = vmatpush1.bf16.msra.mxu1 %v11206_v52  ;;  %7034 = vmatprep.subr.bf16.mxu0 %v11211_v53  ;;  %v11283_v52 = vld [vmem:[%s12138_s23 + $0xca4] ss:$16 sps:$4 sm:$0xff]  }
 0x4fd   : > { %7075 = vmatprep.subr.bf16.mxu1 %v11214_v54  ;;  %v11286_v53 = vld [vmem:[%s12138_s23 + $0xea4] ss:$16 sps:$4 sm:$0xff]   ;;  %v11281_v54 = vld [vmem:[%s12138_s23 + $0xca0] ss:$16 sps:$4 sm:$0xff]  }
 0x4ff   : > { %7035 = vmatpush1.bf16.msra.mxu0 %v11209_v55  ;;  %v11284_v55 = vld [vmem:[%s12138_s23 + $0xea0] ss:$16 sps:$4 sm:$0xff]  }
 0x500   : > { %7076 = vmatpush1.bf16.msra.mxu1 %v11212_v56  ;;  %7036 = vmatprep.subr.bf16.mxu0 %v11217_v57  ;;  %v11289_v56 = vld [vmem:[%s12138_s23 + $0xcc4] ss:$16 sps:$4 sm:$0xff]  }
 0x501   : > { %7077 = vmatprep.subr.bf16.mxu1 %v11220_v58  ;;  %v11292_v58 = vld [vmem:[%s12138_s23 + $0xec4] ss:$16 sps:$4 sm:$0xff]  }
 0x503   : > { %7037 = vmatpush1.bf16.msra.mxu0 %v11215_v59 }
 0x504   : > { %7078 = vmatpush1.bf16.msra.mxu1 %v11218_v60  ;;  %7038 = vmatprep.subr.bf16.mxu0 %v11223_v2 }
 0x505   : > { %7079 = vmatprep.subr.bf16.mxu1 %v11226_v4 }
 0x507   : > { %7039 = vmatpush1.bf16.msra.mxu0 %v11221_v8 }
 0x508   : > { %7080 = vmatpush1.bf16.msra.mxu1 %v11224_v9  ;;  %7040 = vmatprep.subr.bf16.mxu0 %v11229_v11  ;;  %v11287_v11 = vld [vmem:[%s12138_s23 + $0xcc0] ss:$16 sps:$4 sm:$0xff]  }
 0x509   : > { %7081 = vmatprep.subr.bf16.mxu1 %v11232_v12 }
 0x50b   : > { %7041 = vmatpush1.bf16.msra.mxu0 %v11227_v13 }
 0x50c   : > { %7082 = vmatpush1.bf16.msra.mxu1 %v11230_v14  ;;  %7042 = vmatprep.subr.bf16.mxu0 %v11235_v15  ;;  %v11295_v15 = vld [vmem:[%s12138_s23 + $0xce4] ss:$16 sps:$4 sm:$0xff]  }
 0x50d   : > { %7083 = vmatprep.subr.bf16.mxu1 %v11238_v38 }
 0x50f   : > { %7043 = vmatpush1.bf16.msra.mxu0 %v11233_v16  ;;  %v11298_v16 = vld [vmem:[%s12138_s23 + $0xee4] ss:$16 sps:$4 sm:$0xff]  }
 0x510   : > { %7084 = vmatpush1.bf16.msra.mxu1 %v11236_v42  ;;  %7044 = vmatprep.subr.bf16.mxu0 %v11241_v17  ;;  %v11293_v42 = vld [vmem:[%s12138_s23 + $0xce0] ss:$16 sps:$4 sm:$0xff]  }
 0x511   : > { %7085 = vmatprep.subr.bf16.mxu1 %v11244_v18  ;;  %v11296_v17 = vld [vmem:[%s12138_s23 + $0xee0] ss:$16 sps:$4 sm:$0xff]   ;;  %v11301_v18 = vld [vmem:[%s12138_s23 + $0xd04] ss:$16 sps:$4 sm:$0xff]  }
 0x513   : > { %7045 = vmatpush1.bf16.msra.mxu0 %v11239_v19  ;;  %v11304_v19 = vld [vmem:[%s12138_s23 + $0xf04] ss:$16 sps:$4 sm:$0xff]  }
 0x514   : > { %7086 = vmatpush1.bf16.msra.mxu1 %v11242_v20  ;;  %7046 = vmatprep.subr.bf16.mxu0 %v11247_v21  ;;  %v11299_v20 = vld [vmem:[%s12138_s23 + $0xd00] ss:$16 sps:$4 sm:$0xff]  }
 0x515   : > { %7087 = vmatprep.subr.bf16.mxu1 %v11250_v22  ;;  %v11302_v21 = vld [vmem:[%s12138_s23 + $0xf00] ss:$16 sps:$4 sm:$0xff]   ;;  %v11307_v22 = vld [vmem:[%s12138_s23 + $0xd24] ss:$16 sps:$4 sm:$0xff]  }
 0x517   : > { %7047 = vmatpush1.bf16.msra.mxu0 %v11245_v5  ;;  %v11310_v5 = vld [vmem:[%s12138_s23 + $0xf24] ss:$16 sps:$4 sm:$0xff]  }
 0x518   : > { %7088 = vmatpush1.bf16.msra.mxu1 %v11248_v6  ;;  %7878 = vmatprep.subr.bf16.mxu0 %v11253_v23  ;;  %v11305_v6 = vld [vmem:[%s12138_s23 + $0xd20] ss:$16 sps:$4 sm:$0xff]  }
 0x519   : > { %7919 = vmatprep.subr.bf16.mxu1 %v11256_v24  ;;  %v11308_v23 = vld [vmem:[%s12138_s23 + $0xf20] ss:$16 sps:$4 sm:$0xff]   ;;  %v11313_v24 = vld [vmem:[%s12138_s23 + $0xd44] ss:$16 sps:$4 sm:$0xff]  }
 0x51a   : > { %7049 = vmatmul.mubr.bf16.vlgmr.msra.gmra.mrb[24].mxu0 %v6286_v1  ;;  %v11260_v1 = vld [vmem:[%s12138_s23 + $0xe20] ss:$16 sps:$4 sm:$0xff]  }
 0x51b   : > { %7090 = vmatmul.mubr.bf16.vlgmr.msra.gmra.mrb[24].mxu1 %v6288_v3  ;;  %7879 = vmatpush1.bf16.msra.mxu0 %v11251_v25  ;;  %v11268_v3 = vld [vmem:[%s12138_s23 + $0xe44] ss:$16 sps:$4 sm:$0xff]  }
 0x51c   : > { %7910 = vmatprep.mubr.bf16.mxu0 %v7231_v29  ;;  %7920 = vmatpush1.bf16.msra.mxu1 %v11254_v26  ;;  %v11316_v25 = vld [vmem:[%s12138_s23 + $0xf44] ss:$16 sps:$4 sm:$0xff]   ;;  %v11311_v26 = vld [vmem:[%s12138_s23 + $0xd40] ss:$16 sps:$4 sm:$0xff]  }
 0x51d   : > { %7951 = vmatprep.mubr.bf16.mxu1 %v7233_v32  ;;  %7880 = vmatprep.subr.bf16.mxu0 %v11259_v27  ;;  %v11314_v27 = vld [vmem:[%s12138_s23 + $0xf40] ss:$16 sps:$4 sm:$0xff]  }
 0x51e   : > { %7921 = vmatprep.subr.bf16.mxu1 %v11262_v30  ;;  %v11319_v30 = vld [vmem:[%s12138_s23 + $0xd64] ss:$16 sps:$4 sm:$0xff]  }
 0x51f   : > { %7881 = vmatpush1.bf16.msra.mxu0 %v11257_v33  ;;  %v11322_v33 = vld [vmem:[%s12138_s23 + $0xf64] ss:$16 sps:$4 sm:$0xff]  }
 0x520   : > { %7922 = vmatpush1.bf16.msra.mxu1 %v11260_v1  ;;  %7882 = vmatprep.subr.bf16.mxu0 %v11265_v34  ;;  %v11317_v1 = vld [vmem:[%s12138_s23 + $0xd60] ss:$16 sps:$4 sm:$0xff]  }
 0x521   : > { %7923 = vmatprep.subr.bf16.mxu1 %v11268_v3  ;;  %v11320_v34 = vld [vmem:[%s12138_s23 + $0xf60] ss:$16 sps:$4 sm:$0xff]   ;;  %v11325_v3 = vld [vmem:[%s12138_s23 + $0xd84] ss:$16 sps:$4 sm:$0xff]  }
 0x523   : > { %7883 = vmatpush1.bf16.msra.mxu0 %v11263_v41  ;;  %v11328_v41 = vld [vmem:[%s12138_s23 + $0xf84] ss:$16 sps:$4 sm:$0xff]  }
 0x524   : > { %7924 = vmatpush1.bf16.msra.mxu1 %v11266_v43  ;;  %7884 = vmatprep.subr.bf16.mxu0 %v11271_v44  ;;  %v11323_v43 = vld [vmem:[%s12138_s23 + $0xd80] ss:$16 sps:$4 sm:$0xff]  }
 0x525   : > { %7925 = vmatprep.subr.bf16.mxu1 %v11274_v45  ;;  %v11326_v44 = vld [vmem:[%s12138_s23 + $0xf80] ss:$16 sps:$4 sm:$0xff]   ;;  %v11331_v45 = vld [vmem:[%s12138_s23 + $0xda4] ss:$16 sps:$4 sm:$0xff]  }
 0x527   : > { %7885 = vmatpush1.bf16.msra.mxu0 %v11269_v46  ;;  %v11334_v46 = vld [vmem:[%s12138_s23 + $0xfa4] ss:$16 sps:$4 sm:$0xff]  }
 0x528   : > { %7926 = vmatpush1.bf16.msra.mxu1 %v11272_v47  ;;  %7886 = vmatprep.subr.bf16.mxu0 %v11277_v48  ;;  %v11329_v47 = vld [vmem:[%s12138_s23 + $0xda0] ss:$16 sps:$4 sm:$0xff]  }
 0x529   : > { %7927 = vmatprep.subr.bf16.mxu1 %v11280_v49  ;;  %v11332_v48 = vld [vmem:[%s12138_s23 + $0xfa0] ss:$16 sps:$4 sm:$0xff]   ;;  %v11337_v49 = vld [vmem:[%s12138_s23 + $0xdc4] ss:$16 sps:$4 sm:$0xff]  }
 0x52b   : > { %7887 = vmatpush1.bf16.msra.mxu0 %v11275_v50  ;;  %v11340_v50 = vld [vmem:[%s12138_s23 + $0xfc4] ss:$16 sps:$4 sm:$0xff]  }
 0x52c   : > { %7928 = vmatpush1.bf16.msra.mxu1 %v11278_v51  ;;  %7888 = vmatprep.subr.bf16.mxu0 %v11283_v52  ;;  %v11335_v51 = vld [vmem:[%s12138_s23 + $0xdc0] ss:$16 sps:$4 sm:$0xff]  }
 0x52d   : > { %v6028_v57 = vpop.f32.mrb[12].mxu0  ;;  %7929 = vmatprep.subr.bf16.mxu1 %v11286_v53  ;;  %v11338_v52 = vld [vmem:[%s12138_s23 + $0xfc0] ss:$16 sps:$4 sm:$0xff]   ;;  %v11343_v53 = vld [vmem:[%s12138_s23 + $0xde4] ss:$16 sps:$4 sm:$0xff]  }
 0x52e   : > { %v6029_v59 = vadd.f32 %v6028_v57, %v12996_v7  ;;  %v6069_v60 = vpop.f32.mrb[12].mxu1  ;;  %v6030_v2 = vpop.f32.mrb[13].mxu0  ;;  %v11290_v7 = vld [vmem:[%s12138_s23 + $0xec0] ss:$16 sps:$4 sm:$0xff]   ;;  %v11349_v57 = vld [vmem:[%s12138_s23 + $0xc0c] ss:$16 sps:$4 sm:$0xff]  }
 0x52f   : > { %v6031_v4 = vadd.f32 %v6030_v2, %v12998_v10  ;;  %v6071_v8 = vpop.f32.mrb[13].mxu1  ;;  %v6032_v9 = vpop.f32.mrb[14].mxu0  ;;  %7889 = vmatpush1.bf16.msra.mxu0 %v11281_v54  ;;  %v11346_v54 = vld [vmem:[%s12138_s23 + $0xfe4] ss:$16 sps:$4 sm:$0xff]   ;;  %v11350_v2 = vld [vmem:[%s12138_s23 + $0xe08] ss:$16 sps:$4 sm:$0xff]  }
 0x530   : > { %v13155_v12 = vadd.f32 %v6069_v60, %v6029_v59  ;;  %v6073_v13 = vpop.f32.mrb[14].mxu1  ;;  %7930 = vmatpush1.bf16.msra.mxu1 %v11284_v55  ;;  %v6033_v14 = vpop.f32.mrb[15].mxu0  ;;  %7890 = vmatprep.subr.bf16.mxu0 %v11289_v56  ;;  %v11341_v55 = vld [vmem:[%s12138_s23 + $0xde0] ss:$16 sps:$4 sm:$0xff]   ;;  %v11347_v59 = vld [vmem:[%s12138_s23 + $0xc08] ss:$16 sps:$4 sm:$0xff]  }
 0x531   : > { %v13159_v38 = vadd.f32 %v6071_v8, %v6031_v4  ;;  %v6074_v10 = vpop.f32.mrb[15].mxu1  ;;  %7931 = vmatprep.subr.bf16.mxu1 %v11292_v58  ;;  %v11344_v56 = vld [vmem:[%s12138_s23 + $0xfe0] ss:$16 sps:$4 sm:$0xff]   ;;  %v11352_v58 = vld [vmem:[%s12138_s23 + $0xe0c] ss:$16 sps:$4 sm:$0xff]   ;;  %v7230_v60 = vrot.slane %v12746_v61, 3 }
 0x532   : > { %v7232_v4 = vrot.slane %v12748_v62, 3  ;;  %v11355_v8 = vld [vmem:[%s12138_s23 + $0xc2c] ss:$16 sps:$4 sm:$0xff]   ;;  %v11356_v13 = vld [vmem:[%s12138_s23 + $0xe28] ss:$16 sps:$4 sm:$0xff]  }
 0x533   : > { %7891 = vmatpush1.bf16.msra.mxu0 %v11287_v11  ;;  %v11358_v9 = vld [vmem:[%s12138_s23 + $0xe2c] ss:$16 sps:$4 sm:$0xff]   ;;  %v11353_v11 = vld [vmem:[%s12138_s23 + $0xc28] ss:$16 sps:$4 sm:$0xff]  }
 0x534   : > { %7932 = vmatpush1.bf16.msra.mxu1 %v11290_v7  ;;  %7892 = vmatprep.subr.bf16.mxu0 %v11295_v15  ;;  %v11361_v14 = vld [vmem:[%s12138_s23 + $0xc4c] ss:$16 sps:$4 sm:$0xff]   ;;  %v11359_v15 = vld [vmem:[%s12138_s23 + $0xc48] ss:$16 sps:$4 sm:$0xff]  }
 0x535   : > { %7933 = vmatprep.subr.bf16.mxu1 %v11298_v16  ;;  %v11364_v7 = vld [vmem:[%s12138_s23 + $0xe4c] ss:$16 sps:$4 sm:$0xff]  }
 0x536   : > { %v11370_v10 = vld [vmem:[%s12138_s23 + $0xe6c] ss:$16 sps:$4 sm:$0xff]  }
 0x537   : > { %7893 = vmatpush1.bf16.msra.mxu0 %v11293_v42  ;;  %v11373_v16 = vld [vmem:[%s12138_s23 + $0xc8c] ss:$16 sps:$4 sm:$0xff]  }
 0x538   : > { %7934 = vmatpush1.bf16.msra.mxu1 %v11296_v17  ;;  %7894 = vmatprep.subr.bf16.mxu0 %v11301_v18  ;;  %v11376_v42 = vld [vmem:[%s12138_s23 + $0xe8c] ss:$16 sps:$4 sm:$0xff]   ;;  %v11371_v17 = vld [vmem:[%s12138_s23 + $0xc88] ss:$16 sps:$4 sm:$0xff]  }
 0x539   : > { %7935 = vmatprep.subr.bf16.mxu1 %v11304_v19  ;;  %v11374_v18 = vld [vmem:[%s12138_s23 + $0xe88] ss:$16 sps:$4 sm:$0xff]   ;;  %v11379_v19 = vld [vmem:[%s12138_s23 + $0xcac] ss:$16 sps:$4 sm:$0xff]  }
 0x53a   : > { %v11452_v61 = vld [vmem:[%s12147_s5 + $0x20] sm:$0xff]  }
 0x53b   : > { %7895 = vmatpush1.bf16.msra.mxu0 %v11299_v20  ;;  %v11382_v20 = vld [vmem:[%s12138_s23 + $0xeac] ss:$16 sps:$4 sm:$0xff]  }
 0x53c   : > { %7936 = vmatpush1.bf16.msra.mxu1 %v11302_v21  ;;  %7896 = vmatprep.subr.bf16.mxu0 %v11307_v22  ;;  %v11377_v21 = vld [vmem:[%s12138_s23 + $0xca8] ss:$16 sps:$4 sm:$0xff]  }
 0x53d   : > { %7937 = vmatprep.subr.bf16.mxu1 %v11310_v5  ;;  %v11380_v22 = vld [vmem:[%s12138_s23 + $0xea8] ss:$16 sps:$4 sm:$0xff]   ;;  %v11385_v5 = vld [vmem:[%s12138_s23 + $0xccc] ss:$16 sps:$4 sm:$0xff]  }
 0x53f   : > { %7897 = vmatpush1.bf16.msra.mxu0 %v11305_v6 }
 0x540   : > { %7938 = vmatpush1.bf16.msra.mxu1 %v11308_v23  ;;  %7898 = vmatprep.subr.bf16.mxu0 %v11313_v24  ;;  %v11388_v23 = vld [vmem:[%s12138_s23 + $0xecc] ss:$16 sps:$4 sm:$0xff]  }
 0x541   : > { %7939 = vmatprep.subr.bf16.mxu1 %v11316_v25 }
 0x543   : > { %7899 = vmatpush1.bf16.msra.mxu0 %v11311_v26 }
 0x544   : > { %7940 = vmatpush1.bf16.msra.mxu1 %v11314_v27  ;;  %7900 = vmatprep.subr.bf16.mxu0 %v11319_v30 }
 0x545   : > { %7941 = vmatprep.subr.bf16.mxu1 %v11322_v33 }
 0x547   : > { %7901 = vmatpush1.bf16.msra.mxu0 %v11317_v1  ;;  %v11383_v1 = vld [vmem:[%s12138_s23 + $0xcc8] ss:$16 sps:$4 sm:$0xff]  }
 0x548   : > { %7942 = vmatpush1.bf16.msra.mxu1 %v11320_v34  ;;  %7902 = vmatprep.subr.bf16.mxu0 %v11325_v3 }
 0x549   : > { %7943 = vmatprep.subr.bf16.mxu1 %v11328_v41 }
 0x54b   : > { %7903 = vmatpush1.bf16.msra.mxu0 %v11323_v43  ;;  %v11391_v43 = vld [vmem:[%s12138_s23 + $0xcec] ss:$16 sps:$4 sm:$0xff]  }
 0x54c   : > { %7944 = vmatpush1.bf16.msra.mxu1 %v11326_v44  ;;  %7904 = vmatprep.subr.bf16.mxu0 %v11331_v45  ;;  %v11394_v45 = vld [vmem:[%s12138_s23 + $0xeec] ss:$16 sps:$4 sm:$0xff]  }
 0x54d   : > { %7945 = vmatprep.subr.bf16.mxu1 %v11334_v46  ;;  %v11389_v46 = vld [vmem:[%s12138_s23 + $0xce8] ss:$16 sps:$4 sm:$0xff]  }
 0x54f   : > { %7905 = vmatpush1.bf16.msra.mxu0 %v11329_v47  ;;  %v11392_v47 = vld [vmem:[%s12138_s23 + $0xee8] ss:$16 sps:$4 sm:$0xff]  }
 0x550   : > { %7946 = vmatpush1.bf16.msra.mxu1 %v11332_v48  ;;  %7906 = vmatprep.subr.bf16.mxu0 %v11337_v49  ;;  %v11397_v48 = vld [vmem:[%s12138_s23 + $0xd0c] ss:$16 sps:$4 sm:$0xff]  }
 0x551   : > { %7947 = vmatprep.subr.bf16.mxu1 %v11340_v50  ;;  %v11400_v49 = vld [vmem:[%s12138_s23 + $0xf0c] ss:$16 sps:$4 sm:$0xff]   ;;  %v11395_v50 = vld [vmem:[%s12138_s23 + $0xd08] ss:$16 sps:$4 sm:$0xff]  }
 0x553   : > { %7907 = vmatpush1.bf16.msra.mxu0 %v11335_v51  ;;  %v11398_v51 = vld [vmem:[%s12138_s23 + $0xf08] ss:$16 sps:$4 sm:$0xff]  }
 0x554   : > { %7948 = vmatpush1.bf16.msra.mxu1 %v11338_v52  ;;  %7908 = vmatprep.subr.bf16.mxu0 %v11343_v53  ;;  %v11403_v52 = vld [vmem:[%s12138_s23 + $0xd2c] ss:$16 sps:$4 sm:$0xff]  }
 0x555   : > { %7949 = vmatprep.subr.bf16.mxu1 %v11346_v54  ;;  %v11406_v53 = vld [vmem:[%s12138_s23 + $0xf2c] ss:$16 sps:$4 sm:$0xff]   ;;  %v11401_v54 = vld [vmem:[%s12138_s23 + $0xd28] ss:$16 sps:$4 sm:$0xff]  }
 0x557   : > { %7909 = vmatpush1.bf16.msra.mxu0 %v11341_v55  ;;  %v11404_v55 = vld [vmem:[%s12138_s23 + $0xf28] ss:$16 sps:$4 sm:$0xff]  }
 0x558   : > { %7950 = vmatpush1.bf16.msra.mxu1 %v11344_v56  ;;  %7960 = vmatprep.subr.bf16.mxu0 %v11349_v57  ;;  %v11409_v56 = vld [vmem:[%s12138_s23 + $0xd4c] ss:$16 sps:$4 sm:$0xff]  }
 0x559   : > { %8001 = vmatprep.subr.bf16.mxu1 %v11352_v58  ;;  %v11412_v57 = vld [vmem:[%s12138_s23 + $0xf4c] ss:$16 sps:$4 sm:$0xff]   ;;  %v11407_v58 = vld [vmem:[%s12138_s23 + $0xd48] ss:$16 sps:$4 sm:$0xff]  }
 0x55a   : > { %7911 = vmatmul.mubr.bf16.vlgmr.msra.gmra.mrb[28].mxu0 %v7230_v60 }
 0x55b   : > { %7952 = vmatmul.mubr.bf16.vlgmr.msra.gmra.mrb[28].mxu1 %v7232_v4  ;;  %7961 = vmatpush1.bf16.msra.mxu0 %v11347_v59  ;;  %v11410_v59 = vld [vmem:[%s12138_s23 + $0xf48] ss:$16 sps:$4 sm:$0xff]  }
 0x55c   : > { %7992 = vmatprep.mubr.bf16.mxu0 %v7231_v29  ;;  %8002 = vmatpush1.bf16.msra.mxu1 %v11350_v2  ;;  %v11367_v29 = vld [vmem:[%s12138_s23 + $0xc6c] ss:$16 sps:$4 sm:$0xff]  }
 0x55d   : > { %8033 = vmatprep.mubr.bf16.mxu1 %v7233_v32  ;;  %7962 = vmatprep.subr.bf16.mxu0 %v11355_v8  ;;  %v11368_v32 = vld [vmem:[%s12138_s23 + $0xe68] ss:$16 sps:$4 sm:$0xff]   ;;  %v11415_v2 = vld [vmem:[%s12138_s23 + $0xd6c] ss:$16 sps:$4 sm:$0xff]  }
 0x55e   : > { %8003 = vmatprep.subr.bf16.mxu1 %v11358_v9  ;;  %v11418_v8 = vld [vmem:[%s12138_s23 + $0xf6c] ss:$16 sps:$4 sm:$0xff]   ;;  %v11413_v9 = vld [vmem:[%s12138_s23 + $0xd68] ss:$16 sps:$4 sm:$0xff]  }
 0x55f   : > { %7963 = vmatpush1.bf16.msra.mxu0 %v11353_v11  ;;  %v11416_v11 = vld [vmem:[%s12138_s23 + $0xf68] ss:$16 sps:$4 sm:$0xff]  }
 0x560   : > { %8004 = vmatpush1.bf16.msra.mxu1 %v11356_v13  ;;  %7964 = vmatprep.subr.bf16.mxu0 %v11361_v14  ;;  %v11421_v13 = vld [vmem:[%s12138_s23 + $0xd8c] ss:$16 sps:$4 sm:$0xff]  }
 0x561   : > { %8005 = vmatprep.subr.bf16.mxu1 %v11364_v7  ;;  %v11424_v14 = vld [vmem:[%s12138_s23 + $0xf8c] ss:$16 sps:$4 sm:$0xff]   ;;  %v11419_v7 = vld [vmem:[%s12138_s23 + $0xd88] ss:$16 sps:$4 sm:$0xff]  }
 0x563   : > { %7965 = vmatpush1.bf16.msra.mxu0 %v11359_v15  ;;  %v11422_v15 = vld [vmem:[%s12138_s23 + $0xf88] ss:$16 sps:$4 sm:$0xff]  }
 0x564   : > { %8006 = vmatpush1.bf16.msra.mxu1 %v11362_v63  ;;  %7966 = vmatprep.subr.bf16.mxu0 %v11367_v29  ;;  %v11427_v63 = vld [vmem:[%s12138_s23 + $0xdac] ss:$16 sps:$4 sm:$0xff]  }
 0x565   : > { %8007 = vmatprep.subr.bf16.mxu1 %v11370_v10  ;;  %v11430_v29 = vld [vmem:[%s12138_s23 + $0xfac] ss:$16 sps:$4 sm:$0xff]   ;;  %v11425_v10 = vld [vmem:[%s12138_s23 + $0xda8] ss:$16 sps:$4 sm:$0xff]  }
 0x567   : > { %7967 = vmatpush1.bf16.msra.mxu0 %v11365_v0  ;;  %v11428_v0 = vld [vmem:[%s12138_s23 + $0xfa8] ss:$16 sps:$4 sm:$0xff]  }
 0x568   : > { %8008 = vmatpush1.bf16.msra.mxu1 %v11368_v32  ;;  %7968 = vmatprep.subr.bf16.mxu0 %v11373_v16  ;;  %v11433_v32 = vld [vmem:[%s12138_s23 + $0xdcc] ss:$16 sps:$4 sm:$0xff]  }
 0x569   : > { %8009 = vmatprep.subr.bf16.mxu1 %v11376_v42  ;;  %v11436_v16 = vld [vmem:[%s12138_s23 + $0xfcc] ss:$16 sps:$4 sm:$0xff]   ;;  %v11431_v42 = vld [vmem:[%s12138_s23 + $0xdc8] ss:$16 sps:$4 sm:$0xff]  }
 0x56b   : > { %7969 = vmatpush1.bf16.msra.mxu0 %v11371_v17  ;;  %v11434_v17 = vld [vmem:[%s12138_s23 + $0xfc8] ss:$16 sps:$4 sm:$0xff]  }
 0x56c   : > { %8010 = vmatpush1.bf16.msra.mxu1 %v11374_v18  ;;  %7970 = vmatprep.subr.bf16.mxu0 %v11379_v19  ;;  %v11439_v18 = vld [vmem:[%s12138_s23 + $0xdec] ss:$16 sps:$4 sm:$0xff]  }
 0x56d   : > { %v6110_v6 = vpop.f32.mrb[16].mxu0  ;;  %8011 = vmatprep.subr.bf16.mxu1 %v11382_v20  ;;  %v11442_v19 = vld [vmem:[%s12138_s23 + $0xfec] ss:$16 sps:$4 sm:$0xff]   ;;  %v11437_v20 = vld [vmem:[%s12138_s23 + $0xde8] ss:$16 sps:$4 sm:$0xff]  }
 0x56e   : > { %v6111_v24 = vadd.f32 %v6110_v6, %v13074_v28  ;;  %v6151_v25 = vpop.f32.mrb[16].mxu1  ;;  %v6112_v26 = vpop.f32.mrb[17].mxu0  ;;  %v11386_v28 = vld [vmem:[%s12138_s23 + $0xec8] ss:$16 sps:$4 sm:$0xff]   ;;  %v11445_v6 = vld [vmem:[%s12147_s5 + $0x48] sm:$0xff]  }
 0x56f   : > { %v6113_v27 = vadd.f32 %v6112_v26, %v13076_v31  ;;  %v6153_v30 = vpop.f32.mrb[17].mxu1  ;;  %v6114_v33 = vpop.f32.mrb[18].mxu0  ;;  %7971 = vmatpush1.bf16.msra.mxu0 %v11377_v21  ;;  %v11440_v21 = vld [vmem:[%s12138_s23 + $0xfe8] ss:$16 sps:$4 sm:$0xff]   ;;  %v11449_v26 = vld [vmem:[%s12147_s5 + $0x58] sm:$0xff]  }
 0x570   : > { %v13235_v34 = vadd.f32 %v6151_v25, %v6111_v24  ;;  %v6155_v3 = vpop.f32.mrb[18].mxu1  ;;  %8012 = vmatpush1.bf16.msra.mxu1 %v11380_v22  ;;  %v6115_v41 = vpop.f32.mrb[19].mxu0  ;;  %7972 = vmatprep.subr.bf16.mxu0 %v11385_v5  ;;  %v11443_v22 = vld [vmem:[%s12147_s5 + $0x40] sm:$0xff]   ;;  %v11447_v24 = vld [vmem:[%s12147_s5 + $0x50] sm:$0xff]   ;;  %v11453_v33 = vld [vmem:[%s12147_s5 + $0x68] sm:$0xff]  }
 0x571   : > { %v13239_v44 = vadd.f32 %v6153_v30, %v6113_v27  ;;  %v6156_v31 = vpop.f32.mrb[19].mxu1  ;;  %8013 = vmatprep.subr.bf16.mxu1 %v11388_v23  ;;  %v11444_v5 = vld [vmem:[%s12147_s5] sm:$0xff]   ;;  %v11446_v23 = vld [vmem:[%s12147_s5 + $0x8] sm:$0xff]   ;;  %v11448_v25 = vld [vmem:[%s12147_s5 + $0x10] sm:$0xff]  }
 0x572   : > { %v11450_v27 = vld [vmem:[%s12147_s5 + $0x18] sm:$0xff]   ;;  %v11451_v30 = vld [vmem:[%s12147_s5 + $0x60] sm:$0xff]  }
 0x573   : > { %7973 = vmatpush1.bf16.msra.mxu0 %v11383_v1 }
 0x574   : > { %8014 = vmatpush1.bf16.msra.mxu1 %v11386_v28  ;;  %7974 = vmatprep.subr.bf16.mxu0 %v11391_v43  ;;  %v11454_v28 = vld [vmem:[%s12147_s5 + $0x28] sm:$0xff]  }
 0x575   : > { %8015 = vmatprep.subr.bf16.mxu1 %v11394_v45 }
 0x577   : > { %7975 = vmatpush1.bf16.msra.mxu0 %v11389_v46 }
 0x578   : > { %8016 = vmatpush1.bf16.msra.mxu1 %v11392_v47  ;;  %7976 = vmatprep.subr.bf16.mxu0 %v11397_v48 }
 0x579   : > { %8017 = vmatprep.subr.bf16.mxu1 %v11400_v49  ;;  %v11455_v49 = vld [vmem:[%s12147_s5 + $0x70] sm:$0xff]  }
 0x57b   : > { %7977 = vmatpush1.bf16.msra.mxu0 %v11395_v50  ;;  %v11456_v50 = vld [vmem:[%s12147_s5 + $0x30] sm:$0xff]  }
 0x57c   : > { %8018 = vmatpush1.bf16.msra.mxu1 %v11398_v51  ;;  %7978 = vmatprep.subr.bf16.mxu0 %v11403_v52  ;;  %v11457_v51 = vld [vmem:[%s12147_s5 + $0x78] sm:$0xff]  }
 0x57d   : > { %8019 = vmatprep.subr.bf16.mxu1 %v11406_v53  ;;  %v11458_v52 = vld [vmem:[%s12147_s5 + $0x38] sm:$0xff]   ;;  %v11460_v53 = vld [vmem:[%s12147_s5 + $0x80] sm:$0xff]  }
 0x57f   : > { %7979 = vmatpush1.bf16.msra.mxu0 %v11401_v54  ;;  %v11461_v54 = vld [vmem:[%s12147_s5 + $0xc8] sm:$0xff]  }
 0x580   : > { %8020 = vmatpush1.bf16.msra.mxu1 %v11404_v55  ;;  %7980 = vmatprep.subr.bf16.mxu0 %v11409_v56  ;;  %v11463_v55 = vld [vmem:[%s12147_s5 + $0xd0] sm:$0xff]  }
 0x581   : > { %8021 = vmatprep.subr.bf16.mxu1 %v11412_v57  ;;  %v11464_v56 = vld [vmem:[%s12147_s5 + $0x90] sm:$0xff]   ;;  %v11465_v57 = vld [vmem:[%s12147_s5 + $0xd8] sm:$0xff]  }
 0x583   : > { %7981 = vmatpush1.bf16.msra.mxu0 %v11407_v58  ;;  %v11466_v58 = vld [vmem:[%s12147_s5 + $0x98] sm:$0xff]  }
 0x584   : > { %8022 = vmatpush1.bf16.msra.mxu1 %v11410_v59  ;;  %7982 = vmatprep.subr.bf16.mxu0 %v11415_v2  ;;  %v11467_v59 = vld [vmem:[%s12147_s5 + $0xe0] sm:$0xff]  }
 0x585   : > { %8023 = vmatprep.subr.bf16.mxu1 %v11418_v8  ;;  %v11468_v2 = vld [vmem:[%s12147_s5 + $0xa0] sm:$0xff]  }
 0x587   : > { %7983 = vmatpush1.bf16.msra.mxu0 %v11413_v9 }
 0x588   : > { %8024 = vmatpush1.bf16.msra.mxu1 %v11416_v11  ;;  %7984 = vmatprep.subr.bf16.mxu0 %v11421_v13  ;;  %v11469_v13 = vld [vmem:[%s12147_s5 + $0xe8] sm:$0xff]  }
 0x589   : > { %8025 = vmatprep.subr.bf16.mxu1 %v11424_v14 }
 0x58b   : > { %7985 = vmatpush1.bf16.msra.mxu0 %v11419_v7 }
 0x58c   : > { %8026 = vmatpush1.bf16.msra.mxu1 %v11422_v15  ;;  %7986 = vmatprep.subr.bf16.mxu0 %v11427_v63  ;;  %v11470_v63 = vld [vmem:[%s12147_s5 + $0xa8] sm:$0xff]  }
 0x58d   : > { %8027 = vmatprep.subr.bf16.mxu1 %v11430_v29 }
 0x58f   : > { %7987 = vmatpush1.bf16.msra.mxu0 %v11425_v10 }
 0x590   : > { %8028 = vmatpush1.bf16.msra.mxu1 %v11428_v0  ;;  %7988 = vmatprep.subr.bf16.mxu0 %v11433_v32 }
 0x591   : > { %8029 = vmatprep.subr.bf16.mxu1 %v11436_v16 }
 0x593   : > { %7989 = vmatpush1.bf16.msra.mxu0 %v11431_v42 }
 0x594   : > { %8030 = vmatpush1.bf16.msra.mxu1 %v11434_v17  ;;  %7990 = vmatprep.subr.bf16.mxu0 %v11439_v18  ;;  %v11471_v17 = vld [vmem:[%s12147_s5 + $0xf0] sm:$0xff]  }
 0x595   : > { %8031 = vmatprep.subr.bf16.mxu1 %v11442_v19  ;;  %v11472_v18 = vld [vmem:[%s12147_s5 + $0xb0] sm:$0xff]   ;;  %v11473_v19 = vld [vmem:[%s12147_s5 + $0xf8] sm:$0xff]  }
 0x597   : > { %7991 = vmatpush1.bf16.msra.mxu0 %v11437_v20  ;;  %v11474_v20 = vld [vmem:[%s12147_s5 + $0xb8] sm:$0xff]  }
 0x598   : > { %8032 = vmatpush1.bf16.msra.mxu1 %v11440_v21  ;;  %9717 = vmatprep.subr.bf16.mxu0 %v11443_v22  ;;  %v8046_v21 = vld [vmem:[%s12145_s19] sm:$0xf] }
 0x59a   : > { %7993 = vmatmul.mubr.bf16.vlgmr.msra.gmra.mrb[32].mxu0 %v7230_v60 }
 0x59b   : > { %8034 = vmatmul.mubr.bf16.vlgmr.msra.gmra.mrb[32].mxu1 %v7232_v4  ;;  %9718 = vmatpush3.bf16.msra.mxu0 %v11444_v5 }
 0x59c   : > { %9719 = vmatprep.subr.bf16.mxu0 %v11445_v6 }
 0x59f   : > { %9720 = vmatpush3.bf16.msra.mxu0 %v11446_v23 }
 0x5a0   : > { %9721 = vmatprep.subr.bf16.mxu0 %v11447_v24 }
 0x5a3   : > { %9722 = vmatpush3.bf16.msra.mxu0 %v11448_v25 }
 0x5a4   : > { %9723 = vmatprep.subr.bf16.mxu0 %v11449_v26 }
 0x5a7   : > { %9724 = vmatpush3.bf16.msra.mxu0 %v11450_v27 }
 0x5a8   : > { %9725 = vmatprep.subr.bf16.mxu0 %v11451_v30 }
 0x5ab   : > { %9726 = vmatpush3.bf16.msra.mxu0 %v11452_v61 }
 0x5ac   : > { %9727 = vmatprep.subr.bf16.mxu0 %v11453_v33 }
 0x5ad   : > { %v6968_v62 = vpop.f32.mrb[20].mxu0 }
 0x5ae   : > { %v7009_v60 = vpop.f32.mrb[20].mxu1  ;;  %v6970_v4 = vpop.f32.mrb[21].mxu0 }
 0x5af   : > { %v7010_v1 = vadd.f32 %v7009_v60, %v6968_v62  ;;  %v7011_v3 = vpop.f32.mrb[21].mxu1  ;;  %v6972_v41 = vpop.f32.mrb[22].mxu0  ;;  %9728 = vmatpush3.bf16.msra.mxu0 %v11454_v28 }
 0x5b0   : > { %v7012_v43 = vadd.f32 %v7011_v3, %v6970_v4  ;;  %v7013_v31 = vpop.f32.mrb[22].mxu1  ;;  %v6973_v45 = vpop.f32.mrb[23].mxu0  ;;  %9729 = vmatprep.subr.bf16.mxu0 %v11455_v49 }
 0x5b1   : > { %v13293_v46 = vadd.f32 %v7010_v1, %v13155_v12  ;;  %v7014_v47 = vpop.f32.mrb[23].mxu1  ;;  %v11459_v12 = vld [vmem:[%s12147_s5 + $0xc0] sm:$0xff]  }
 0x5b2   : > { %v13296_v48 = vadd.f32 %v7012_v43, %v13159_v38  ;;  %9739 = vmatprep.subr.bf16.mxu1 %v11459_v12  ;;  %v11462_v38 = vld [vmem:[%s12147_s5 + $0x88] sm:$0xff]  }
 0x5b3   : > { %9730 = vmatpush3.bf16.msra.mxu0 %v11456_v50  ;;  %9740 = vmatpush3.bf16.msra.mxu1 %v11460_v53 }
 0x5b4   : > { %9731 = vmatprep.subr.bf16.mxu0 %v11457_v51  ;;  %9741 = vmatprep.subr.bf16.mxu1 %v11461_v54 }
 0x5b7   : > { %9732 = vmatpush3.bf16.msra.mxu0 %v11458_v52  ;;  %9742 = vmatpush3.bf16.msra.mxu1 %v11462_v38 }
 0x5b8   : > { %9743 = vmatprep.subr.bf16.mxu1 %v11463_v55 }
 0x5bb   : > { %9744 = vmatpush3.bf16.msra.mxu1 %v11464_v56 }
 0x5bc   : > { %9745 = vmatprep.subr.bf16.mxu1 %v11465_v57 }
 0x5bf   : > { %9746 = vmatpush3.bf16.msra.mxu1 %v11466_v58 }
 0x5c0   : > { %9747 = vmatprep.subr.bf16.mxu1 %v11467_v59 }
 0x5c3   : > { %9748 = vmatpush3.bf16.msra.mxu1 %v11468_v2 }
 0x5c4   : > { %9749 = vmatprep.subr.bf16.mxu1 %v11469_v13 }
 0x5c7   : > { %9750 = vmatpush3.bf16.msra.mxu1 %v11470_v63 }
 0x5c8   : > { %9751 = vmatprep.subr.bf16.mxu1 %v11471_v17 }
 0x5cb   : > { %9752 = vmatpush3.bf16.msra.mxu1 %v11472_v18 }
 0x5cc   : > { %9753 = vmatprep.subr.bf16.mxu1 %v11473_v19 }
 0x5cf   : > { %9754 = vmatpush3.bf16.msra.mxu1 %v11474_v20 }
 0x5ed   : > { %v7050_v8 = vpop.f32.mrb[24].mxu0 }
 0x5ee   : > { %v7091_v9 = vpop.f32.mrb[24].mxu1  ;;  %v7052_v11 = vpop.f32.mrb[25].mxu0 }
 0x5ef   : > { %v7092_v14 = vadd.f32 %v7091_v9, %v7050_v8  ;;  %v7093_v7 = vpop.f32.mrb[25].mxu1  ;;  %v7054_v15 = vpop.f32.mrb[26].mxu0  ;;  %v9675_v8 = vld [vmem:[%s436_s8] ss:$0 sm:$0xff] }
 0x5f0   : > { %v7094_v29 = vadd.f32 %v7093_v7, %v7052_v11  ;;  %v7095_v10 = vpop.f32.mrb[26].mxu1  ;;  %v7055_v0 = vpop.f32.mrb[27].mxu0 }
 0x5f1   : > { %v7100_v32 = vadd.f32 %v7092_v14, %v13235_v34  ;;  %v7096_v16 = vpop.f32.mrb[27].mxu1  ;;  %v8051_v34 = vrot.slane %v8046_v21, %v1040_v36 }
 0x5f2   : > { %v7101_v42 = vadd.f32 %v7094_v29, %v13239_v44  ;;  %v8055_v44 = vrot.slane %v8046_v21, %v1044_v39  ;;  %v8059_v39 = vrot.slane %v8046_v21, %v1048_v37 }
 0x62d   : > { %v7912_v22 = vpop.f32.mrb[28].mxu0 }
 0x62e   : > { %v7953_v5 = vpop.f32.mrb[28].mxu1  ;;  %v7914_v6 = vpop.f32.mrb[29].mxu0 }
 0x62f   : > { %v7954_v23 = vadd.f32 %v7953_v5, %v7912_v22  ;;  %v7955_v24 = vpop.f32.mrb[29].mxu1  ;;  %v7916_v25 = vpop.f32.mrb[30].mxu0 }
 0x630   : > { %v7956_v26 = vadd.f32 %v7955_v24, %v7914_v6  ;;  %v7957_v27 = vpop.f32.mrb[30].mxu1  ;;  %v7917_v30 = vpop.f32.mrb[31].mxu0 }
 0x631   : > { %v8042_v61 = vadd.f32 %v7954_v23, %v13293_v46  ;;  %v7958_v62 = vpop.f32.mrb[31].mxu1 }
 0x632   : > { %v8043_v60 = vadd.f32 %v7956_v26, %v13296_v48  ;;  %v8063_v48 = vrot.slane %v8046_v21, %v1052_v40 }
 0x633   : > { %v8068_v4 = vadd.f32 %v8051_v34, %v8042_v61 }
 0x634   : > { %v8069_v33 = vadd.f32 %v8055_v44, %v8043_v60 }
 0x635   : > { %v8072_v1 = vmax.f32 %v8068_v4, 0.0 }
 0x636   : > { %v8073_v3 = vmax.f32 %v8069_v33, 0.0 }
 0x637   : > { %v8076_v28 = vpack.c.bf16 %v8072_v1, %v8072_v1 }
 0x638   : > { %v8077_v41 = vpack.c.bf16 %v8073_v3, %v8073_v3 }
 0x63a   : > { %8375 = vmatprep.mubr.bf16.mxu0 %v8077_v41 }
 0x63b   : > { %8376 = vmatmul.mubr.bf16.vlgmr.msra.gmra.mrb[36].mxu0 %v8076_v28 }
 0x66d   : > { %v7994_v36 = vpop.f32.mrb[32].mxu0 }
 0x66e   : > { %v8035_v43 = vpop.f32.mrb[32].mxu1  ;;  %v7996_v31 = vpop.f32.mrb[33].mxu0 }
 0x66f   : > { %v8036_v45 = vadd.f32 %v8035_v43, %v7994_v36  ;;  %v8037_v47 = vpop.f32.mrb[33].mxu1  ;;  %v7998_v46 = vpop.f32.mrb[34].mxu0 }
 0x670   : > { %v8038_v49 = vadd.f32 %v8037_v47, %v7996_v31  ;;  %v8039_v50 = vpop.f32.mrb[34].mxu1  ;;  %v7999_v51 = vpop.f32.mrb[35].mxu0 }
 0x671   : > { %v8044_v52 = vadd.f32 %v8036_v45, %v7100_v32  ;;  %v8040_v12 = vpop.f32.mrb[35].mxu1 }
 0x672   : > { %v8045_v53 = vadd.f32 %v8038_v49, %v7101_v42 }
 0x673   : > { %v8070_v54 = vadd.f32 %v8059_v39, %v8044_v52 }
 0x674   : > { %v8071_v38 = vadd.f32 %v8063_v48, %v8045_v53 }
 0x675   : > { %v8074_v55 = vmax.f32 %v8070_v54, 0.0 }
 0x676   : > { %v8075_v56 = vmax.f32 %v8071_v38, 0.0 }
 0x677   : > { %v8078_v37 = vpack.c.bf16 %v8074_v55, %v8074_v55 }
 0x678   : > { %v8079_v57 = vpack.c.bf16 %v8075_v56, %v8075_v56 }
 0x67a   : > { %8415 = vmatprep.mubr.bf16.mxu1 %v8079_v57 }
 0x67b   : > { %8416 = vmatmul.mubr.bf16.vlgmr.msra.gmra.mrb[36].mxu1 %v8078_v37 }
 0x70e   : > { %v9733_v58 = vpop.f32.mrb[36].mxu0 }
 0x70f   : > { %v9734_v59 = vpop.f32.mrb[37].mxu0 }
 0x710   : > { %v9735_v35 = vadd.f32 %v9734_v59, %v9733_v58  ;;  %v9736_v40 = vpop.f32.mrb[38].mxu0 }
 0x711   : > { %v9737_v2 = vpop.f32.mrb[39].mxu0 }
 0x712   : > { %v8378_v13 = vadd.f32 %v9735_v35, %v9675_v8 }
 0x74e   : > { %v9755_v9 = vpop.f32.mrb[36].mxu1 }
 0x74f   : > { %v9756_v11 = vpop.f32.mrb[37].mxu1 }
 0x750   : > { %v9757_v14 = vadd.f32 %v9756_v11, %v9755_v9  ;;  %v9758_v7 = vpop.f32.mrb[38].mxu1 }
 0x751   : > { %v9759_v15 = vpop.f32.mrb[39].mxu1 }
 0x752   : > { %v8418_v63 = vadd.f32 %v9757_v14, %v8378_v13 }
 0x754   : > { %8423 = vst [vmem:[%s490_s10] sm:$0x3] %v8418_v63 }
 0x755   : > { %11696 = shalt.err (!%p11693_p6)
}
 0x756   : > { %s11697_s21 = scalar_lea.hbm %s13337_s0, 32  ;;  %s11701_s17 = scalar_lea.hbm %s13388_s7, 64 }
 0x757   : > { %p11698_p3 = scmp.ne.s32.totalorder %s13337_s0, %s11697_s21  ;;  %p11702_p13 = scmp.lt.u32.totalorder %s13337_s0, %s13388_s7 }
 0x758   : > { %p11703_p7 = scmp.lt.u32.totalorder %s11701_s17, %s11697_s21  ;;  %p11705_p11 = scmp.lt.u32.totalorder %s11697_s21, %s13337_s0 }
 0x759   : > { %p11699_p4 = pnand %p11698_p3, %p13439_p12 }
 0x75a   : > { %p11704_p10 = por %p11703_p7, %p11702_p13 }
 0x75b   : > { %p11700_p5 = pneg %p11699_p4 }
 0x75c   : > { %p11706_p2 = por %p11705_p11, %p11704_p10 }
 0x75e   : > { %p11707_p8 = pnand %p11706_p2, %p11700_p5 }
 0x760   : > { %11710 = shalt.err (!%p11707_p8)
}
 0x761   : > { %9837 = dma.vmem_to_hbm [thread:$0]  (%p13439_p12), %s13339_s16, 32, %s13337_s0, %s8425_s2  }
 0x762 PF: > { %s8450_s19 = sand.u32 1, %s11749_s24   ;;  %p13440_p9 = scmp.ne.s32.totalorder %s13420_s15, 0 }
 0x763   : > { %p13441_p0 = scmp.ge.s32.totalorder %s11761_s27, 2  ;;  %s8451_s3 = scalar_lea.sflag [#allocation4], %s8450_s19 }
 0x765   : > { %p9863_p1 = pnand %p13441_p0, %p13440_p9 }
 0x767   : > { %11744 = dma.done.wait (!%p9863_p1), %s8451_s3, 32  }
 0x768   : > { %11746 = vsyncadd (!%p9863_p1), %s8451_s3, 4294967264  ;;  %s13442_s5 = sld [smem:[#allocation20_spill]]  ;;  %s13443_s26 = sld [smem:[#allocation21_spill]] }
 0x769   : > { %p27_p6 = scmp.ge.s32.totalorder %s11836_s28, 4   ;;  %s13444_s24 = smov %s11753_s25 }
 0x76a   : > { %s13446_s27 = smov %s11836_s28 }
 0x76b   :  { %29 = sbr.rel (!%p27_p6) target bundleno = 16 (0x10), region = 157 }
 0x76e   : > { %s13445_s25 = smov %s13442_s5 }
 0x772   :  { %8456 = vsyncpa [#allocation3], 1 }
 0x773   :  { %8458 = vsyncpa [#allocation3 + $0x1], 1 }
 0x774   :  { %8459 = vsyncpa [#allocation6], 1 }
 0x775   :  { %8461 = vsyncpa [#allocation6 + $0x1], 1 }
 0x776   :  { %8462 = vsyncpa [#allocation9], 1 }
 0x777   :  { %8464 = vsyncpa [#allocation9 + $0x1], 1 }
 0x778   :  { %8465 = vsyncpa [#allocation12], 1 }
 0x779   :  { %8467 = vsyncpa [#allocation12 + $0x1], 1 }
 0x77a   :  { %8468 = vsyncpa [#allocation4], 1 }
 0x77b   :  { %8470 = vsyncpa [#allocation4 + $0x1], 1 }

</bundles_post_ra>
